<compile_context>
chip_gen: v7x
topology: tpu7x:2x2x1
jax: 0.10.0
libtpu: 0.0.40
codegen_flags: <defaults>
</compile_context>

<pallas_src>
import functools
import math

import jax
import jax.numpy as jnp
import numpy as np
from jax.experimental import pallas as pl
from jax.experimental.pallas import tpu as pltpu

TILE_Q = 128     # q token tile
TILE_KV = 256    # kv token tile (256 feeds the full 256-deep MXU on v6e/v7x)
TILE_ROW = 256   # row tile for the two dense GEMMs

MASK_FILL = -1e37   # << m-init so exp() of masked scores underflows to exact 0
M_INIT = -1e30


# ----------------------------------------------------------------- QKV proj
def _qkv_kernel(x_ref, w_ref, b_ref, o_ref, *, num_heads, head_dim, hidden):
    # x: (TILE_ROW, H) bf16   w: (H, 3H) bf16 (Q cols pre-scaled)  b: (1, 3H) f32
    # o: (3, num_heads, TILE_ROW, head_dim) bf16  -- head-major for attention.
    y = jnp.dot(x_ref[...], w_ref[...], preferred_element_type=jnp.float32)
    y = (y + b_ref[...]).astype(o_ref.dtype)
    # TODO(synk): per-(s,h) stores are head_dim-wide; a lane-packed qkv layout
    # would widen them but complicates the attention-side MXU mapping.
    for s in range(3):
        for h in range(num_heads):
            c0 = s * hidden + h * head_dim
            o_ref[s, h] = y[:, c0:c0 + head_dim]


def qkv_proj(x_bf, w_all, b_all, *, num_heads, head_dim):
    T_pad, H = x_bf.shape
    nt = T_pad // TILE_ROW
    kernel = functools.partial(_qkv_kernel, num_heads=num_heads,
                               head_dim=head_dim, hidden=H)
    return pl.pallas_call(
        kernel,
        out_shape=jax.ShapeDtypeStruct((3, num_heads, T_pad, head_dim), jnp.bfloat16),
        grid=(nt,),
        in_specs=[
            pl.BlockSpec((TILE_ROW, H), lambda i: (i, 0)),    # x row tile
            pl.BlockSpec((H, 3 * H), lambda i: (0, 0)),       # fused W (resident)
            pl.BlockSpec((1, 3 * H), lambda i: (0, 0)),       # fused bias
        ],
        out_specs=pl.BlockSpec((3, num_heads, TILE_ROW, head_dim),
                               lambda i: (0, 0, i, 0)),
        compiler_params=pltpu.CompilerParams(dimension_semantics=("parallel",)),
    )(x_bf, w_all, b_all)


# ------------------------------------------------ varlen flash attention MHA
def _attn_kernel(lo_ref, hi_ref, segq_ref, segk_ref, q_ref, k_ref, v_ref,
                 o_ref, m_sc, l_sc, acc_sc, *, num_heads, head_dim):
    i = pl.program_id(0)  # q tile
    j = pl.program_id(1)  # kv tile (reduction axis, innermost)

    @pl.when(j == 0)
    def _():
        m_sc[...] = jnp.full_like(m_sc, M_INIT)
        l_sc[...] = jnp.zeros_like(l_sc)
        acc_sc[...] = jnp.zeros_like(acc_sc)

    # kv band per q tile lives in SMEM (scalar prefetch).  Out-of-band steps
    # skip compute; their K/V index_maps are clamped so no DMA was issued.
    in_band = jnp.logical_and(j >= lo_ref[i], j <= hi_ref[i])

    @pl.when(in_band)
    def _():
        # q/k/v blocks: (num_heads, tile, head_dim) bf16, head-major, Q already
        # pre-scaled by 1/sqrt(d) (folded into the projection weights).
        q = q_ref[...]
        k = k_ref[...]
        v = v_ref[...]
        s = jnp.einsum("hqd,hkd->hqk", q, k,
                       preferred_element_type=jnp.float32)      # (nh, tq, tkv)

        mask = segq_ref[...] == segk_ref[...]                    # (tq,1)==(1,tkv)
        # MASK_FILL << M_INIT, so exp(s - m) underflows to exactly 0 for masked
        # columns (even for q rows fully masked inside this kv tile) -> no
        # second where() on p is needed.
        s = jnp.where(mask[None, :, :], s, MASK_FILL)

        m_prev = m_sc[...]                                       # (nh, tq, 1)
        m_new = jnp.maximum(m_prev, jnp.max(s, axis=-1, keepdims=True))
        alpha = jnp.exp(m_prev - m_new)
        p = jnp.exp(s - m_new)

        l_sc[...] = alpha * l_sc[...] + jnp.sum(p, axis=-1, keepdims=True)
        acc_sc[...] = alpha * acc_sc[...] + jnp.einsum(
            "hqk,hkd->hqd", p.astype(jnp.bfloat16), v,
            preferred_element_type=jnp.float32)
        m_sc[...] = m_new

    @pl.when(j == pl.num_programs(1) - 1)
    def _():
        # Exact reciprocal: runs once per q tile, negligible cost, tighter
        # parity with the reference normalization.
        inv = pl.reciprocal(l_sc[...], approx=False)             # (nh, tq, 1)
        # Assemble the full (tile_q, H) context and do ONE lane-dense store.
        ctx = jnp.concatenate(
            [acc_sc[h] * inv[h] for h in range(num_heads)], axis=-1)
        o_ref[...] = ctx.astype(o_ref.dtype)


def varlen_flash_mha(kv_lo, kv_hi, seg_col, seg_row, qkv, *,
                     num_heads, head_dim):
    _, _, T_pad, _ = qkv.shape
    H = num_heads * head_dim
    nt_q = T_pad // TILE_Q
    nt_kv = T_pad // TILE_KV
    kernel = functools.partial(_attn_kernel, num_heads=num_heads,
                               head_dim=head_dim)

    def _clamp(j, lo, hi, i):
        return jnp.minimum(jnp.maximum(j, lo[i]), hi[i])

    def kv_spec(slot):
        def imap(i, j, lo, hi):
            return (slot, 0, _clamp(j, lo, hi, i), 0)
        return pl.BlockSpec((None, num_heads, TILE_KV, head_dim), imap)

    def segrow_imap(i, j, lo, hi):
        return (0, _clamp(j, lo, hi, i))

    return pl.pallas_call(
        kernel,
        out_shape=jax.ShapeDtypeStruct((T_pad, H), jnp.bfloat16),
        grid_spec=pltpu.PrefetchScalarGridSpec(
            num_scalar_prefetch=2,          # kv_lo, kv_hi -> SMEM
            grid=(nt_q, nt_kv),
            in_specs=[
                pl.BlockSpec((TILE_Q, 1), lambda i, j, lo, hi: (i, 0)),   # seg (q)
                pl.BlockSpec((1, TILE_KV), segrow_imap),                  # seg (kv)
                pl.BlockSpec((None, num_heads, TILE_Q, head_dim),
                             lambda i, j, lo, hi: (0, 0, i, 0)),          # Q
                kv_spec(1),                                               # K
                kv_spec(2),                                               # V
            ],
            out_specs=pl.BlockSpec((TILE_Q, H), lambda i, j, lo, hi: (i, 0)),
            scratch_shapes=[
                pltpu.VMEM((num_heads, TILE_Q, 1), jnp.float32),            # m
                pltpu.VMEM((num_heads, TILE_Q, 1), jnp.float32),            # l
                pltpu.VMEM((num_heads, TILE_Q, head_dim), jnp.float32),     # acc
            ],
        ),
        compiler_params=pltpu.CompilerParams(
            dimension_semantics=("parallel", "arbitrary")),
    )(kv_lo, kv_hi, seg_col, seg_row, qkv, qkv, qkv)


# ------------------------------------ BertSelfOutput: dense + add + LayerNorm
def _self_output_kernel(ctx_ref, res_ref, w_ref, b_ref, g_ref, beta_ref, o_ref):
    h = jnp.dot(ctx_ref[...], w_ref[...], preferred_element_type=jnp.float32)
    # TODO(synk): hidden dropout omitted (hidden_dropout_prob = 0.0)
    h = h + b_ref[...] + res_ref[...]
    mean = jnp.mean(h, axis=-1, keepdims=True)
    var = jnp.mean(jnp.square(h - mean), axis=-1, keepdims=True)
    hn = (h - mean) * jax.lax.rsqrt(var + 1e-12)
    o_ref[...] = (hn * g_ref[...] + beta_ref[...]).astype(o_ref.dtype)


def bert_self_output(ctx, residual, w_t, b_row, gamma_row, beta_row):
    T_pad, H = residual.shape
    nt = T_pad // TILE_ROW
    return pl.pallas_call(
        _self_output_kernel,
        out_shape=jax.ShapeDtypeStruct((T_pad, H), jnp.float32),
        grid=(nt,),
        in_specs=[
            pl.BlockSpec((TILE_ROW, H), lambda i: (i, 0)),   # ctx (bf16)
            pl.BlockSpec((TILE_ROW, H), lambda i: (i, 0)),   # residual (f32)
            pl.BlockSpec((H, H), lambda i: (0, 0)),          # W_out^T (resident)
            pl.BlockSpec((1, H), lambda i: (0, 0)),
            pl.BlockSpec((1, H), lambda i: (0, 0)),
            pl.BlockSpec((1, H), lambda i: (0, 0)),
        ],
        out_specs=pl.BlockSpec((TILE_ROW, H), lambda i: (i, 0)),
        compiler_params=pltpu.CompilerParams(dimension_semantics=("parallel",)),
    )(ctx, residual, w_t, b_row, gamma_row, beta_row)


# ---------------------------------------------------------------- full module
def unpad_fmha_bert_attention(x, cu_seqlens, max_s, params, num_heads):
    # max_s only sizes the CUDA FMHA workspace; the varlen mask handles it here.
    del max_s
    T, H = x.shape
    d = H // num_heads
    gran = math.lcm(TILE_Q, TILE_KV, TILE_ROW)
    T_pad = ((T + gran - 1) // gran) * gran

    x_pad = jnp.pad(x.astype(jnp.float32), ((0, T_pad - T), (0, 0)))
    x_bf = x_pad.astype(jnp.bfloat16)

    # One-time parameter layout prep (weights only, negligible cost).
    scale = 1.0 / math.sqrt(d)
    col_scale = jnp.concatenate([jnp.full((H,), scale, jnp.float32),
                                 jnp.ones((2 * H,), jnp.float32)])
    w_all = params["w_qkv"].astype(jnp.float32).T          # (H, 3H): [Q | K | V]
    w_all = (w_all * col_scale[None, :]).astype(jnp.bfloat16)   # fold 1/sqrt(d)
    b_all = (params["b_qkv"].astype(jnp.float32) * col_scale)[None, :]
    w_out_t = params["w_out"].T.astype(jnp.bfloat16)
    b_out = params["b_out"][None, :].astype(jnp.float32)
    gamma = params["gamma"][None, :].astype(jnp.float32)
    beta = params["beta"][None, :].astype(jnp.float32)

    # Fused QKV projection, head-major output (3, heads, T_pad, d).
    qkv = qkv_proj(x_bf, w_all, b_all, num_heads=num_heads, head_dim=d)

    # Segment ids from cu_seqlens; padded tokens land in segment == num_seqs
    # (a segment of their own, so they never mix with real tokens).
    tok = jnp.arange(T_pad, dtype=jnp.int32)
    seg = jnp.sum(tok[:, None] >= cu_seqlens[None, 1:], axis=1).astype(jnp.int32)
    seg_col = seg[:, None]            # (T_pad, 1)  q-side mask operand
    seg_row = seg[None, :]            # (1, T_pad)  k-side mask operand

    # Per-q-tile kv band (seg is monotone, so overlapping kv tiles are a
    # contiguous range) -> SMEM scalar prefetch for tile skipping + DMA clamp.
    nt_kv = T_pad // TILE_KV
    q_min = seg[0::TILE_Q]
    q_max = seg[TILE_Q - 1::TILE_Q]
    kv_min = seg[0::TILE_KV]
    kv_max = seg[TILE_KV - 1::TILE_KV]
    kv_lo = jnp.argmax(kv_max[None, :] >= q_min[:, None], axis=1).astype(jnp.int32)
    kv_hi = (nt_kv - 1 - jnp.argmax(kv_min[None, ::-1] <= q_max[:, None],
                                    axis=1)).astype(jnp.int32)

    ctx = varlen_flash_mha(kv_lo, kv_hi, seg_col, seg_row, qkv,
                           num_heads=num_heads, head_dim=d)      # (T_pad, H) bf16

    out = bert_self_output(ctx, x_pad, w_out_t, b_out, gamma, beta)  # f32
    return out[:T]


# ------------------------------------------------------- pure-numpy reference
def reference(x, cu_seqlens_np, params, num_heads):
    T, H = x.shape
    d = H // num_heads
    qkv = x @ np.asarray(params["w_qkv"], np.float32).T + np.asarray(
        params["b_qkv"], np.float32)
    qkv = qkv.reshape(T, 3, num_heads, d)
    q, k, v = qkv[:, 0], qkv[:, 1], qkv[:, 2]
    ctx = np.zeros((T, num_heads, d), np.float32)
    for b in range(len(cu_seqlens_np) - 1):
        s0, s1 = int(cu_seqlens_np[b]), int(cu_seqlens_np[b + 1])
        for h in range(num_heads):
            sc = (q[s0:s1, h] @ k[s0:s1, h].T) / math.sqrt(d)
            sc = sc - sc.max(-1, keepdims=True)
            p = np.exp(sc)
            p = p / p.sum(-1, keepdims=True)
            ctx[s0:s1, h] = p @ v[s0:s1, h]
    ctx = ctx.reshape(T, H)
    h = ctx @ np.asarray(params["w_out"], np.float32).T + np.asarray(
        params["b_out"], np.float32)
    h = h + x
    mean = h.mean(-1, keepdims=True)
    var = ((h - mean) ** 2).mean(-1, keepdims=True)
    hn = (h - mean) / np.sqrt(var + 1e-12)
    return hn * np.asarray(params["gamma"], np.float32) + np.asarray(
        params["beta"], np.float32)


if __name__ == "__main__":
    hidden = 32
    num_heads = 4

    # 3 packed sequences; total=340 forces padding (to 512 at lcm=256), giving
    # 4 q tiles x 2 kv tiles so both the band clamp (kv_lo > 0) and the
    # out-of-band skip paths are exercised.
    seqlens = np.array([120, 120, 100], dtype=np.int32)
    cu_np = np.concatenate([[0], np.cumsum(seqlens)]).astype(np.int32)
    total = int(cu_np[-1])
    max_s = int(seqlens.max())
    cu_seqlens = jnp.asarray(cu_np)

    key = jax.random.PRNGKey(0)
    ks = jax.random.split(key, 6)
    x = jax.random.normal(ks[0], (total, hidden), jnp.float32)
    params = {
        "w_qkv": 0.05 * jax.random.normal(ks[1], (3 * hidden, hidden), jnp.float32),
        "b_qkv": 0.05 * jax.random.normal(ks[2], (3 * hidden,), jnp.float32),
        "w_out": 0.05 * jax.random.normal(ks[3], (hidden, hidden), jnp.float32),
        "b_out": 0.05 * jax.random.normal(ks[4], (hidden,), jnp.float32),
        "gamma": jnp.ones((hidden,), jnp.float32),
        "beta": jnp.zeros((hidden,), jnp.float32),
    }

    out = unpad_fmha_bert_attention(x, cu_seqlens, max_s, params, num_heads)
    out = jax.block_until_ready(out)

    ref = reference(np.asarray(x), cu_np, params, num_heads)
    # bf16 MXU operands (f32 accumulation) vs f32 reference -> relaxed tolerance.
    np.testing.assert_allclose(np.asarray(out), ref, rtol=2e-2, atol=2e-2)

    print("KERNEL_OK")
</pallas_src>

<mosaic_0001>
module attributes {stable_mosaic.version = 11 : i64} {
  func.func @_qkv_kernel(%arg0: i32, %arg1: memref<256x32xbf16, #tpu.memory_space<vmem>>, %arg2: memref<32x96xbf16, #tpu.memory_space<vmem>>, %arg3: memref<1x96xf32, #tpu.memory_space<vmem>>, %arg4: memref<3x4x256x8xbf16, #tpu.memory_space<vmem>>) attributes {dimension_semantics = [#tpu.dimension_semantics<parallel>], iteration_bounds = array<i64: 2>, scalar_prefetch = 0 : i64, scratch_operands = 0 : i64, tpu.core_type = #tpu.core_type<tc>, window_params = [{transform_indices = @transform_0, window_bounds = array<i64: 256, 32>}, {pipeline_mode = #tpu.pipeline_mode<synchronous>, transform_indices = @transform_1, window_bounds = array<i64: 32, 96>}, {pipeline_mode = #tpu.pipeline_mode<synchronous>, transform_indices = @transform_2, window_bounds = array<i64: 1, 96>}, {transform_indices = @transform_3, window_bounds = array<i64: 3, 4, 256, 8>}]} {
    %c0 = arith.constant 0 : index
    %c0_0 = arith.constant 0 : index
    %0 = vector.load %arg1[%c0, %c0_0] : memref<256x32xbf16, #tpu.memory_space<vmem>>, vector<256x32xbf16>
    %c0_1 = arith.constant 0 : index
    %c0_2 = arith.constant 0 : index
    %1 = vector.load %arg2[%c0_1, %c0_2] : memref<32x96xbf16, #tpu.memory_space<vmem>>, vector<32x96xbf16>
    %cst = arith.constant dense<0.000000e+00> : vector<256x96xf32>
    %2 = tpu.matmul %0, %1, %cst {dimension_numbers = #tpu.dot_dimension_numbers<[1], [0], [0], [1], [0, 0, 1, 1], [], []>} : vector<256x32xbf16>, vector<32x96xbf16>, vector<256x96xf32> -> vector<256x96xf32>
    %c0_3 = arith.constant 0 : index
    %c0_4 = arith.constant 0 : index
    %3 = vector.load %arg3[%c0_3, %c0_4] : memref<1x96xf32, #tpu.memory_space<vmem>>, vector<1x96xf32>
    %4 = vector.broadcast %3 : vector<1x96xf32> to vector<256x96xf32>
    %5 = arith.addf %2, %4 : vector<256x96xf32>
    %6 = arith.truncf %5 : vector<256x96xf32> to vector<256x96xbf16>
    %7 = vector.extract_strided_slice %6 {offsets = [0, 0], sizes = [256, 8], strides = [1, 1]} : vector<256x96xbf16> to vector<256x8xbf16>
    %c0_5 = arith.constant 0 : index
    %c0_6 = arith.constant 0 : index
    %c0_7 = arith.constant 0 : index
    %c0_8 = arith.constant 0 : index
    %8 = vector.load %arg4[%c0_5, %c0_6, %c0_7, %c0_8] : memref<3x4x256x8xbf16, #tpu.memory_space<vmem>>, vector<1x1x256x8xbf16>
    %9 = vector.shape_cast %8 : vector<1x1x256x8xbf16> to vector<256x8xbf16>
    %10 = vector.shape_cast %7 : vector<256x8xbf16> to vector<1x1x256x8xbf16>
    tpu.vector_store %arg4[%c0_5, %c0_6, %c0_7, %c0_8], %10 {strides = array<i32>} : memref<3x4x256x8xbf16, #tpu.memory_space<vmem>>, vector<1x1x256x8xbf16>,
    %11 = vector.extract_strided_slice %6 {offsets = [0, 8], sizes = [256, 8], strides = [1, 1]} : vector<256x96xbf16> to vector<256x8xbf16>
    %c0_9 = arith.constant 0 : index
    %c1 = arith.constant 1 : index
    %c0_10 = arith.constant 0 : index
    %c0_11 = arith.constant 0 : index
    %12 = vector.load %arg4[%c0_9, %c1, %c0_10, %c0_11] : memref<3x4x256x8xbf16, #tpu.memory_space<vmem>>, vector<1x1x256x8xbf16>
    %13 = vector.shape_cast %12 : vector<1x1x256x8xbf16> to vector<256x8xbf16>
    %14 = vector.shape_cast %11 : vector<256x8xbf16> to vector<1x1x256x8xbf16>
    tpu.vector_store %arg4[%c0_9, %c1, %c0_10, %c0_11], %14 {strides = array<i32>} : memref<3x4x256x8xbf16, #tpu.memory_space<vmem>>, vector<1x1x256x8xbf16>,
    %15 = vector.extract_strided_slice %6 {offsets = [0, 16], sizes = [256, 8], strides = [1, 1]} : vector<256x96xbf16> to vector<256x8xbf16>
    %c0_12 = arith.constant 0 : index
    %c2 = arith.constant 2 : index
    %c0_13 = arith.constant 0 : index
    %c0_14 = arith.constant 0 : index
    %16 = vector.load %arg4[%c0_12, %c2, %c0_13, %c0_14] : memref<3x4x256x8xbf16, #tpu.memory_space<vmem>>, vector<1x1x256x8xbf16>
    %17 = vector.shape_cast %16 : vector<1x1x256x8xbf16> to vector<256x8xbf16>
    %18 = vector.shape_cast %15 : vector<256x8xbf16> to vector<1x1x256x8xbf16>
    tpu.vector_store %arg4[%c0_12, %c2, %c0_13, %c0_14], %18 {strides = array<i32>} : memref<3x4x256x8xbf16, #tpu.memory_space<vmem>>, vector<1x1x256x8xbf16>,
    %19 = vector.extract_strided_slice %6 {offsets = [0, 24], sizes = [256, 8], strides = [1, 1]} : vector<256x96xbf16> to vector<256x8xbf16>
    %c0_15 = arith.constant 0 : index
    %c3 = arith.constant 3 : index
    %c0_16 = arith.constant 0 : index
    %c0_17 = arith.constant 0 : index
    %20 = vector.load %arg4[%c0_15, %c3, %c0_16, %c0_17] : memref<3x4x256x8xbf16, #tpu.memory_space<vmem>>, vector<1x1x256x8xbf16>
    %21 = vector.shape_cast %20 : vector<1x1x256x8xbf16> to vector<256x8xbf16>
    %22 = vector.shape_cast %19 : vector<256x8xbf16> to vector<1x1x256x8xbf16>
    tpu.vector_store %arg4[%c0_15, %c3, %c0_16, %c0_17], %22 {strides = array<i32>} : memref<3x4x256x8xbf16, #tpu.memory_space<vmem>>, vector<1x1x256x8xbf16>,
    %23 = vector.extract_strided_slice %6 {offsets = [0, 32], sizes = [256, 8], strides = [1, 1]} : vector<256x96xbf16> to vector<256x8xbf16>
    %c1_18 = arith.constant 1 : index
    %c0_19 = arith.constant 0 : index
    %c0_20 = arith.constant 0 : index
    %c0_21 = arith.constant 0 : index
    %24 = vector.load %arg4[%c1_18, %c0_19, %c0_20, %c0_21] : memref<3x4x256x8xbf16, #tpu.memory_space<vmem>>, vector<1x1x256x8xbf16>
    %25 = vector.shape_cast %24 : vector<1x1x256x8xbf16> to vector<256x8xbf16>
    %26 = vector.shape_cast %23 : vector<256x8xbf16> to vector<1x1x256x8xbf16>
    tpu.vector_store %arg4[%c1_18, %c0_19, %c0_20, %c0_21], %26 {strides = array<i32>} : memref<3x4x256x8xbf16, #tpu.memory_space<vmem>>, vector<1x1x256x8xbf16>,
    %27 = vector.extract_strided_slice %6 {offsets = [0, 40], sizes = [256, 8], strides = [1, 1]} : vector<256x96xbf16> to vector<256x8xbf16>
    %c1_22 = arith.constant 1 : index
    %c1_23 = arith.constant 1 : index
    %c0_24 = arith.constant 0 : index
    %c0_25 = arith.constant 0 : index
    %28 = vector.load %arg4[%c1_22, %c1_23, %c0_24, %c0_25] : memref<3x4x256x8xbf16, #tpu.memory_space<vmem>>, vector<1x1x256x8xbf16>
    %29 = vector.shape_cast %28 : vector<1x1x256x8xbf16> to vector<256x8xbf16>
    %30 = vector.shape_cast %27 : vector<256x8xbf16> to vector<1x1x256x8xbf16>
    tpu.vector_store %arg4[%c1_22, %c1_23, %c0_24, %c0_25], %30 {strides = array<i32>} : memref<3x4x256x8xbf16, #tpu.memory_space<vmem>>, vector<1x1x256x8xbf16>,
    %31 = vector.extract_strided_slice %6 {offsets = [0, 48], sizes = [256, 8], strides = [1, 1]} : vector<256x96xbf16> to vector<256x8xbf16>
    %c1_26 = arith.constant 1 : index
    %c2_27 = arith.constant 2 : index
    %c0_28 = arith.constant 0 : index
    %c0_29 = arith.constant 0 : index
    %32 = vector.load %arg4[%c1_26, %c2_27, %c0_28, %c0_29] : memref<3x4x256x8xbf16, #tpu.memory_space<vmem>>, vector<1x1x256x8xbf16>
    %33 = vector.shape_cast %32 : vector<1x1x256x8xbf16> to vector<256x8xbf16>
    %34 = vector.shape_cast %31 : vector<256x8xbf16> to vector<1x1x256x8xbf16>
    tpu.vector_store %arg4[%c1_26, %c2_27, %c0_28, %c0_29], %34 {strides = array<i32>} : memref<3x4x256x8xbf16, #tpu.memory_space<vmem>>, vector<1x1x256x8xbf16>,
    %35 = vector.extract_strided_slice %6 {offsets = [0, 56], sizes = [256, 8], strides = [1, 1]} : vector<256x96xbf16> to vector<256x8xbf16>
    %c1_30 = arith.constant 1 : index
    %c3_31 = arith.constant 3 : index
    %c0_32 = arith.constant 0 : index
    %c0_33 = arith.constant 0 : index
    %36 = vector.load %arg4[%c1_30, %c3_31, %c0_32, %c0_33] : memref<3x4x256x8xbf16, #tpu.memory_space<vmem>>, vector<1x1x256x8xbf16>
    %37 = vector.shape_cast %36 : vector<1x1x256x8xbf16> to vector<256x8xbf16>
    %38 = vector.shape_cast %35 : vector<256x8xbf16> to vector<1x1x256x8xbf16>
    tpu.vector_store %arg4[%c1_30, %c3_31, %c0_32, %c0_33], %38 {strides = array<i32>} : memref<3x4x256x8xbf16, #tpu.memory_space<vmem>>, vector<1x1x256x8xbf16>,
    %39 = vector.extract_strided_slice %6 {offsets = [0, 64], sizes = [256, 8], strides = [1, 1]} : vector<256x96xbf16> to vector<256x8xbf16>
    %c2_34 = arith.constant 2 : index
    %c0_35 = arith.constant 0 : index
    %c0_36 = arith.constant 0 : index
    %c0_37 = arith.constant 0 : index
    %40 = vector.load %arg4[%c2_34, %c0_35, %c0_36, %c0_37] : memref<3x4x256x8xbf16, #tpu.memory_space<vmem>>, vector<1x1x256x8xbf16>
    %41 = vector.shape_cast %40 : vector<1x1x256x8xbf16> to vector<256x8xbf16>
    %42 = vector.shape_cast %39 : vector<256x8xbf16> to vector<1x1x256x8xbf16>
    tpu.vector_store %arg4[%c2_34, %c0_35, %c0_36, %c0_37], %42 {strides = array<i32>} : memref<3x4x256x8xbf16, #tpu.memory_space<vmem>>, vector<1x1x256x8xbf16>,
    %43 = vector.extract_strided_slice %6 {offsets = [0, 72], sizes = [256, 8], strides = [1, 1]} : vector<256x96xbf16> to vector<256x8xbf16>
    %c2_38 = arith.constant 2 : index
    %c1_39 = arith.constant 1 : index
    %c0_40 = arith.constant 0 : index
    %c0_41 = arith.constant 0 : index
    %44 = vector.load %arg4[%c2_38, %c1_39, %c0_40, %c0_41] : memref<3x4x256x8xbf16, #tpu.memory_space<vmem>>, vector<1x1x256x8xbf16>
    %45 = vector.shape_cast %44 : vector<1x1x256x8xbf16> to vector<256x8xbf16>
    %46 = vector.shape_cast %43 : vector<256x8xbf16> to vector<1x1x256x8xbf16>
    tpu.vector_store %arg4[%c2_38, %c1_39, %c0_40, %c0_41], %46 {strides = array<i32>} : memref<3x4x256x8xbf16, #tpu.memory_space<vmem>>, vector<1x1x256x8xbf16>,
    %47 = vector.extract_strided_slice %6 {offsets = [0, 80], sizes = [256, 8], strides = [1, 1]} : vector<256x96xbf16> to vector<256x8xbf16>
    %c2_42 = arith.constant 2 : index
    %c2_43 = arith.constant 2 : index
    %c0_44 = arith.constant 0 : index
    %c0_45 = arith.constant 0 : index
    %48 = vector.load %arg4[%c2_42, %c2_43, %c0_44, %c0_45] : memref<3x4x256x8xbf16, #tpu.memory_space<vmem>>, vector<1x1x256x8xbf16>
    %49 = vector.shape_cast %48 : vector<1x1x256x8xbf16> to vector<256x8xbf16>
    %50 = vector.shape_cast %47 : vector<256x8xbf16> to vector<1x1x256x8xbf16>
    tpu.vector_store %arg4[%c2_42, %c2_43, %c0_44, %c0_45], %50 {strides = array<i32>} : memref<3x4x256x8xbf16, #tpu.memory_space<vmem>>, vector<1x1x256x8xbf16>,
    %51 = vector.extract_strided_slice %6 {offsets = [0, 88], sizes = [256, 8], strides = [1, 1]} : vector<256x96xbf16> to vector<256x8xbf16>
    %c2_46 = arith.constant 2 : index
    %c3_47 = arith.constant 3 : index
    %c0_48 = arith.constant 0 : index
    %c0_49 = arith.constant 0 : index
    %52 = vector.load %arg4[%c2_46, %c3_47, %c0_48, %c0_49] : memref<3x4x256x8xbf16, #tpu.memory_space<vmem>>, vector<1x1x256x8xbf16>
    %53 = vector.shape_cast %52 : vector<1x1x256x8xbf16> to vector<256x8xbf16>
    %54 = vector.shape_cast %51 : vector<256x8xbf16> to vector<1x1x256x8xbf16>
    tpu.vector_store %arg4[%c2_46, %c3_47, %c0_48, %c0_49], %54 {strides = array<i32>} : memref<3x4x256x8xbf16, #tpu.memory_space<vmem>>, vector<1x1x256x8xbf16>,
    return
  }
  func.func @transform_0(%arg0: i32) -> (i32, i32) {
    %c0_i32 = arith.constant 0 : i32
    %c0_i32_0 = arith.constant 0 : i32
    return %arg0, %c0_i32 : i32, i32
  }
  func.func @transform_1(%arg0: i32) -> (i32, i32) {
    %c0_i32 = arith.constant 0 : i32
    %c0_i32_0 = arith.constant 0 : i32
    %c0_i32_1 = arith.constant 0 : i32
    return %c0_i32, %c0_i32_0 : i32, i32
  }
  func.func @transform_2(%arg0: i32) -> (i32, i32) {
    %c0_i32 = arith.constant 0 : i32
    %c0_i32_0 = arith.constant 0 : i32
    %c0_i32_1 = arith.constant 0 : i32
    return %c0_i32, %c0_i32_0 : i32, i32
  }
  func.func @transform_3(%arg0: i32) -> (i32, i32, i32, i32) {
    %c0_i32 = arith.constant 0 : i32
    %c0_i32_0 = arith.constant 0 : i32
    %c0_i32_1 = arith.constant 0 : i32
    %c0_i32_2 = arith.constant 0 : i32
    return %c0_i32, %c0_i32_0, %arg0, %c0_i32_1 : i32, i32, i32, i32
  }
}

</mosaic_0001>

<bundles_post_ra>
// kernel: tpu_custom_call.1
= control target key start
LH: loop header
LB: loop body
LE: loop exit
PB: predicated region body
PF: predicated region fallthrough
CT: control target
= control target key end

     0   :  { %8 = vsyncpa [#allocation3], 0  ;;  %s6647_s0 = inlined_call_operand.vmem [shape: bf16[512,32], index: 0, kind: input, shape index: {}]   ;;  %s6648_s1 = inlined_call_operand.hbm [shape: bf16[32,96], index: 1, kind: input, shape index: {}]   ;;  %s6649_s2 = inlined_call_operand.hbm [shape: f32[1,96], index: 2, kind: input, shape index: {}]   ;;  %s6650_s3 = inlined_call_operand.vmem [shape: bf16[3,4,512,8], index: 3, kind: output, shape index: {}]  }
   0x1   :  { %9 = vsyncpa [#allocation5], 0  ;;  %s4500_s12 = smov 0   ;;  %s4502_s13 = smov 0  }
   0x2   :  { %s4504_s14 = smov 0  }
   0x3 LB: > { %s4513_s15 = sadd.s32 4294967295, %s4463_s14   ;;  %s4515_s16 = sadd.s32 1, %s4463_s14   ;;  %s4463_s14 = sphi %s4504_s14, %s6664_s14   ;;  %s4459_s13 = sphi %s4502_s13, %s6663_s13   ;;  %s4455_s12 = sphi %s4500_s12, %s6662_s12  }
   0x4   : > { %s87_s17 = ssub.s32 %s4463_s14, %s4515_s16  ;;  %s90_s18 = sadd.s32 1, %s4459_s13 }
   0x5   : > { %p88_p0 = scmp.eq.s32.totalorder %s87_s17, 0  ;;  %p100_p1 = scmp.ne.s32.totalorder %s4459_s13, %s4455_s12 }
   0x6   : > { %p101_p2 = scmp.eq.s32.totalorder %s4513_s15, 1  ;;  %p3777_p3 = scmp.ge.s32.totalorder %s4463_s14, 1 }
   0x7   : > { %s4523_s19 = scalar_select %p88_p0, %s4459_s13, %s90_s18  }
   0x8   : > { %p4525_p4 = por %p101_p2, %p100_p1  ;;  %p114_p5 = scmp.lt.s32.totalorder %s4463_s14, 3 }
   0x9   : > { %p6651_p6 = scmp.eq.s32.totalorder %s4513_s15, 0  ;;  %s4465_s22 = smov [#allocation2]  }
   0xa   : > { %s6653_s20 = scalar_select %p4525_p4, 1, 0 }
   0xb   : > { %p4530_p7 = pnand %p3777_p3, %p114_p5  ;;  %s126_s23 = sshll.u32 %s4465_s22, 4  ;;  %s127_s23 = int_to_ptr.vmem [resolvable:$true] %s126_s23 }
   0xc   : > { %s4466_s25 = smov [#allocation4]   ;;  %s4377_s29 = scalar_lea.hbm %s6648_s1, 256 }
   0xd   : > { %s6654_s21 = scalar_select %p4530_p7, 1, 0 }
   0xe   : > { %p4309_p8 = pneg %p4530_p7  ;;  %s140_s26 = sshll.u32 %s4466_s25, 4  ;;  %s4542_s26 = int_to_ptr.vmem [resolvable:$true] %s140_s26 }
   0xf   : > { %p4378_p10 = scmp.ne.s32.totalorder %s6648_s1, %s4377_s29  ;;  %p4384_p0 = scmp.lt.u32.totalorder %s4377_s29, %s6648_s1 }
  0x10   : > { %p4538_p9 = pnand %p6651_p6, %p4309_p8 }
  0x12   : > { %p4379_p11 = pneg %p4538_p9 }
  0x14   : > { %p4380_p12 = pnand %p4379_p11, %p4378_p10 }
  0x16   : > { %p4381_p13 = pneg %p4380_p12 }
  0x18   : > { %p4386_p1 = pnand %p4384_p0, %p4381_p13 }
  0x1a   : > { %4389 = shalt.err (!%p4386_p1)
}
  0x1b   : > { %s4390_s7 = scalar_lea.vmem %s127_s23, 256  ;;  %p4398_p8 = scmp.lt.s32.totalorder %s127_s23, %s127_s23 }
  0x1c   : > { %p4391_p2 = scmp.ne.s32.totalorder %s127_s23, %s4390_s7  ;;  %p4399_p6 = scmp.lt.s32.totalorder %s4390_s7, %s4390_s7 }
  0x1e   : > { %p4393_p3 = pnand %p4391_p2, %p4379_p11  ;;  %p4400_p4 = por %p4399_p6, %p4398_p8 }
  0x20   : > { %p4394_p5 = pneg %p4393_p3 }
  0x22   : > { %p4401_p7 = pnand %p4400_p4, %p4394_p5 }
  0x24   : > { %4404 = shalt.err (!%p4401_p7)
}
  0x25   : > { %s4467_s8 = smov 64   ;;  %s4468_s9 = smov 4  }
  0x26   : > { %4312 = dma.hbm_to_vmem [thread:$0]  (!%p4538_p9), %s6648_s1, 256, %s127_s23, [#allocation3], %s4467_s8, %s4467_s8, %s4468_s9  }
  0x27   : > { %s4405_s18 = scalar_lea.hbm %s6649_s2, 16 }
  0x28   : > { %p4406_p10 = scmp.ne.s32.totalorder %s6649_s2, %s4405_s18  ;;  %p4412_p7 = scmp.lt.u32.totalorder %s4405_s18, %s6649_s2 }
  0x2a   : > { %p4408_p4 = pnand %p4406_p10, %p4379_p11 }
  0x2c   : > { %p4409_p6 = pneg %p4408_p4 }
  0x2e   : > { %p4414_p12 = pnand %p4412_p7, %p4409_p6 }
  0x30   : > { %4417 = shalt.err (!%p4414_p12)
}
  0x31   : > { %s4418_s23 = scalar_lea.vmem %s4542_s26, 16  ;;  %s4425_s29 = scalar_lea.vmem %s4542_s26, 32 }
  0x32   : > { %p4419_p13 = scmp.ne.s32.totalorder %s4542_s26, %s4418_s23  ;;  %p4426_p2 = scmp.lt.s32.totalorder %s4542_s26, %s4542_s26 }
  0x33   : > { %p4427_p3 = scmp.lt.s32.totalorder %s4425_s29, %s4418_s23 }
  0x34   : > { %p4421_p0 = pnand %p4419_p13, %p4379_p11 }
  0x35   : > { %p4428_p5 = por %p4427_p3, %p4426_p2 }
  0x36   : > { %p4422_p1 = pneg %p4421_p0 }
  0x38   : > { %p4429_p8 = pnand %p4428_p5, %p4422_p1 }
  0x3a   : > { %4432 = shalt.err (!%p4429_p8)
}
  0x3b   : > { %4315 = dma.hbm_to_vmem [thread:$0]  (!%p4538_p9), %s6649_s2, 16, %s4542_s26, [#allocation5]  }
  0x3c   : > { %p6656_p10 = scmp.ne.s32.totalorder %s6654_s21, 0 }
  0x3d   : > { %p6657_p11 = scmp.eq.s32.totalorder (!%p6656_p10), %s4513_s15, 0 }
  0x3e   : > { %162 = sbr.rel (%p6656_p10) target bundleno = 1123 (0x463), region = 32 }
  0x45   : > { %4446 = dma.done.wait (%p6657_p11), [#allocation3], 256   ;;  %p6658_p4 = pmov %p6657_p11 }
  0x47   : > { %4448 = vsyncadd (%p6658_p4), [#allocation3], 4294967040  ;;  %p6659_p6 = pmov %p6658_p4 }
  0x48   : > { %p6660_p7 = pmov %p6658_p4 }
  0x49   : > { %4450 = dma.done.wait (%p6659_p6), [#allocation5], 16  }
  0x4a   : > { %4452 = vsyncadd (%p6660_p7), [#allocation5], 4294967280  ;;  %s3784_s24 = sshll.u32 %s4513_s15, 5  ;;  %v4359_v0 = vld [vmem:[#allocation2] sm:$0xff]   ;;  %v4360_v1 = vld [vmem:[#allocation2 + $0x8] sm:$0xff]   ;;  %vm332_vm0 = vcmask 261120  }
  0x4b   : > { %p190_p12 = scmp.lt.s32.totalorder %s3784_s24, 63  ;;  %4260 = vmatprep.subr.bf16.mxu0 %v4359_v0  ;;  %4296 = vmatprep.subr.bf16.mxu1 %v4359_v0  ;;  %s186_s7 = sand.u32 1, %s4455_s12   ;;  %v4641_v18 = vld [vmem:[#allocation4] ss:$0 sm:$0xff]  ;;  %vm670_vm1 = vcmask 60416  }
  0x4c   : > { %4261 = vmatpush3.bf16.msra.mxu0 %v4359_v0  ;;  %4298 = vmatpush3.bf16.msra.mxu1 %v4359_v0  ;;  %s4300_s8 = smul.u32 1536, %s186_s7  ;;  %s4469_s9 = smov 120  }
  0x4d   : > { %s6666_s24 = smov (!%p190_p12, %s3784_s24), 63  ;;  %4262 = vmatprep.subr.bf16.mxu0 %v4360_v1  ;;  %4297 = vmatprep.subr.bf16.mxu1 %v4360_v1  ;;  %s4470_s10 = smov 112  }
  0x4e   : > { %s3785_s26 = sshll.u32 %s6666_s24, 2  ;;  %s4659_s12 = scalar_lea.vmem [#allocation6], %s4300_s8 }
  0x4f   : > { %s4606_s6 = scalar_lea.vmem %s6647_s0, %s3785_s26  ;;  %s4471_s11 = smov 104  }
  0x50   : > { %v4361_v2 = vld [vmem:[%s4606_s6] sm:$0xff]   ;;  %v4363_v4 = vld [vmem:[%s4606_s6 + $0x8] sm:$0xff]   ;;  %4263 = vmatpush3.bf16.msra.mxu0 %v4360_v1  ;;  %4299 = vmatpush3.bf16.msra.mxu1 %v4360_v1  ;;  %v4365_v6 = vld [vmem:[%s4606_s6 + $0x10] sm:$0xff]   ;;  %s4472_s14 = smov 96   ;;  %s4473_s17 = smov 88  }
  0x51   : > { %v4362_v3 = vld [vmem:[%s4606_s6 + $0x40] sm:$0xff]   ;;  %4264 = vmatprep.mubr.msk.bf16.mxu0 %vm332_vm0, %v4361_v2  ;;  %v4364_v5 = vld [vmem:[%s4606_s6 + $0x48] sm:$0xff]   ;;  %v4367_v7 = vld [vmem:[%s4606_s6 + $0x50] sm:$0xff]   ;;  %s4474_s18 = smov 80   ;;  %s4475_s22 = smov 72  }
  0x52   : > { %4280 = vmatprep.mubr.msk.bf16.mxu1 %vm332_vm0, %v4362_v3  ;;  %v4366_v8 = vld [vmem:[%s4606_s6 + $0x18] sm:$0xff]   ;;  %v4369_v10 = vld [vmem:[%s4606_s6 + $0x20] sm:$0xff]   ;;  %v4370_v12 = vld [vmem:[%s4606_s6 + $0x28] sm:$0xff]   ;;  %s4476_s25 = smov 64   ;;  %s4477_s27 = smov 56  }
  0x53   : > { %4265 = vmatmul.mubr.msk.bf16.vlgmr.msra.gmra.mrb[0].mxu0 %vm332_vm0, %v4363_v4  ;;  %4281 = vmatmul.mubr.msk.bf16.vlgmr.msra.gmra.mrb[0].mxu1 %vm332_vm0, %v4364_v5  ;;  %v4368_v9 = vld [vmem:[%s4606_s6 + $0x58] sm:$0xff]   ;;  %v4371_v11 = vld [vmem:[%s4606_s6 + $0x60] sm:$0xff]   ;;  %v4372_v13 = vld [vmem:[%s4606_s6 + $0x68] sm:$0xff]   ;;  %s4478_s28 = smov 48   ;;  %s4479_s23 = smov 40  }
  0x54   : > { %4268 = vmatprep.mubr.msk.bf16.mxu0 %vm332_vm0, %v4365_v6  ;;  %4284 = vmatprep.mubr.msk.bf16.mxu1 %vm332_vm0, %v4367_v7  ;;  %v4373_v14 = vld [vmem:[%s4606_s6 + $0x30] sm:$0xff]   ;;  %v4374_v16 = vld [vmem:[%s4606_s6 + $0x38] sm:$0xff]   ;;  %p6661_p9 = scmp.ne.s32.totalorder %s6653_s20, 0 }
  0x55   : > { %v4375_v15 = vld [vmem:[%s4606_s6 + $0x70] sm:$0xff]   ;;  %v4376_v17 = vld [vmem:[%s4606_s6 + $0x78] sm:$0xff]   ;;  %s4241_s29 = sshll.u32 (%p6661_p9), %s4513_s15, 7 }
  0x56   : > { %s6254_s24 = scalar_lea.vmem (%p6661_p9), %s6650_s3, %s4241_s29 }
  0x5b   : > { %4269 = vmatmul.mubr.msk.bf16.gmra.mrb[4].mxu0 %vm332_vm0, %v4366_v8  ;;  %4285 = vmatmul.mubr.msk.bf16.gmra.mrb[4].mxu1 %vm332_vm0, %v4368_v9 }
  0x5c   : > { %4272 = vmatprep.mubr.msk.bf16.mxu0 %vm332_vm0, %v4369_v10  ;;  %4288 = vmatprep.mubr.msk.bf16.mxu1 %vm332_vm0, %v4371_v11 }
  0x63   : > { %4273 = vmatmul.mubr.msk.bf16.gmra.mrb[8].mxu0 %vm332_vm0, %v4370_v12  ;;  %4289 = vmatmul.mubr.msk.bf16.gmra.mrb[8].mxu1 %vm332_vm0, %v4372_v13 }
  0x64   : > { %4276 = vmatprep.mubr.msk.bf16.mxu0 %vm332_vm0, %v4373_v14  ;;  %4292 = vmatprep.mubr.msk.bf16.mxu1 %vm332_vm0, %v4375_v15 }
  0x6b   : > { %4277 = vmatmul.mubr.msk.bf16.gmra.mrb[12].mxu0 %vm332_vm0, %v4374_v16  ;;  %4293 = vmatmul.mubr.msk.bf16.gmra.mrb[12].mxu1 %vm332_vm0, %v4376_v17 }
 0x126   : > { %v4266_v19 = vpop.f32.mrb[0].mxu0  ;;  %v4282_v20 = vpop.f32.mrb[0].mxu1 }
 0x127   : > { %v424_v21 = vadd.f32 %v4266_v19, %v4641_v18  ;;  %v488_v22 = vadd.f32 %v4282_v20, %v4641_v18  ;;  %v415_v23 = vpop.f32.mrb[1].mxu0  ;;  %v479_v24 = vpop.f32.mrb[1].mxu1 }
 0x128   : > { %v416_v25 = vadd.f32 %v4641_v18, %v415_v23  ;;  %v480_v26 = vadd.f32 %v4641_v18, %v479_v24  ;;  %v4267_v27 = vpop.f32.mrb[2].mxu0  ;;  %v4283_v28 = vpop.f32.mrb[2].mxu1 }
 0x129   : > { %v4647_v29 = vpack.c.bf16 %v424_v21, %v424_v21  ;;  %v4649_v30 = vpack.c.bf16 %v488_v22, %v488_v22  ;;  %v427_v31 = vadd.f32 %v4267_v27, %v4641_v18  ;;  %v491_v32 = vadd.f32 %v4283_v28, %v4641_v18  ;;  %v418_v33 = vpop.f32.mrb[3].mxu0  ;;  %v482_v34 = vpop.f32.mrb[3].mxu1 }
 0x12a   : > { %v4653_v35 = vpack.c.bf16 %v416_v25, %v416_v25  ;;  %v4655_v36 = vpack.c.bf16 %v480_v26, %v480_v26  ;;  %v419_v37 = vadd.f32 %v4641_v18, %v418_v33  ;;  %v483_v38 = vadd.f32 %v4641_v18, %v482_v34 }
 0x12b   : > { %673 = vst.msk [vmem:[%s4659_s12 + $0x8] sm:$0xf] %vm670_vm1, %v4647_v29  ;;  %689 = vst.msk [vmem:[%s4659_s12 + $0x48] sm:$0xf] %vm670_vm1, %v4649_v30  ;;  %v4667_v39 = vpack.c.bf16 %v427_v31, %v427_v31  ;;  %v4669_v40 = vpack.c.bf16 %v491_v32, %v491_v32  ;;  %739 = vrot.lane.b32.xlu0 %v4649_v30, %s4469_s9  ;;  %707 = vrot.lane.b32.xlu1 %v4647_v29, %s4469_s9 }
 0x12c   : > { %671 = vst.msk [vmem:[%s4659_s12] sm:$0xf] %vm670_vm1, %v4653_v35  ;;  %687 = vst.msk [vmem:[%s4659_s12 + $0x40] sm:$0xf] %vm670_vm1, %v4655_v36  ;;  %v4681_v41 = vpack.c.bf16 %v419_v37, %v419_v37  ;;  %v4683_v42 = vpack.c.bf16 %v483_v38, %v483_v38 }
 0x12d   : > { %674 = vst.msk [vmem:[%s4659_s12 + $0xc] sm:$0xf] %vm670_vm1, %v4667_v39  ;;  %690 = vst.msk [vmem:[%s4659_s12 + $0x4c] sm:$0xf] %vm670_vm1, %v4669_v40 }
 0x12e   : > { %672 = vst.msk [vmem:[%s4659_s12 + $0x4] sm:$0xf] %vm670_vm1, %v4681_v41  ;;  %688 = vst.msk [vmem:[%s4659_s12 + $0x44] sm:$0xf] %vm670_vm1, %v4683_v42  ;;  %v4270_v43 = vpop.f32.mrb[4].mxu0  ;;  %v4286_v44 = vpop.f32.mrb[4].mxu1 }
 0x12f   : > { %836 = vrot.lane.b32.xlu0 %v4647_v29, %s4470_s10  ;;  %709 = vrot.lane.b32.xlu1 %v4667_v39, %s4469_s9  ;;  %v440_v45 = vadd.f32 %v4270_v43, %v4641_v18  ;;  %v431_v46 = vpop.f32.mrb[5].mxu0  ;;  %v504_v47 = vadd.f32 %v4286_v44, %v4641_v18  ;;  %v495_v48 = vpop.f32.mrb[5].mxu1 }
 0x130   : > { %v432_v49 = vadd.f32 %v4641_v18, %v431_v46  ;;  %v4271_v50 = vpop.f32.mrb[6].mxu0  ;;  %v496_v51 = vadd.f32 %v4641_v18, %v495_v48  ;;  %v4287_v52 = vpop.f32.mrb[6].mxu1 }
 0x131   : > { %v4705_v53 = vpack.c.bf16 %v440_v45, %v440_v45  ;;  %v443_v54 = vadd.f32 %v4271_v50, %v4641_v18  ;;  %v434_v55 = vpop.f32.mrb[7].mxu0  ;;  %v4708_v56 = vpack.c.bf16 %v504_v47, %v504_v47  ;;  %v507_v57 = vadd.f32 %v4287_v52, %v4641_v18  ;;  %v498_v58 = vpop.f32.mrb[7].mxu1 }
 0x132   : > { %v4711_v59 = vpack.c.bf16 %v432_v49, %v432_v49  ;;  %v435_v60 = vadd.f32 %v4641_v18, %v434_v55  ;;  %v4714_v61 = vpack.c.bf16 %v496_v51, %v496_v51  ;;  %v499_v62 = vadd.f32 %v4641_v18, %v498_v58 }
 0x133   : > { %868 = vrot.lane.b32.xlu0 %v4649_v30, %s4470_s10  ;;  %741 = vrot.lane.b32.xlu1 %v4669_v40, %s4469_s9  ;;  %677 = vst.msk [vmem:[%s4659_s12 + $0x18] sm:$0xf] %vm670_vm1, %v4705_v53  ;;  %v4724_v63 = vpack.c.bf16 %v443_v54, %v443_v54  ;;  %693 = vst.msk [vmem:[%s4659_s12 + $0x58] sm:$0xf] %vm670_vm1, %v4708_v56  ;;  %v4729_v0 = vpack.c.bf16 %v507_v57, %v507_v57 }
 0x134   : > { %675 = vst.msk [vmem:[%s4659_s12 + $0x10] sm:$0xf] %vm670_vm1, %v4711_v59  ;;  %v4734_v1 = vpack.c.bf16 %v435_v60, %v435_v60  ;;  %691 = vst.msk [vmem:[%s4659_s12 + $0x50] sm:$0xf] %vm670_vm1, %v4714_v61  ;;  %v4739_v2 = vpack.c.bf16 %v499_v62, %v499_v62 }
 0x135   : > { %678 = vst.msk [vmem:[%s4659_s12 + $0x1c] sm:$0xf] %vm670_vm1, %v4724_v63  ;;  %694 = vst.msk [vmem:[%s4659_s12 + $0x5c] sm:$0xf] %vm670_vm1, %v4729_v0 }
 0x136   : > { %676 = vst.msk [vmem:[%s4659_s12 + $0x14] sm:$0xf] %vm670_vm1, %v4734_v1  ;;  %692 = vst.msk [vmem:[%s4659_s12 + $0x54] sm:$0xf] %vm670_vm1, %v4739_v2  ;;  %v4274_v3 = vpop.f32.mrb[8].mxu0  ;;  %v4290_v4 = vpop.f32.mrb[8].mxu1 }
 0x137   : > { %965 = vrot.lane.b32.xlu0 %v4647_v29, %s4471_s11  ;;  %838 = vrot.lane.b32.xlu1 %v4667_v39, %s4470_s10  ;;  %v456_v5 = vadd.f32 %v4274_v3, %v4641_v18  ;;  %v447_v6 = vpop.f32.mrb[9].mxu0  ;;  %v520_v7 = vadd.f32 %v4290_v4, %v4641_v18  ;;  %v511_v8 = vpop.f32.mrb[9].mxu1 }
 0x138   : > { %v448_v9 = vadd.f32 %v4641_v18, %v447_v6  ;;  %v4275_v10 = vpop.f32.mrb[10].mxu0  ;;  %v512_v11 = vadd.f32 %v4641_v18, %v511_v8  ;;  %v4291_v12 = vpop.f32.mrb[10].mxu1 }
 0x139   : > { %v4761_v13 = vpack.c.bf16 %v456_v5, %v456_v5  ;;  %v459_v14 = vadd.f32 %v4275_v10, %v4641_v18  ;;  %v450_v15 = vpop.f32.mrb[11].mxu0  ;;  %v4764_v16 = vpack.c.bf16 %v520_v7, %v520_v7  ;;  %v523_v17 = vadd.f32 %v4291_v12, %v4641_v18  ;;  %v514_v19 = vpop.f32.mrb[11].mxu1 }
 0x13a   : > { %v4767_v20 = vpack.c.bf16 %v448_v9, %v448_v9  ;;  %v451_v21 = vadd.f32 %v4641_v18, %v450_v15  ;;  %v4770_v22 = vpack.c.bf16 %v512_v11, %v512_v11  ;;  %v515_v23 = vadd.f32 %v4641_v18, %v514_v19 }
 0x13b   : > { %997 = vrot.lane.b32.xlu0 %v4649_v30, %s4471_s11  ;;  %870 = vrot.lane.b32.xlu1 %v4669_v40, %s4470_s10  ;;  %681 = vst.msk [vmem:[%s4659_s12 + $0x28] sm:$0xf] %vm670_vm1, %v4761_v13  ;;  %v4780_v24 = vpack.c.bf16 %v459_v14, %v459_v14  ;;  %697 = vst.msk [vmem:[%s4659_s12 + $0x68] sm:$0xf] %vm670_vm1, %v4764_v16  ;;  %v4785_v25 = vpack.c.bf16 %v523_v17, %v523_v17 }
 0x13c   : > { %679 = vst.msk [vmem:[%s4659_s12 + $0x20] sm:$0xf] %vm670_vm1, %v4767_v20  ;;  %v4790_v26 = vpack.c.bf16 %v451_v21, %v451_v21  ;;  %695 = vst.msk [vmem:[%s4659_s12 + $0x60] sm:$0xf] %vm670_vm1, %v4770_v22  ;;  %v4795_v27 = vpack.c.bf16 %v515_v23, %v515_v23 }
 0x13d   : > { %682 = vst.msk [vmem:[%s4659_s12 + $0x2c] sm:$0xf] %vm670_vm1, %v4780_v24  ;;  %698 = vst.msk [vmem:[%s4659_s12 + $0x6c] sm:$0xf] %vm670_vm1, %v4785_v25 }
 0x13e   : > { %680 = vst.msk [vmem:[%s4659_s12 + $0x24] sm:$0xf] %vm670_vm1, %v4790_v26  ;;  %696 = vst.msk [vmem:[%s4659_s12 + $0x64] sm:$0xf] %vm670_vm1, %v4795_v27  ;;  %v4278_v28 = vpop.f32.mrb[12].mxu0  ;;  %v4294_v45 = vpop.f32.mrb[12].mxu1 }
 0x13f   : > { %1094 = vrot.lane.b32.xlu0 %v4647_v29, %s4472_s14  ;;  %967 = vrot.lane.b32.xlu1 %v4667_v39, %s4471_s11  ;;  %v472_v31 = vadd.f32 %v4278_v28, %v4641_v18  ;;  %v463_v32 = vpop.f32.mrb[13].mxu0  ;;  %v536_v48 = vadd.f32 %v4294_v45, %v4641_v18  ;;  %v527_v49 = vpop.f32.mrb[13].mxu1 }
 0x140   : > { %v464_v33 = vadd.f32 %v4641_v18, %v463_v32  ;;  %v4279_v34 = vpop.f32.mrb[14].mxu0  ;;  %v528_v50 = vadd.f32 %v4641_v18, %v527_v49  ;;  %v4295_v51 = vpop.f32.mrb[14].mxu1 }
 0x141   : > { %v4855_v37 = vpack.c.bf16 %v472_v31, %v472_v31  ;;  %v475_v38 = vadd.f32 %v4279_v34, %v4641_v18  ;;  %v466_v44 = vpop.f32.mrb[15].mxu0  ;;  %v4880_v54 = vpack.c.bf16 %v536_v48, %v536_v48  ;;  %v539_v55 = vadd.f32 %v4295_v51, %v4641_v18  ;;  %v530_v58 = vpop.f32.mrb[15].mxu1 }
 0x142   : > { %v4858_v43 = vpack.c.bf16 %v464_v33, %v464_v33  ;;  %v467_v47 = vadd.f32 %v4641_v18, %v466_v44  ;;  %v4883_v57 = vpack.c.bf16 %v528_v50, %v528_v50  ;;  %v531_v62 = vadd.f32 %v4641_v18, %v530_v58 }
 0x143   : > { %1126 = vrot.lane.b32.xlu0 %v4649_v30, %s4472_s14  ;;  %999 = vrot.lane.b32.xlu1 %v4669_v40, %s4471_s11  ;;  %685 = vst.msk [vmem:[%s4659_s12 + $0x38] sm:$0xf] %vm670_vm1, %v4855_v37  ;;  %v4867_v46 = vpack.c.bf16 %v475_v38, %v475_v38  ;;  %701 = vst.msk [vmem:[%s4659_s12 + $0x78] sm:$0xf] %vm670_vm1, %v4880_v54  ;;  %v4895_v60 = vpack.c.bf16 %v539_v55, %v539_v55 }
 0x144   : > { %683 = vst.msk [vmem:[%s4659_s12 + $0x30] sm:$0xf] %vm670_vm1, %v4858_v43  ;;  %v4878_v52 = vpack.c.bf16 %v467_v47, %v467_v47  ;;  %699 = vst.msk [vmem:[%s4659_s12 + $0x70] sm:$0xf] %vm670_vm1, %v4883_v57  ;;  %v4904_v3 = vpack.c.bf16 %v531_v62, %v531_v62 }
 0x145   : > { %686 = vst.msk [vmem:[%s4659_s12 + $0x3c] sm:$0xf] %vm670_vm1, %v4867_v46  ;;  %702 = vst.msk [vmem:[%s4659_s12 + $0x7c] sm:$0xf] %vm670_vm1, %v4895_v60 }
 0x146   : > { %684 = vst.msk [vmem:[%s4659_s12 + $0x34] sm:$0xf] %vm670_vm1, %v4878_v52  ;;  %700 = vst.msk [vmem:[%s4659_s12 + $0x74] sm:$0xf] %vm670_vm1, %v4904_v3 }
 0x147   : > { %1096 = vrot.lane.b32.xlu1 %v4667_v39, %s4472_s14  ;;  %703 = vrot.lane.b32.xlu0 %v4653_v35, %s4469_s9 }
 0x14b   : > { %1128 = vrot.lane.b32.xlu1 %v4669_v40, %s4472_s14  ;;  %735 = vrot.lane.b32.xlu0 %v4655_v36, %s4469_s9 }
 0x14f   : > { %737 = vrot.lane.b32.xlu1 %v4683_v42, %s4469_s9  ;;  %832 = vrot.lane.b32.xlu0 %v4653_v35, %s4470_s10 }
 0x153   : > { %834 = vrot.lane.b32.xlu1 %v4681_v41, %s4470_s10  ;;  %864 = vrot.lane.b32.xlu0 %v4655_v36, %s4470_s10 }
 0x157   : > { %866 = vrot.lane.b32.xlu1 %v4683_v42, %s4470_s10  ;;  %961 = vrot.lane.b32.xlu0 %v4653_v35, %s4471_s11 }
 0x15b   : > { %963 = vrot.lane.b32.xlu1 %v4681_v41, %s4471_s11  ;;  %993 = vrot.lane.b32.xlu0 %v4655_v36, %s4471_s11 }
 0x15f   : > { %995 = vrot.lane.b32.xlu1 %v4683_v42, %s4471_s11  ;;  %1090 = vrot.lane.b32.xlu0 %v4653_v35, %s4472_s14 }
 0x163   : > { %1092 = vrot.lane.b32.xlu1 %v4681_v41, %s4472_s14  ;;  %1122 = vrot.lane.b32.xlu0 %v4655_v36, %s4472_s14 }
 0x167   : > { %1124 = vrot.lane.b32.xlu1 %v4683_v42, %s4472_s14  ;;  %1219 = vrot.lane.b32.xlu0 %v4653_v35, %s4473_s17 }
 0x16b   : > { %1221 = vrot.lane.b32.xlu1 %v4681_v41, %s4473_s17  ;;  %705 = vrot.lane.b32.xlu0 %v4681_v41, %s4469_s9 }
 0x16f   : > { %717 = vrot.lane.b32.xlu1 %v4724_v63, %s4469_s9  ;;  %715 = vrot.lane.b32.xlu0 %v4705_v53, %s4469_s9 }
 0x173   : > { %749 = vrot.lane.b32.xlu1 %v4729_v0, %s4469_s9  ;;  %747 = vrot.lane.b32.xlu0 %v4708_v56, %s4469_s9 }
 0x177   : > { %846 = vrot.lane.b32.xlu1 %v4724_v63, %s4470_s10  ;;  %844 = vrot.lane.b32.xlu0 %v4705_v53, %s4470_s10 }
 0x17b   : > { %878 = vrot.lane.b32.xlu1 %v4729_v0, %s4470_s10  ;;  %876 = vrot.lane.b32.xlu0 %v4708_v56, %s4470_s10 }
 0x17f   : > { %975 = vrot.lane.b32.xlu1 %v4724_v63, %s4471_s11  ;;  %973 = vrot.lane.b32.xlu0 %v4705_v53, %s4471_s11 }
 0x183   : > { %1007 = vrot.lane.b32.xlu1 %v4729_v0, %s4471_s11  ;;  %1005 = vrot.lane.b32.xlu0 %v4708_v56, %s4471_s11 }
 0x187   : > { %1104 = vrot.lane.b32.xlu1 %v4724_v63, %s4472_s14  ;;  %1102 = vrot.lane.b32.xlu0 %v4705_v53, %s4472_s14 }
 0x18b   : > { %1136 = vrot.lane.b32.xlu1 %v4729_v0, %s4472_s14  ;;  %1134 = vrot.lane.b32.xlu0 %v4708_v56, %s4472_s14 }
 0x18f   : > { %713 = vrot.lane.b32.xlu1 %v4734_v1, %s4469_s9  ;;  %711 = vrot.lane.b32.xlu0 %v4711_v59, %s4469_s9 }
 0x193   : > { %745 = vrot.lane.b32.xlu1 %v4739_v2, %s4469_s9  ;;  %743 = vrot.lane.b32.xlu0 %v4714_v61, %s4469_s9 }
 0x197   : > { %842 = vrot.lane.b32.xlu1 %v4734_v1, %s4470_s10  ;;  %840 = vrot.lane.b32.xlu0 %v4711_v59, %s4470_s10 }
 0x19b   : > { %874 = vrot.lane.b32.xlu1 %v4739_v2, %s4470_s10  ;;  %872 = vrot.lane.b32.xlu0 %v4714_v61, %s4470_s10 }
 0x19d   : > { %v740_v18 = vpop.permute.xlu0 %739  ;;  %v708_v4 = vpop.permute.xlu1 %707 }
 0x19e   : > { %3871 = vst.msk [vmem:[%s4659_s12 + $0xc8] sm:$0xf] %vm670_vm1, %v740_v18  ;;  %3855 = vst.msk [vmem:[%s4659_s12 + $0x88] sm:$0xf] %vm670_vm1, %v708_v4 }
 0x19f   : > { %971 = vrot.lane.b32.xlu1 %v4734_v1, %s4471_s11  ;;  %969 = vrot.lane.b32.xlu0 %v4711_v59, %s4471_s11 }
 0x1a1   : > { %v837_v5 = vpop.permute.xlu0 %836  ;;  %v710_v6 = vpop.permute.xlu1 %709 }
 0x1a2   : > { %3887 = vst.msk [vmem:[%s4659_s12 + $0x108] sm:$0xf] %vm670_vm1, %v837_v5  ;;  %3856 = vst.msk [vmem:[%s4659_s12 + $0x8c] sm:$0xf] %vm670_vm1, %v710_v6 }
 0x1a3   : > { %1003 = vrot.lane.b32.xlu1 %v4739_v2, %s4471_s11  ;;  %1001 = vrot.lane.b32.xlu0 %v4714_v61, %s4471_s11 }
 0x1a5   : > { %v869_v7 = vpop.permute.xlu0 %868  ;;  %v742_v8 = vpop.permute.xlu1 %741 }
 0x1a6   : > { %3903 = vst.msk [vmem:[%s4659_s12 + $0x148] sm:$0xf] %vm670_vm1, %v869_v7  ;;  %3872 = vst.msk [vmem:[%s4659_s12 + $0xcc] sm:$0xf] %vm670_vm1, %v742_v8 }
 0x1a7   : > { %1100 = vrot.lane.b32.xlu1 %v4734_v1, %s4472_s14  ;;  %1098 = vrot.lane.b32.xlu0 %v4711_v59, %s4472_s14 }
 0x1a9   : > { %v966_v9 = vpop.permute.xlu0 %965  ;;  %v839_v10 = vpop.permute.xlu1 %838 }
 0x1aa   : > { %3919 = vst.msk [vmem:[%s4659_s12 + $0x188] sm:$0xf] %vm670_vm1, %v966_v9  ;;  %3888 = vst.msk [vmem:[%s4659_s12 + $0x10c] sm:$0xf] %vm670_vm1, %v839_v10 }
 0x1ab   : > { %1132 = vrot.lane.b32.xlu1 %v4739_v2, %s4472_s14  ;;  %1130 = vrot.lane.b32.xlu0 %v4714_v61, %s4472_s14 }
 0x1ad   : > { %v998_v11 = vpop.permute.xlu0 %997  ;;  %v871_v12 = vpop.permute.xlu1 %870 }
 0x1ae   : > { %3935 = vst.msk [vmem:[%s4659_s12 + $0x1c8] sm:$0xf] %vm670_vm1, %v998_v11  ;;  %3904 = vst.msk [vmem:[%s4659_s12 + $0x14c] sm:$0xf] %vm670_vm1, %v871_v12 }
 0x1af   : > { %725 = vrot.lane.b32.xlu1 %v4780_v24, %s4469_s9  ;;  %723 = vrot.lane.b32.xlu0 %v4761_v13, %s4469_s9 }
 0x1b1   : > { %v1095_v14 = vpop.permute.xlu0 %1094  ;;  %v968_v15 = vpop.permute.xlu1 %967 }
 0x1b2   : > { %3951 = vst.msk [vmem:[%s4659_s12 + $0x208] sm:$0xf] %vm670_vm1, %v1095_v14  ;;  %3920 = vst.msk [vmem:[%s4659_s12 + $0x18c] sm:$0xf] %vm670_vm1, %v968_v15 }
 0x1b3   : > { %757 = vrot.lane.b32.xlu1 %v4785_v25, %s4469_s9  ;;  %755 = vrot.lane.b32.xlu0 %v4764_v16, %s4469_s9 }
 0x1b5   : > { %v1127_v17 = vpop.permute.xlu0 %1126  ;;  %v1000_v19 = vpop.permute.xlu1 %999 }
 0x1b6   : > { %3967 = vst.msk [vmem:[%s4659_s12 + $0x248] sm:$0xf] %vm670_vm1, %v1127_v17  ;;  %3936 = vst.msk [vmem:[%s4659_s12 + $0x1cc] sm:$0xf] %vm670_vm1, %v1000_v19 }
 0x1b7   : > { %854 = vrot.lane.b32.xlu1 %v4780_v24, %s4470_s10  ;;  %852 = vrot.lane.b32.xlu0 %v4761_v13, %s4470_s10 }
 0x1b9   : > { %v1097_v21 = vpop.permute.xlu1 %1096  ;;  %v704_v23 = vpop.permute.xlu0 %703 }
 0x1ba   : > { %3952 = vst.msk [vmem:[%s4659_s12 + $0x20c] sm:$0xf] %vm670_vm1, %v1097_v21  ;;  %3853 = vst.msk [vmem:[%s4659_s12 + $0x80] sm:$0xf] %vm670_vm1, %v704_v23 }
 0x1bb   : > { %886 = vrot.lane.b32.xlu1 %v4785_v25, %s4470_s10  ;;  %884 = vrot.lane.b32.xlu0 %v4764_v16, %s4470_s10 }
 0x1bd   : > { %v1129_v28 = vpop.permute.xlu1 %1128  ;;  %v736_v31 = vpop.permute.xlu0 %735 }
 0x1be   : > { %3968 = vst.msk [vmem:[%s4659_s12 + $0x24c] sm:$0xf] %vm670_vm1, %v1129_v28  ;;  %3869 = vst.msk [vmem:[%s4659_s12 + $0xc0] sm:$0xf] %vm670_vm1, %v736_v31 }
 0x1bf   : > { %983 = vrot.lane.b32.xlu1 %v4780_v24, %s4471_s11  ;;  %981 = vrot.lane.b32.xlu0 %v4761_v13, %s4471_s11 }
 0x1c1   : > { %v738_v32 = vpop.permute.xlu1 %737  ;;  %v833_v33 = vpop.permute.xlu0 %832 }
 0x1c2   : > { %3870 = vst.msk [vmem:[%s4659_s12 + $0xc4] sm:$0xf] %vm670_vm1, %v738_v32  ;;  %3885 = vst.msk [vmem:[%s4659_s12 + $0x100] sm:$0xf] %vm670_vm1, %v833_v33 }
 0x1c3   : > { %1015 = vrot.lane.b32.xlu1 %v4785_v25, %s4471_s11  ;;  %1013 = vrot.lane.b32.xlu0 %v4764_v16, %s4471_s11 }
 0x1c5   : > { %v835_v34 = vpop.permute.xlu1 %834  ;;  %v865_v38 = vpop.permute.xlu0 %864 }
 0x1c6   : > { %3886 = vst.msk [vmem:[%s4659_s12 + $0x104] sm:$0xf] %vm670_vm1, %v835_v34  ;;  %3901 = vst.msk [vmem:[%s4659_s12 + $0x140] sm:$0xf] %vm670_vm1, %v865_v38 }
 0x1c7   : > { %1112 = vrot.lane.b32.xlu1 %v4780_v24, %s4472_s14  ;;  %1110 = vrot.lane.b32.xlu0 %v4761_v13, %s4472_s14 }
 0x1c9   : > { %v867_v44 = vpop.permute.xlu1 %866  ;;  %v962_v45 = vpop.permute.xlu0 %961 }
 0x1ca   : > { %3902 = vst.msk [vmem:[%s4659_s12 + $0x144] sm:$0xf] %vm670_vm1, %v867_v44  ;;  %3917 = vst.msk [vmem:[%s4659_s12 + $0x180] sm:$0xf] %vm670_vm1, %v962_v45 }
 0x1cb   : > { %1144 = vrot.lane.b32.xlu1 %v4785_v25, %s4472_s14  ;;  %1142 = vrot.lane.b32.xlu0 %v4764_v16, %s4472_s14 }
 0x1cd   : > { %v964_v47 = vpop.permute.xlu1 %963  ;;  %v994_v48 = vpop.permute.xlu0 %993 }
 0x1ce   : > { %3918 = vst.msk [vmem:[%s4659_s12 + $0x184] sm:$0xf] %vm670_vm1, %v964_v47  ;;  %3933 = vst.msk [vmem:[%s4659_s12 + $0x1c0] sm:$0xf] %vm670_vm1, %v994_v48 }
 0x1cf   : > { %721 = vrot.lane.b32.xlu1 %v4790_v26, %s4469_s9  ;;  %719 = vrot.lane.b32.xlu0 %v4767_v20, %s4469_s9 }
 0x1d1   : > { %v996_v49 = vpop.permute.xlu1 %995  ;;  %v1091_v50 = vpop.permute.xlu0 %1090 }
 0x1d2   : > { %3934 = vst.msk [vmem:[%s4659_s12 + $0x1c4] sm:$0xf] %vm670_vm1, %v996_v49  ;;  %3949 = vst.msk [vmem:[%s4659_s12 + $0x200] sm:$0xf] %vm670_vm1, %v1091_v50 }
 0x1d3   : > { %753 = vrot.lane.b32.xlu1 %v4795_v27, %s4469_s9  ;;  %751 = vrot.lane.b32.xlu0 %v4770_v22, %s4469_s9 }
 0x1d5   : > { %v1093_v51 = vpop.permute.xlu1 %1092  ;;  %v1123_v55 = vpop.permute.xlu0 %1122 }
 0x1d6   : > { %3950 = vst.msk [vmem:[%s4659_s12 + $0x204] sm:$0xf] %vm670_vm1, %v1093_v51  ;;  %3965 = vst.msk [vmem:[%s4659_s12 + $0x240] sm:$0xf] %vm670_vm1, %v1123_v55 }
 0x1d7   : > { %850 = vrot.lane.b32.xlu1 %v4790_v26, %s4470_s10  ;;  %848 = vrot.lane.b32.xlu0 %v4767_v20, %s4470_s10 }
 0x1d9   : > { %v1125_v58 = vpop.permute.xlu1 %1124  ;;  %v1220_v62 = vpop.permute.xlu0 %1219 }
 0x1da   : > { %3966 = vst.msk [vmem:[%s4659_s12 + $0x244] sm:$0xf] %vm670_vm1, %v1125_v58  ;;  %3981 = vst.msk [vmem:[%s4659_s12 + $0x280] sm:$0xf] %vm670_vm1, %v1220_v62 }
 0x1db   : > { %882 = vrot.lane.b32.xlu1 %v4795_v27, %s4470_s10  ;;  %880 = vrot.lane.b32.xlu0 %v4770_v22, %s4470_s10 }
 0x1dd   : > { %v1222_v18 = vpop.permute.xlu1 %1221  ;;  %v706_v4 = vpop.permute.xlu0 %705 }
 0x1de   : > { %3982 = vst.msk [vmem:[%s4659_s12 + $0x284] sm:$0xf] %vm670_vm1, %v1222_v18  ;;  %3854 = vst.msk [vmem:[%s4659_s12 + $0x84] sm:$0xf] %vm670_vm1, %v706_v4 }
 0x1df   : > { %979 = vrot.lane.b32.xlu1 %v4790_v26, %s4471_s11  ;;  %977 = vrot.lane.b32.xlu0 %v4767_v20, %s4471_s11 }
 0x1e1   : > { %v718_v5 = vpop.permute.xlu1 %717  ;;  %v716_v6 = vpop.permute.xlu0 %715 }
 0x1e2   : > { %3860 = vst.msk [vmem:[%s4659_s12 + $0x9c] sm:$0xf] %vm670_vm1, %v718_v5  ;;  %3859 = vst.msk [vmem:[%s4659_s12 + $0x98] sm:$0xf] %vm670_vm1, %v716_v6 }
 0x1e3   : > { %1011 = vrot.lane.b32.xlu1 %v4795_v27, %s4471_s11  ;;  %1009 = vrot.lane.b32.xlu0 %v4770_v22, %s4471_s11 }
 0x1e5   : > { %v750_v7 = vpop.permute.xlu1 %749  ;;  %v748_v8 = vpop.permute.xlu0 %747 }
 0x1e6   : > { %3876 = vst.msk [vmem:[%s4659_s12 + $0xdc] sm:$0xf] %vm670_vm1, %v750_v7  ;;  %3875 = vst.msk [vmem:[%s4659_s12 + $0xd8] sm:$0xf] %vm670_vm1, %v748_v8 }
 0x1e7   : > { %1108 = vrot.lane.b32.xlu1 %v4790_v26, %s4472_s14  ;;  %1106 = vrot.lane.b32.xlu0 %v4767_v20, %s4472_s14 }
 0x1e9   : > { %v847_v9 = vpop.permute.xlu1 %846  ;;  %v845_v10 = vpop.permute.xlu0 %844 }
 0x1ea   : > { %3892 = vst.msk [vmem:[%s4659_s12 + $0x11c] sm:$0xf] %vm670_vm1, %v847_v9  ;;  %3891 = vst.msk [vmem:[%s4659_s12 + $0x118] sm:$0xf] %vm670_vm1, %v845_v10 }
 0x1eb   : > { %1140 = vrot.lane.b32.xlu1 %v4795_v27, %s4472_s14  ;;  %1138 = vrot.lane.b32.xlu0 %v4770_v22, %s4472_s14 }
 0x1ed   : > { %v879_v11 = vpop.permute.xlu1 %878  ;;  %v877_v12 = vpop.permute.xlu0 %876 }
 0x1ee   : > { %3908 = vst.msk [vmem:[%s4659_s12 + $0x15c] sm:$0xf] %vm670_vm1, %v879_v11  ;;  %3907 = vst.msk [vmem:[%s4659_s12 + $0x158] sm:$0xf] %vm670_vm1, %v877_v12 }
 0x1ef   : > { %1225 = vrot.lane.b32.xlu1 %v4667_v39, %s4473_s17  ;;  %731 = vrot.lane.b32.xlu0 %v4855_v37, %s4469_s9 }
 0x1f1   : > { %v976_v14 = vpop.permute.xlu1 %975  ;;  %v974_v15 = vpop.permute.xlu0 %973 }
 0x1f2   : > { %3924 = vst.msk [vmem:[%s4659_s12 + $0x19c] sm:$0xf] %vm670_vm1, %v976_v14  ;;  %3923 = vst.msk [vmem:[%s4659_s12 + $0x198] sm:$0xf] %vm670_vm1, %v974_v15 }
 0x1f3   : > { %733 = vrot.lane.b32.xlu1 %v4867_v46, %s4469_s9  ;;  %763 = vrot.lane.b32.xlu0 %v4880_v54, %s4469_s9 }
 0x1f5   : > { %v1008_v17 = vpop.permute.xlu1 %1007  ;;  %v1006_v19 = vpop.permute.xlu0 %1005 }
 0x1f6   : > { %3940 = vst.msk [vmem:[%s4659_s12 + $0x1dc] sm:$0xf] %vm670_vm1, %v1008_v17  ;;  %3939 = vst.msk [vmem:[%s4659_s12 + $0x1d8] sm:$0xf] %vm670_vm1, %v1006_v19 }
 0x1f7   : > { %765 = vrot.lane.b32.xlu1 %v4895_v60, %s4469_s9  ;;  %860 = vrot.lane.b32.xlu0 %v4855_v37, %s4470_s10 }
 0x1f9   : > { %v1105_v21 = vpop.permute.xlu1 %1104  ;;  %v1103_v23 = vpop.permute.xlu0 %1102 }
 0x1fa   : > { %3956 = vst.msk [vmem:[%s4659_s12 + $0x21c] sm:$0xf] %vm670_vm1, %v1105_v21  ;;  %3955 = vst.msk [vmem:[%s4659_s12 + $0x218] sm:$0xf] %vm670_vm1, %v1103_v23 }
 0x1fb   : > { %862 = vrot.lane.b32.xlu1 %v4867_v46, %s4470_s10  ;;  %892 = vrot.lane.b32.xlu0 %v4880_v54, %s4470_s10 }
 0x1fd   : > { %v1137_v28 = vpop.permute.xlu1 %1136  ;;  %v1135_v31 = vpop.permute.xlu0 %1134 }
 0x1fe   : > { %3972 = vst.msk [vmem:[%s4659_s12 + $0x25c] sm:$0xf] %vm670_vm1, %v1137_v28  ;;  %3971 = vst.msk [vmem:[%s4659_s12 + $0x258] sm:$0xf] %vm670_vm1, %v1135_v31 }
 0x1ff   : > { %894 = vrot.lane.b32.xlu1 %v4895_v60, %s4470_s10  ;;  %989 = vrot.lane.b32.xlu0 %v4855_v37, %s4471_s11 }
 0x201   : > { %v714_v32 = vpop.permute.xlu1 %713  ;;  %v712_v33 = vpop.permute.xlu0 %711 }
 0x202   : > { %3858 = vst.msk [vmem:[%s4659_s12 + $0x94] sm:$0xf] %vm670_vm1, %v714_v32  ;;  %3857 = vst.msk [vmem:[%s4659_s12 + $0x90] sm:$0xf] %vm670_vm1, %v712_v33 }
 0x203   : > { %991 = vrot.lane.b32.xlu1 %v4867_v46, %s4471_s11  ;;  %1021 = vrot.lane.b32.xlu0 %v4880_v54, %s4471_s11 }
 0x205   : > { %v746_v34 = vpop.permute.xlu1 %745  ;;  %v744_v38 = vpop.permute.xlu0 %743 }
 0x206   : > { %3874 = vst.msk [vmem:[%s4659_s12 + $0xd4] sm:$0xf] %vm670_vm1, %v746_v34  ;;  %3873 = vst.msk [vmem:[%s4659_s12 + $0xd0] sm:$0xf] %vm670_vm1, %v744_v38 }
 0x207   : > { %1023 = vrot.lane.b32.xlu1 %v4895_v60, %s4471_s11  ;;  %1118 = vrot.lane.b32.xlu0 %v4855_v37, %s4472_s14 }
 0x209   : > { %v843_v44 = vpop.permute.xlu1 %842  ;;  %v841_v45 = vpop.permute.xlu0 %840 }
 0x20a   : > { %3890 = vst.msk [vmem:[%s4659_s12 + $0x114] sm:$0xf] %vm670_vm1, %v843_v44  ;;  %3889 = vst.msk [vmem:[%s4659_s12 + $0x110] sm:$0xf] %vm670_vm1, %v841_v45 }
 0x20b   : > { %1120 = vrot.lane.b32.xlu1 %v4867_v46, %s4472_s14  ;;  %1150 = vrot.lane.b32.xlu0 %v4880_v54, %s4472_s14 }
 0x20d   : > { %v875_v47 = vpop.permute.xlu1 %874  ;;  %v873_v48 = vpop.permute.xlu0 %872 }
 0x20e   : > { %3906 = vst.msk [vmem:[%s4659_s12 + $0x154] sm:$0xf] %vm670_vm1, %v875_v47  ;;  %3905 = vst.msk [vmem:[%s4659_s12 + $0x150] sm:$0xf] %vm670_vm1, %v873_v48 }
 0x20f   : > { %1152 = vrot.lane.b32.xlu1 %v4895_v60, %s4472_s14  ;;  %727 = vrot.lane.b32.xlu0 %v4858_v43, %s4469_s9 }
 0x211   : > { %v972_v49 = vpop.permute.xlu1 %971  ;;  %v970_v50 = vpop.permute.xlu0 %969 }
 0x212   : > { %3922 = vst.msk [vmem:[%s4659_s12 + $0x194] sm:$0xf] %vm670_vm1, %v972_v49  ;;  %3921 = vst.msk [vmem:[%s4659_s12 + $0x190] sm:$0xf] %vm670_vm1, %v970_v50 }
 0x213   : > { %729 = vrot.lane.b32.xlu1 %v4878_v52, %s4469_s9  ;;  %759 = vrot.lane.b32.xlu0 %v4883_v57, %s4469_s9 }
 0x215   : > { %v1004_v51 = vpop.permute.xlu1 %1003  ;;  %v1002_v55 = vpop.permute.xlu0 %1001 }
 0x216   : > { %3938 = vst.msk [vmem:[%s4659_s12 + $0x1d4] sm:$0xf] %vm670_vm1, %v1004_v51  ;;  %3937 = vst.msk [vmem:[%s4659_s12 + $0x1d0] sm:$0xf] %vm670_vm1, %v1002_v55 }
 0x217   : > { %761 = vrot.lane.b32.xlu1 %v4904_v3, %s4469_s9  ;;  %856 = vrot.lane.b32.xlu0 %v4858_v43, %s4470_s10 }
 0x219   : > { %v1101_v58 = vpop.permute.xlu1 %1100  ;;  %v1099_v62 = vpop.permute.xlu0 %1098 }
 0x21a   : > { %3954 = vst.msk [vmem:[%s4659_s12 + $0x214] sm:$0xf] %vm670_vm1, %v1101_v58  ;;  %3953 = vst.msk [vmem:[%s4659_s12 + $0x210] sm:$0xf] %vm670_vm1, %v1099_v62 }
 0x21b   : > { %858 = vrot.lane.b32.xlu1 %v4878_v52, %s4470_s10  ;;  %888 = vrot.lane.b32.xlu0 %v4883_v57, %s4470_s10 }
 0x21d   : > { %v1133_v18 = vpop.permute.xlu1 %1132  ;;  %v1131_v4 = vpop.permute.xlu0 %1130 }
 0x21e   : > { %3970 = vst.msk [vmem:[%s4659_s12 + $0x254] sm:$0xf] %vm670_vm1, %v1133_v18  ;;  %3969 = vst.msk [vmem:[%s4659_s12 + $0x250] sm:$0xf] %vm670_vm1, %v1131_v4 }
 0x21f   : > { %890 = vrot.lane.b32.xlu1 %v4904_v3, %s4470_s10  ;;  %985 = vrot.lane.b32.xlu0 %v4858_v43, %s4471_s11 }
 0x221   : > { %v726_v5 = vpop.permute.xlu1 %725  ;;  %v724_v6 = vpop.permute.xlu0 %723 }
 0x222   : > { %3864 = vst.msk [vmem:[%s4659_s12 + $0xac] sm:$0xf] %vm670_vm1, %v726_v5  ;;  %3863 = vst.msk [vmem:[%s4659_s12 + $0xa8] sm:$0xf] %vm670_vm1, %v724_v6 }
 0x223   : > { %987 = vrot.lane.b32.xlu1 %v4878_v52, %s4471_s11  ;;  %1017 = vrot.lane.b32.xlu0 %v4883_v57, %s4471_s11 }
 0x225   : > { %v758_v7 = vpop.permute.xlu1 %757  ;;  %v756_v8 = vpop.permute.xlu0 %755 }
 0x226   : > { %3880 = vst.msk [vmem:[%s4659_s12 + $0xec] sm:$0xf] %vm670_vm1, %v758_v7  ;;  %3879 = vst.msk [vmem:[%s4659_s12 + $0xe8] sm:$0xf] %vm670_vm1, %v756_v8 }
 0x227   : > { %1019 = vrot.lane.b32.xlu1 %v4904_v3, %s4471_s11  ;;  %1114 = vrot.lane.b32.xlu0 %v4858_v43, %s4472_s14 }
 0x229   : > { %v855_v9 = vpop.permute.xlu1 %854  ;;  %v853_v10 = vpop.permute.xlu0 %852 }
 0x22a   : > { %3896 = vst.msk [vmem:[%s4659_s12 + $0x12c] sm:$0xf] %vm670_vm1, %v855_v9  ;;  %3895 = vst.msk [vmem:[%s4659_s12 + $0x128] sm:$0xf] %vm670_vm1, %v853_v10 }
 0x22b   : > { %1116 = vrot.lane.b32.xlu1 %v4878_v52, %s4472_s14  ;;  %1146 = vrot.lane.b32.xlu0 %v4883_v57, %s4472_s14 }
 0x22d   : > { %v887_v11 = vpop.permute.xlu1 %886  ;;  %v885_v12 = vpop.permute.xlu0 %884 }
 0x22e   : > { %3912 = vst.msk [vmem:[%s4659_s12 + $0x16c] sm:$0xf] %vm670_vm1, %v887_v11  ;;  %3911 = vst.msk [vmem:[%s4659_s12 + $0x168] sm:$0xf] %vm670_vm1, %v885_v12 }
 0x22f   : > { %1148 = vrot.lane.b32.xlu1 %v4904_v3, %s4472_s14  ;;  %1223 = vrot.lane.b32.xlu0 %v4647_v29, %s4473_s17 }
 0x231   : > { %v984_v14 = vpop.permute.xlu1 %983  ;;  %v982_v15 = vpop.permute.xlu0 %981 }
 0x232   : > { %3928 = vst.msk [vmem:[%s4659_s12 + $0x1ac] sm:$0xf] %vm670_vm1, %v984_v14  ;;  %3927 = vst.msk [vmem:[%s4659_s12 + $0x1a8] sm:$0xf] %vm670_vm1, %v982_v15 }
 0x233   : > { %1229 = vrot.lane.b32.xlu1 %v4734_v1, %s4473_s17  ;;  %1227 = vrot.lane.b32.xlu0 %v4711_v59, %s4473_s17 }
 0x235   : > { %v1016_v17 = vpop.permute.xlu1 %1015  ;;  %v1014_v19 = vpop.permute.xlu0 %1013 }
 0x236   : > { %3944 = vst.msk [vmem:[%s4659_s12 + $0x1ec] sm:$0xf] %vm670_vm1, %v1016_v17  ;;  %3943 = vst.msk [vmem:[%s4659_s12 + $0x1e8] sm:$0xf] %vm670_vm1, %v1014_v19 }
 0x237   : > { %1233 = vrot.lane.b32.xlu1 %v4724_v63, %s4473_s17  ;;  %1231 = vrot.lane.b32.xlu0 %v4705_v53, %s4473_s17 }
 0x239   : > { %v1113_v21 = vpop.permute.xlu1 %1112  ;;  %v1111_v23 = vpop.permute.xlu0 %1110 }
 0x23a   : > { %3960 = vst.msk [vmem:[%s4659_s12 + $0x22c] sm:$0xf] %vm670_vm1, %v1113_v21  ;;  %3959 = vst.msk [vmem:[%s4659_s12 + $0x228] sm:$0xf] %vm670_vm1, %v1111_v23 }
 0x23b   : > { %1237 = vrot.lane.b32.xlu1 %v4790_v26, %s4473_s17  ;;  %1235 = vrot.lane.b32.xlu0 %v4767_v20, %s4473_s17 }
 0x23d   : > { %v1145_v28 = vpop.permute.xlu1 %1144  ;;  %v1143_v31 = vpop.permute.xlu0 %1142 }
 0x23e   : > { %3976 = vst.msk [vmem:[%s4659_s12 + $0x26c] sm:$0xf] %vm670_vm1, %v1145_v28  ;;  %3975 = vst.msk [vmem:[%s4659_s12 + $0x268] sm:$0xf] %vm670_vm1, %v1143_v31 }
 0x23f   : > { %1241 = vrot.lane.b32.xlu1 %v4780_v24, %s4473_s17  ;;  %1239 = vrot.lane.b32.xlu0 %v4761_v13, %s4473_s17 }
 0x241   : > { %v722_v32 = vpop.permute.xlu1 %721  ;;  %v720_v33 = vpop.permute.xlu0 %719 }
 0x242   : > { %3862 = vst.msk [vmem:[%s4659_s12 + $0xa4] sm:$0xf] %vm670_vm1, %v722_v32  ;;  %3861 = vst.msk [vmem:[%s4659_s12 + $0xa0] sm:$0xf] %vm670_vm1, %v720_v33 }
 0x243   : > { %1245 = vrot.lane.b32.xlu1 %v4878_v52, %s4473_s17  ;;  %1243 = vrot.lane.b32.xlu0 %v4858_v43, %s4473_s17 }
 0x245   : > { %v754_v34 = vpop.permute.xlu1 %753  ;;  %v752_v38 = vpop.permute.xlu0 %751 }
 0x246   : > { %3878 = vst.msk [vmem:[%s4659_s12 + $0xe4] sm:$0xf] %vm670_vm1, %v754_v34  ;;  %3877 = vst.msk [vmem:[%s4659_s12 + $0xe0] sm:$0xf] %vm670_vm1, %v752_v38 }
 0x247   : > { %1249 = vrot.lane.b32.xlu1 %v4867_v46, %s4473_s17  ;;  %1247 = vrot.lane.b32.xlu0 %v4855_v37, %s4473_s17 }
 0x249   : > { %v851_v44 = vpop.permute.xlu1 %850  ;;  %v849_v45 = vpop.permute.xlu0 %848 }
 0x24a   : > { %3894 = vst.msk [vmem:[%s4659_s12 + $0x124] sm:$0xf] %vm670_vm1, %v851_v44  ;;  %3893 = vst.msk [vmem:[%s4659_s12 + $0x120] sm:$0xf] %vm670_vm1, %v849_v45 }
 0x24b   : > { %1253 = vrot.lane.b32.xlu1 %v4683_v42, %s4473_s17  ;;  %1251 = vrot.lane.b32.xlu0 %v4655_v36, %s4473_s17 }
 0x24d   : > { %v883_v47 = vpop.permute.xlu1 %882  ;;  %v881_v48 = vpop.permute.xlu0 %880 }
 0x24e   : > { %3910 = vst.msk [vmem:[%s4659_s12 + $0x164] sm:$0xf] %vm670_vm1, %v883_v47  ;;  %3909 = vst.msk [vmem:[%s4659_s12 + $0x160] sm:$0xf] %vm670_vm1, %v881_v48 }
 0x24f   : > { %1257 = vrot.lane.b32.xlu1 %v4669_v40, %s4473_s17  ;;  %1255 = vrot.lane.b32.xlu0 %v4649_v30, %s4473_s17 }
 0x251   : > { %v980_v49 = vpop.permute.xlu1 %979  ;;  %v978_v50 = vpop.permute.xlu0 %977 }
 0x252   : > { %3926 = vst.msk [vmem:[%s4659_s12 + $0x1a4] sm:$0xf] %vm670_vm1, %v980_v49  ;;  %3925 = vst.msk [vmem:[%s4659_s12 + $0x1a0] sm:$0xf] %vm670_vm1, %v978_v50 }
 0x253   : > { %1261 = vrot.lane.b32.xlu1 %v4739_v2, %s4473_s17  ;;  %1259 = vrot.lane.b32.xlu0 %v4714_v61, %s4473_s17 }
 0x255   : > { %v1012_v51 = vpop.permute.xlu1 %1011  ;;  %v1010_v55 = vpop.permute.xlu0 %1009 }
 0x256   : > { %3942 = vst.msk [vmem:[%s4659_s12 + $0x1e4] sm:$0xf] %vm670_vm1, %v1012_v51  ;;  %3941 = vst.msk [vmem:[%s4659_s12 + $0x1e0] sm:$0xf] %vm670_vm1, %v1010_v55 }
 0x257   : > { %1265 = vrot.lane.b32.xlu1 %v4729_v0, %s4473_s17  ;;  %1263 = vrot.lane.b32.xlu0 %v4708_v56, %s4473_s17 }
 0x259   : > { %v1109_v58 = vpop.permute.xlu1 %1108  ;;  %v1107_v62 = vpop.permute.xlu0 %1106 }
 0x25a   : > { %3958 = vst.msk [vmem:[%s4659_s12 + $0x224] sm:$0xf] %vm670_vm1, %v1109_v58  ;;  %3957 = vst.msk [vmem:[%s4659_s12 + $0x220] sm:$0xf] %vm670_vm1, %v1107_v62 }
 0x25b   : > { %1269 = vrot.lane.b32.xlu1 %v4795_v27, %s4473_s17  ;;  %1267 = vrot.lane.b32.xlu0 %v4770_v22, %s4473_s17 }
 0x25d   : > { %v1141_v18 = vpop.permute.xlu1 %1140  ;;  %v1139_v4 = vpop.permute.xlu0 %1138 }
 0x25e   : > { %3974 = vst.msk [vmem:[%s4659_s12 + $0x264] sm:$0xf] %vm670_vm1, %v1141_v18  ;;  %3973 = vst.msk [vmem:[%s4659_s12 + $0x260] sm:$0xf] %vm670_vm1, %v1139_v4 }
 0x25f   : > { %1273 = vrot.lane.b32.xlu1 %v4785_v25, %s4473_s17  ;;  %1271 = vrot.lane.b32.xlu0 %v4764_v16, %s4473_s17 }
 0x261   : > { %v1226_v5 = vpop.permute.xlu1 %1225  ;;  %v732_v6 = vpop.permute.xlu0 %731 }
 0x262   : > { %3984 = vst.msk [vmem:[%s4659_s12 + $0x28c] sm:$0xf] %vm670_vm1, %v1226_v5  ;;  %3867 = vst.msk [vmem:[%s4659_s12 + $0xb8] sm:$0xf] %vm670_vm1, %v732_v6 }
 0x263   : > { %1277 = vrot.lane.b32.xlu1 %v4904_v3, %s4473_s17  ;;  %1275 = vrot.lane.b32.xlu0 %v4883_v57, %s4473_s17 }
 0x265   : > { %v734_v7 = vpop.permute.xlu1 %733  ;;  %v764_v8 = vpop.permute.xlu0 %763 }
 0x266   : > { %3868 = vst.msk [vmem:[%s4659_s12 + $0xbc] sm:$0xf] %vm670_vm1, %v734_v7  ;;  %3883 = vst.msk [vmem:[%s4659_s12 + $0xf8] sm:$0xf] %vm670_vm1, %v764_v8 }
 0x267   : > { %1281 = vrot.lane.b32.xlu1 %v4895_v60, %s4473_s17  ;;  %1279 = vrot.lane.b32.xlu0 %v4880_v54, %s4473_s17 }
 0x269   : > { %v766_v9 = vpop.permute.xlu1 %765  ;;  %v861_v10 = vpop.permute.xlu0 %860 }
 0x26a   : > { %3884 = vst.msk [vmem:[%s4659_s12 + $0xfc] sm:$0xf] %vm670_vm1, %v766_v9  ;;  %3899 = vst.msk [vmem:[%s4659_s12 + $0x138] sm:$0xf] %vm670_vm1, %v861_v10 }
 0x26b   : > { %1350 = vrot.lane.b32.xlu1 %v4681_v41, %s4474_s18  ;;  %1348 = vrot.lane.b32.xlu0 %v4653_v35, %s4474_s18 }
 0x26d   : > { %v863_v11 = vpop.permute.xlu1 %862  ;;  %v893_v12 = vpop.permute.xlu0 %892 }
 0x26e   : > { %3900 = vst.msk [vmem:[%s4659_s12 + $0x13c] sm:$0xf] %vm670_vm1, %v863_v11  ;;  %3915 = vst.msk [vmem:[%s4659_s12 + $0x178] sm:$0xf] %vm670_vm1, %v893_v12 }
 0x26f   : > { %1354 = vrot.lane.b32.xlu1 %v4667_v39, %s4474_s18  ;;  %1352 = vrot.lane.b32.xlu0 %v4647_v29, %s4474_s18 }
 0x271   : > { %v895_v14 = vpop.permute.xlu1 %894  ;;  %v990_v15 = vpop.permute.xlu0 %989 }
 0x272   : > { %3916 = vst.msk [vmem:[%s4659_s12 + $0x17c] sm:$0xf] %vm670_vm1, %v895_v14  ;;  %3931 = vst.msk [vmem:[%s4659_s12 + $0x1b8] sm:$0xf] %vm670_vm1, %v990_v15 }
 0x273   : > { %1358 = vrot.lane.b32.xlu1 %v4734_v1, %s4474_s18  ;;  %1356 = vrot.lane.b32.xlu0 %v4711_v59, %s4474_s18 }
 0x275   : > { %v992_v17 = vpop.permute.xlu1 %991  ;;  %v1022_v19 = vpop.permute.xlu0 %1021 }
 0x276   : > { %3932 = vst.msk [vmem:[%s4659_s12 + $0x1bc] sm:$0xf] %vm670_vm1, %v992_v17  ;;  %3947 = vst.msk [vmem:[%s4659_s12 + $0x1f8] sm:$0xf] %vm670_vm1, %v1022_v19 }
 0x277   : > { %1362 = vrot.lane.b32.xlu1 %v4724_v63, %s4474_s18  ;;  %1360 = vrot.lane.b32.xlu0 %v4705_v53, %s4474_s18 }
 0x279   : > { %v1024_v21 = vpop.permute.xlu1 %1023  ;;  %v1119_v23 = vpop.permute.xlu0 %1118 }
 0x27a   : > { %3948 = vst.msk [vmem:[%s4659_s12 + $0x1fc] sm:$0xf] %vm670_vm1, %v1024_v21  ;;  %3963 = vst.msk [vmem:[%s4659_s12 + $0x238] sm:$0xf] %vm670_vm1, %v1119_v23 }
 0x27b   : > { %1366 = vrot.lane.b32.xlu1 %v4790_v26, %s4474_s18  ;;  %1364 = vrot.lane.b32.xlu0 %v4767_v20, %s4474_s18 }
 0x27d   : > { %v1121_v28 = vpop.permute.xlu1 %1120  ;;  %v1151_v31 = vpop.permute.xlu0 %1150 }
 0x27e   : > { %3964 = vst.msk [vmem:[%s4659_s12 + $0x23c] sm:$0xf] %vm670_vm1, %v1121_v28  ;;  %3979 = vst.msk [vmem:[%s4659_s12 + $0x278] sm:$0xf] %vm670_vm1, %v1151_v31 }
 0x27f   : > { %1370 = vrot.lane.b32.xlu1 %v4780_v24, %s4474_s18  ;;  %1368 = vrot.lane.b32.xlu0 %v4761_v13, %s4474_s18 }
 0x281   : > { %v1153_v32 = vpop.permute.xlu1 %1152  ;;  %v728_v33 = vpop.permute.xlu0 %727 }
 0x282   : > { %3980 = vst.msk [vmem:[%s4659_s12 + $0x27c] sm:$0xf] %vm670_vm1, %v1153_v32  ;;  %3865 = vst.msk [vmem:[%s4659_s12 + $0xb0] sm:$0xf] %vm670_vm1, %v728_v33 }
 0x283   : > { %1374 = vrot.lane.b32.xlu1 %v4878_v52, %s4474_s18  ;;  %1372 = vrot.lane.b32.xlu0 %v4858_v43, %s4474_s18 }
 0x285   : > { %v730_v34 = vpop.permute.xlu1 %729  ;;  %v760_v38 = vpop.permute.xlu0 %759 }
 0x286   : > { %3866 = vst.msk [vmem:[%s4659_s12 + $0xb4] sm:$0xf] %vm670_vm1, %v730_v34  ;;  %3881 = vst.msk [vmem:[%s4659_s12 + $0xf0] sm:$0xf] %vm670_vm1, %v760_v38 }
 0x287   : > { %1378 = vrot.lane.b32.xlu1 %v4867_v46, %s4474_s18  ;;  %1376 = vrot.lane.b32.xlu0 %v4855_v37, %s4474_s18 }
 0x289   : > { %v762_v44 = vpop.permute.xlu1 %761  ;;  %v857_v45 = vpop.permute.xlu0 %856 }
 0x28a   : > { %3882 = vst.msk [vmem:[%s4659_s12 + $0xf4] sm:$0xf] %vm670_vm1, %v762_v44  ;;  %3897 = vst.msk [vmem:[%s4659_s12 + $0x130] sm:$0xf] %vm670_vm1, %v857_v45 }
 0x28b   : > { %1382 = vrot.lane.b32.xlu1 %v4683_v42, %s4474_s18  ;;  %1380 = vrot.lane.b32.xlu0 %v4655_v36, %s4474_s18 }
 0x28d   : > { %v859_v47 = vpop.permute.xlu1 %858  ;;  %v889_v48 = vpop.permute.xlu0 %888 }
 0x28e   : > { %3898 = vst.msk [vmem:[%s4659_s12 + $0x134] sm:$0xf] %vm670_vm1, %v859_v47  ;;  %3913 = vst.msk [vmem:[%s4659_s12 + $0x170] sm:$0xf] %vm670_vm1, %v889_v48 }
 0x28f   : > { %1386 = vrot.lane.b32.xlu1 %v4669_v40, %s4474_s18  ;;  %1384 = vrot.lane.b32.xlu0 %v4649_v30, %s4474_s18 }
 0x291   : > { %v891_v49 = vpop.permute.xlu1 %890  ;;  %v986_v50 = vpop.permute.xlu0 %985 }
 0x292   : > { %3914 = vst.msk [vmem:[%s4659_s12 + $0x174] sm:$0xf] %vm670_vm1, %v891_v49  ;;  %3929 = vst.msk [vmem:[%s4659_s12 + $0x1b0] sm:$0xf] %vm670_vm1, %v986_v50 }
 0x293   : > { %1390 = vrot.lane.b32.xlu1 %v4739_v2, %s4474_s18  ;;  %1388 = vrot.lane.b32.xlu0 %v4714_v61, %s4474_s18 }
 0x295   : > { %v988_v51 = vpop.permute.xlu1 %987  ;;  %v1018_v55 = vpop.permute.xlu0 %1017 }
 0x296   : > { %3930 = vst.msk [vmem:[%s4659_s12 + $0x1b4] sm:$0xf] %vm670_vm1, %v988_v51  ;;  %3945 = vst.msk [vmem:[%s4659_s12 + $0x1f0] sm:$0xf] %vm670_vm1, %v1018_v55 }
 0x297   : > { %1394 = vrot.lane.b32.xlu1 %v4729_v0, %s4474_s18  ;;  %1392 = vrot.lane.b32.xlu0 %v4708_v56, %s4474_s18 }
 0x299   : > { %v1020_v58 = vpop.permute.xlu1 %1019  ;;  %v1115_v62 = vpop.permute.xlu0 %1114 }
 0x29a   : > { %3946 = vst.msk [vmem:[%s4659_s12 + $0x1f4] sm:$0xf] %vm670_vm1, %v1020_v58  ;;  %3961 = vst.msk [vmem:[%s4659_s12 + $0x230] sm:$0xf] %vm670_vm1, %v1115_v62 }
 0x29b   : > { %1398 = vrot.lane.b32.xlu1 %v4795_v27, %s4474_s18  ;;  %1396 = vrot.lane.b32.xlu0 %v4770_v22, %s4474_s18 }
 0x29d   : > { %v1117_v18 = vpop.permute.xlu1 %1116  ;;  %v1147_v4 = vpop.permute.xlu0 %1146 }
 0x29e   : > { %3962 = vst.msk [vmem:[%s4659_s12 + $0x234] sm:$0xf] %vm670_vm1, %v1117_v18  ;;  %3977 = vst.msk [vmem:[%s4659_s12 + $0x270] sm:$0xf] %vm670_vm1, %v1147_v4 }
 0x29f   : > { %1402 = vrot.lane.b32.xlu1 %v4785_v25, %s4474_s18  ;;  %1400 = vrot.lane.b32.xlu0 %v4764_v16, %s4474_s18 }
 0x2a1   : > { %v1149_v5 = vpop.permute.xlu1 %1148  ;;  %v1224_v6 = vpop.permute.xlu0 %1223 }
 0x2a2   : > { %3978 = vst.msk [vmem:[%s4659_s12 + $0x274] sm:$0xf] %vm670_vm1, %v1149_v5  ;;  %3983 = vst.msk [vmem:[%s4659_s12 + $0x288] sm:$0xf] %vm670_vm1, %v1224_v6 }
 0x2a3   : > { %1406 = vrot.lane.b32.xlu1 %v4904_v3, %s4474_s18  ;;  %1404 = vrot.lane.b32.xlu0 %v4883_v57, %s4474_s18 }
 0x2a5   : > { %v1230_v7 = vpop.permute.xlu1 %1229  ;;  %v1228_v8 = vpop.permute.xlu0 %1227 }
 0x2a6   : > { %3986 = vst.msk [vmem:[%s4659_s12 + $0x294] sm:$0xf] %vm670_vm1, %v1230_v7  ;;  %3985 = vst.msk [vmem:[%s4659_s12 + $0x290] sm:$0xf] %vm670_vm1, %v1228_v8 }
 0x2a7   : > { %1410 = vrot.lane.b32.xlu1 %v4895_v60, %s4474_s18  ;;  %1408 = vrot.lane.b32.xlu0 %v4880_v54, %s4474_s18 }
 0x2a9   : > { %v1234_v9 = vpop.permute.xlu1 %1233  ;;  %v1232_v10 = vpop.permute.xlu0 %1231 }
 0x2aa   : > { %3988 = vst.msk [vmem:[%s4659_s12 + $0x29c] sm:$0xf] %vm670_vm1, %v1234_v9  ;;  %3987 = vst.msk [vmem:[%s4659_s12 + $0x298] sm:$0xf] %vm670_vm1, %v1232_v10 }
 0x2ab   : > { %1479 = vrot.lane.b32.xlu1 %v4681_v41, %s4475_s22  ;;  %1477 = vrot.lane.b32.xlu0 %v4653_v35, %s4475_s22 }
 0x2ad   : > { %v1238_v11 = vpop.permute.xlu1 %1237  ;;  %v1236_v12 = vpop.permute.xlu0 %1235 }
 0x2ae   : > { %3990 = vst.msk [vmem:[%s4659_s12 + $0x2a4] sm:$0xf] %vm670_vm1, %v1238_v11  ;;  %3989 = vst.msk [vmem:[%s4659_s12 + $0x2a0] sm:$0xf] %vm670_vm1, %v1236_v12 }
 0x2af   : > { %1483 = vrot.lane.b32.xlu1 %v4667_v39, %s4475_s22  ;;  %1481 = vrot.lane.b32.xlu0 %v4647_v29, %s4475_s22 }
 0x2b1   : > { %v1242_v14 = vpop.permute.xlu1 %1241  ;;  %v1240_v15 = vpop.permute.xlu0 %1239 }
 0x2b2   : > { %3992 = vst.msk [vmem:[%s4659_s12 + $0x2ac] sm:$0xf] %vm670_vm1, %v1242_v14  ;;  %3991 = vst.msk [vmem:[%s4659_s12 + $0x2a8] sm:$0xf] %vm670_vm1, %v1240_v15 }
 0x2b3   : > { %1487 = vrot.lane.b32.xlu1 %v4734_v1, %s4475_s22  ;;  %1485 = vrot.lane.b32.xlu0 %v4711_v59, %s4475_s22 }
 0x2b5   : > { %v1246_v17 = vpop.permute.xlu1 %1245  ;;  %v1244_v19 = vpop.permute.xlu0 %1243 }
 0x2b6   : > { %3994 = vst.msk [vmem:[%s4659_s12 + $0x2b4] sm:$0xf] %vm670_vm1, %v1246_v17  ;;  %3993 = vst.msk [vmem:[%s4659_s12 + $0x2b0] sm:$0xf] %vm670_vm1, %v1244_v19 }
 0x2b7   : > { %1491 = vrot.lane.b32.xlu1 %v4724_v63, %s4475_s22  ;;  %1489 = vrot.lane.b32.xlu0 %v4705_v53, %s4475_s22 }
 0x2b9   : > { %v1250_v21 = vpop.permute.xlu1 %1249  ;;  %v1248_v23 = vpop.permute.xlu0 %1247 }
 0x2ba   : > { %3996 = vst.msk [vmem:[%s4659_s12 + $0x2bc] sm:$0xf] %vm670_vm1, %v1250_v21  ;;  %3995 = vst.msk [vmem:[%s4659_s12 + $0x2b8] sm:$0xf] %vm670_vm1, %v1248_v23 }
 0x2bb   : > { %1495 = vrot.lane.b32.xlu1 %v4790_v26, %s4475_s22  ;;  %1493 = vrot.lane.b32.xlu0 %v4767_v20, %s4475_s22 }
 0x2bd   : > { %v1254_v28 = vpop.permute.xlu1 %1253  ;;  %v1252_v31 = vpop.permute.xlu0 %1251 }
 0x2be   : > { %3998 = vst.msk [vmem:[%s4659_s12 + $0x2c4] sm:$0xf] %vm670_vm1, %v1254_v28  ;;  %3997 = vst.msk [vmem:[%s4659_s12 + $0x2c0] sm:$0xf] %vm670_vm1, %v1252_v31 }
 0x2bf   : > { %1499 = vrot.lane.b32.xlu1 %v4780_v24, %s4475_s22  ;;  %1497 = vrot.lane.b32.xlu0 %v4761_v13, %s4475_s22 }
 0x2c1   : > { %v1258_v32 = vpop.permute.xlu1 %1257  ;;  %v1256_v33 = vpop.permute.xlu0 %1255 }
 0x2c2   : > { %4000 = vst.msk [vmem:[%s4659_s12 + $0x2cc] sm:$0xf] %vm670_vm1, %v1258_v32  ;;  %3999 = vst.msk [vmem:[%s4659_s12 + $0x2c8] sm:$0xf] %vm670_vm1, %v1256_v33 }
 0x2c3   : > { %1503 = vrot.lane.b32.xlu1 %v4878_v52, %s4475_s22  ;;  %1501 = vrot.lane.b32.xlu0 %v4858_v43, %s4475_s22 }
 0x2c5   : > { %v1262_v34 = vpop.permute.xlu1 %1261  ;;  %v1260_v38 = vpop.permute.xlu0 %1259 }
 0x2c6   : > { %4002 = vst.msk [vmem:[%s4659_s12 + $0x2d4] sm:$0xf] %vm670_vm1, %v1262_v34  ;;  %4001 = vst.msk [vmem:[%s4659_s12 + $0x2d0] sm:$0xf] %vm670_vm1, %v1260_v38 }
 0x2c7   : > { %1507 = vrot.lane.b32.xlu1 %v4867_v46, %s4475_s22  ;;  %1505 = vrot.lane.b32.xlu0 %v4855_v37, %s4475_s22 }
 0x2c9   : > { %v1266_v44 = vpop.permute.xlu1 %1265  ;;  %v1264_v45 = vpop.permute.xlu0 %1263 }
 0x2ca   : > { %4004 = vst.msk [vmem:[%s4659_s12 + $0x2dc] sm:$0xf] %vm670_vm1, %v1266_v44  ;;  %4003 = vst.msk [vmem:[%s4659_s12 + $0x2d8] sm:$0xf] %vm670_vm1, %v1264_v45 }
 0x2cb   : > { %1511 = vrot.lane.b32.xlu1 %v4683_v42, %s4475_s22  ;;  %1509 = vrot.lane.b32.xlu0 %v4655_v36, %s4475_s22 }
 0x2cd   : > { %v1270_v47 = vpop.permute.xlu1 %1269  ;;  %v1268_v48 = vpop.permute.xlu0 %1267 }
 0x2ce   : > { %4006 = vst.msk [vmem:[%s4659_s12 + $0x2e4] sm:$0xf] %vm670_vm1, %v1270_v47  ;;  %4005 = vst.msk [vmem:[%s4659_s12 + $0x2e0] sm:$0xf] %vm670_vm1, %v1268_v48 }
 0x2cf   : > { %1515 = vrot.lane.b32.xlu1 %v4669_v40, %s4475_s22  ;;  %1513 = vrot.lane.b32.xlu0 %v4649_v30, %s4475_s22 }
 0x2d1   : > { %v1274_v49 = vpop.permute.xlu1 %1273  ;;  %v1272_v50 = vpop.permute.xlu0 %1271 }
 0x2d2   : > { %4008 = vst.msk [vmem:[%s4659_s12 + $0x2ec] sm:$0xf] %vm670_vm1, %v1274_v49  ;;  %4007 = vst.msk [vmem:[%s4659_s12 + $0x2e8] sm:$0xf] %vm670_vm1, %v1272_v50 }
 0x2d3   : > { %1519 = vrot.lane.b32.xlu1 %v4739_v2, %s4475_s22  ;;  %1517 = vrot.lane.b32.xlu0 %v4714_v61, %s4475_s22 }
 0x2d5   : > { %v1278_v51 = vpop.permute.xlu1 %1277  ;;  %v1276_v55 = vpop.permute.xlu0 %1275 }
 0x2d6   : > { %4010 = vst.msk [vmem:[%s4659_s12 + $0x2f4] sm:$0xf] %vm670_vm1, %v1278_v51  ;;  %4009 = vst.msk [vmem:[%s4659_s12 + $0x2f0] sm:$0xf] %vm670_vm1, %v1276_v55 }
 0x2d7   : > { %1523 = vrot.lane.b32.xlu1 %v4729_v0, %s4475_s22  ;;  %1521 = vrot.lane.b32.xlu0 %v4708_v56, %s4475_s22 }
 0x2d9   : > { %v1282_v58 = vpop.permute.xlu1 %1281  ;;  %v1280_v62 = vpop.permute.xlu0 %1279 }
 0x2da   : > { %4012 = vst.msk [vmem:[%s4659_s12 + $0x2fc] sm:$0xf] %vm670_vm1, %v1282_v58  ;;  %4011 = vst.msk [vmem:[%s4659_s12 + $0x2f8] sm:$0xf] %vm670_vm1, %v1280_v62 }
 0x2db   : > { %1527 = vrot.lane.b32.xlu1 %v4795_v27, %s4475_s22  ;;  %1525 = vrot.lane.b32.xlu0 %v4770_v22, %s4475_s22 }
 0x2dd   : > { %v1351_v18 = vpop.permute.xlu1 %1350  ;;  %v1349_v4 = vpop.permute.xlu0 %1348 }
 0x2de   : > { %4014 = vst.msk [vmem:[%s4659_s12 + $0x304] sm:$0xf] %vm670_vm1, %v1351_v18  ;;  %4013 = vst.msk [vmem:[%s4659_s12 + $0x300] sm:$0xf] %vm670_vm1, %v1349_v4 }
 0x2df   : > { %1531 = vrot.lane.b32.xlu1 %v4785_v25, %s4475_s22  ;;  %1529 = vrot.lane.b32.xlu0 %v4764_v16, %s4475_s22 }
 0x2e1   : > { %v1355_v5 = vpop.permute.xlu1 %1354  ;;  %v1353_v6 = vpop.permute.xlu0 %1352 }
 0x2e2   : > { %4016 = vst.msk [vmem:[%s4659_s12 + $0x30c] sm:$0xf] %vm670_vm1, %v1355_v5  ;;  %4015 = vst.msk [vmem:[%s4659_s12 + $0x308] sm:$0xf] %vm670_vm1, %v1353_v6 }
 0x2e3   : > { %1535 = vrot.lane.b32.xlu1 %v4904_v3, %s4475_s22  ;;  %1533 = vrot.lane.b32.xlu0 %v4883_v57, %s4475_s22 }
 0x2e5   : > { %v1359_v7 = vpop.permute.xlu1 %1358  ;;  %v1357_v8 = vpop.permute.xlu0 %1356 }
 0x2e6   : > { %4018 = vst.msk [vmem:[%s4659_s12 + $0x314] sm:$0xf] %vm670_vm1, %v1359_v7  ;;  %4017 = vst.msk [vmem:[%s4659_s12 + $0x310] sm:$0xf] %vm670_vm1, %v1357_v8 }
 0x2e7   : > { %1539 = vrot.lane.b32.xlu1 %v4895_v60, %s4475_s22  ;;  %1537 = vrot.lane.b32.xlu0 %v4880_v54, %s4475_s22 }
 0x2e9   : > { %v1363_v9 = vpop.permute.xlu1 %1362  ;;  %v1361_v10 = vpop.permute.xlu0 %1360 }
 0x2ea   : > { %4020 = vst.msk [vmem:[%s4659_s12 + $0x31c] sm:$0xf] %vm670_vm1, %v1363_v9  ;;  %4019 = vst.msk [vmem:[%s4659_s12 + $0x318] sm:$0xf] %vm670_vm1, %v1361_v10 }
 0x2eb   : > { %1608 = vrot.lane.b32.xlu1 %v4681_v41, %s4476_s25  ;;  %1606 = vrot.lane.b32.xlu0 %v4653_v35, %s4476_s25 }
 0x2ed   : > { %v1367_v11 = vpop.permute.xlu1 %1366  ;;  %v1365_v12 = vpop.permute.xlu0 %1364 }
 0x2ee   : > { %4022 = vst.msk [vmem:[%s4659_s12 + $0x324] sm:$0xf] %vm670_vm1, %v1367_v11  ;;  %4021 = vst.msk [vmem:[%s4659_s12 + $0x320] sm:$0xf] %vm670_vm1, %v1365_v12 }
 0x2ef   : > { %1612 = vrot.lane.b32.xlu1 %v4667_v39, %s4476_s25  ;;  %1610 = vrot.lane.b32.xlu0 %v4647_v29, %s4476_s25 }
 0x2f1   : > { %v1371_v14 = vpop.permute.xlu1 %1370  ;;  %v1369_v15 = vpop.permute.xlu0 %1368 }
 0x2f2   : > { %4024 = vst.msk [vmem:[%s4659_s12 + $0x32c] sm:$0xf] %vm670_vm1, %v1371_v14  ;;  %4023 = vst.msk [vmem:[%s4659_s12 + $0x328] sm:$0xf] %vm670_vm1, %v1369_v15 }
 0x2f3   : > { %1616 = vrot.lane.b32.xlu1 %v4734_v1, %s4476_s25  ;;  %1614 = vrot.lane.b32.xlu0 %v4711_v59, %s4476_s25 }
 0x2f5   : > { %v1375_v17 = vpop.permute.xlu1 %1374  ;;  %v1373_v19 = vpop.permute.xlu0 %1372 }
 0x2f6   : > { %4026 = vst.msk [vmem:[%s4659_s12 + $0x334] sm:$0xf] %vm670_vm1, %v1375_v17  ;;  %4025 = vst.msk [vmem:[%s4659_s12 + $0x330] sm:$0xf] %vm670_vm1, %v1373_v19 }
 0x2f7   : > { %1620 = vrot.lane.b32.xlu1 %v4724_v63, %s4476_s25  ;;  %1618 = vrot.lane.b32.xlu0 %v4705_v53, %s4476_s25 }
 0x2f9   : > { %v1379_v21 = vpop.permute.xlu1 %1378  ;;  %v1377_v23 = vpop.permute.xlu0 %1376 }
 0x2fa   : > { %4028 = vst.msk [vmem:[%s4659_s12 + $0x33c] sm:$0xf] %vm670_vm1, %v1379_v21  ;;  %4027 = vst.msk [vmem:[%s4659_s12 + $0x338] sm:$0xf] %vm670_vm1, %v1377_v23 }
 0x2fb   : > { %1624 = vrot.lane.b32.xlu1 %v4790_v26, %s4476_s25  ;;  %1622 = vrot.lane.b32.xlu0 %v4767_v20, %s4476_s25 }
 0x2fd   : > { %v1383_v28 = vpop.permute.xlu1 %1382  ;;  %v1381_v31 = vpop.permute.xlu0 %1380 }
 0x2fe   : > { %4030 = vst.msk [vmem:[%s4659_s12 + $0x344] sm:$0xf] %vm670_vm1, %v1383_v28  ;;  %4029 = vst.msk [vmem:[%s4659_s12 + $0x340] sm:$0xf] %vm670_vm1, %v1381_v31 }
 0x2ff   : > { %1628 = vrot.lane.b32.xlu1 %v4780_v24, %s4476_s25  ;;  %1626 = vrot.lane.b32.xlu0 %v4761_v13, %s4476_s25 }
 0x301   : > { %v1387_v32 = vpop.permute.xlu1 %1386  ;;  %v1385_v33 = vpop.permute.xlu0 %1384 }
 0x302   : > { %4032 = vst.msk [vmem:[%s4659_s12 + $0x34c] sm:$0xf] %vm670_vm1, %v1387_v32  ;;  %4031 = vst.msk [vmem:[%s4659_s12 + $0x348] sm:$0xf] %vm670_vm1, %v1385_v33 }
 0x303   : > { %1632 = vrot.lane.b32.xlu1 %v4878_v52, %s4476_s25  ;;  %1630 = vrot.lane.b32.xlu0 %v4858_v43, %s4476_s25 }
 0x305   : > { %v1391_v34 = vpop.permute.xlu1 %1390  ;;  %v1389_v38 = vpop.permute.xlu0 %1388 }
 0x306   : > { %4034 = vst.msk [vmem:[%s4659_s12 + $0x354] sm:$0xf] %vm670_vm1, %v1391_v34  ;;  %4033 = vst.msk [vmem:[%s4659_s12 + $0x350] sm:$0xf] %vm670_vm1, %v1389_v38 }
 0x307   : > { %1636 = vrot.lane.b32.xlu1 %v4867_v46, %s4476_s25  ;;  %1634 = vrot.lane.b32.xlu0 %v4855_v37, %s4476_s25 }
 0x309   : > { %v1395_v44 = vpop.permute.xlu1 %1394  ;;  %v1393_v45 = vpop.permute.xlu0 %1392 }
 0x30a   : > { %4036 = vst.msk [vmem:[%s4659_s12 + $0x35c] sm:$0xf] %vm670_vm1, %v1395_v44  ;;  %4035 = vst.msk [vmem:[%s4659_s12 + $0x358] sm:$0xf] %vm670_vm1, %v1393_v45 }
 0x30b   : > { %1640 = vrot.lane.b32.xlu1 %v4683_v42, %s4476_s25  ;;  %1638 = vrot.lane.b32.xlu0 %v4655_v36, %s4476_s25 }
 0x30d   : > { %v1399_v47 = vpop.permute.xlu1 %1398  ;;  %v1397_v48 = vpop.permute.xlu0 %1396 }
 0x30e   : > { %4038 = vst.msk [vmem:[%s4659_s12 + $0x364] sm:$0xf] %vm670_vm1, %v1399_v47  ;;  %4037 = vst.msk [vmem:[%s4659_s12 + $0x360] sm:$0xf] %vm670_vm1, %v1397_v48 }
 0x30f   : > { %1644 = vrot.lane.b32.xlu1 %v4669_v40, %s4476_s25  ;;  %1642 = vrot.lane.b32.xlu0 %v4649_v30, %s4476_s25 }
 0x311   : > { %v1403_v49 = vpop.permute.xlu1 %1402  ;;  %v1401_v50 = vpop.permute.xlu0 %1400 }
 0x312   : > { %4040 = vst.msk [vmem:[%s4659_s12 + $0x36c] sm:$0xf] %vm670_vm1, %v1403_v49  ;;  %4039 = vst.msk [vmem:[%s4659_s12 + $0x368] sm:$0xf] %vm670_vm1, %v1401_v50 }
 0x313   : > { %1648 = vrot.lane.b32.xlu1 %v4739_v2, %s4476_s25  ;;  %1646 = vrot.lane.b32.xlu0 %v4714_v61, %s4476_s25 }
 0x315   : > { %v1407_v51 = vpop.permute.xlu1 %1406  ;;  %v1405_v55 = vpop.permute.xlu0 %1404 }
 0x316   : > { %4042 = vst.msk [vmem:[%s4659_s12 + $0x374] sm:$0xf] %vm670_vm1, %v1407_v51  ;;  %4041 = vst.msk [vmem:[%s4659_s12 + $0x370] sm:$0xf] %vm670_vm1, %v1405_v55 }
 0x317   : > { %1652 = vrot.lane.b32.xlu1 %v4729_v0, %s4476_s25  ;;  %1650 = vrot.lane.b32.xlu0 %v4708_v56, %s4476_s25 }
 0x319   : > { %v1411_v58 = vpop.permute.xlu1 %1410  ;;  %v1409_v62 = vpop.permute.xlu0 %1408 }
 0x31a   : > { %4044 = vst.msk [vmem:[%s4659_s12 + $0x37c] sm:$0xf] %vm670_vm1, %v1411_v58  ;;  %4043 = vst.msk [vmem:[%s4659_s12 + $0x378] sm:$0xf] %vm670_vm1, %v1409_v62 }
 0x31b   : > { %1656 = vrot.lane.b32.xlu1 %v4795_v27, %s4476_s25  ;;  %1654 = vrot.lane.b32.xlu0 %v4770_v22, %s4476_s25 }
 0x31d   : > { %v1480_v18 = vpop.permute.xlu1 %1479  ;;  %v1478_v4 = vpop.permute.xlu0 %1477 }
 0x31e   : > { %4046 = vst.msk [vmem:[%s4659_s12 + $0x384] sm:$0xf] %vm670_vm1, %v1480_v18  ;;  %4045 = vst.msk [vmem:[%s4659_s12 + $0x380] sm:$0xf] %vm670_vm1, %v1478_v4 }
 0x31f   : > { %1660 = vrot.lane.b32.xlu1 %v4785_v25, %s4476_s25  ;;  %1658 = vrot.lane.b32.xlu0 %v4764_v16, %s4476_s25 }
 0x321   : > { %v1484_v5 = vpop.permute.xlu1 %1483  ;;  %v1482_v6 = vpop.permute.xlu0 %1481 }
 0x322   : > { %4048 = vst.msk [vmem:[%s4659_s12 + $0x38c] sm:$0xf] %vm670_vm1, %v1484_v5  ;;  %4047 = vst.msk [vmem:[%s4659_s12 + $0x388] sm:$0xf] %vm670_vm1, %v1482_v6 }
 0x323   : > { %1664 = vrot.lane.b32.xlu1 %v4904_v3, %s4476_s25  ;;  %1662 = vrot.lane.b32.xlu0 %v4883_v57, %s4476_s25 }
 0x325   : > { %v1488_v7 = vpop.permute.xlu1 %1487  ;;  %v1486_v8 = vpop.permute.xlu0 %1485 }
 0x326   : > { %4050 = vst.msk [vmem:[%s4659_s12 + $0x394] sm:$0xf] %vm670_vm1, %v1488_v7  ;;  %4049 = vst.msk [vmem:[%s4659_s12 + $0x390] sm:$0xf] %vm670_vm1, %v1486_v8 }
 0x327   : > { %1668 = vrot.lane.b32.xlu1 %v4895_v60, %s4476_s25  ;;  %1666 = vrot.lane.b32.xlu0 %v4880_v54, %s4476_s25 }
 0x329   : > { %v1492_v9 = vpop.permute.xlu1 %1491  ;;  %v1490_v10 = vpop.permute.xlu0 %1489 }
 0x32a   : > { %4052 = vst.msk [vmem:[%s4659_s12 + $0x39c] sm:$0xf] %vm670_vm1, %v1492_v9  ;;  %4051 = vst.msk [vmem:[%s4659_s12 + $0x398] sm:$0xf] %vm670_vm1, %v1490_v10 }
 0x32b   : > { %1737 = vrot.lane.b32.xlu1 %v4681_v41, %s4477_s27  ;;  %1735 = vrot.lane.b32.xlu0 %v4653_v35, %s4477_s27 }
 0x32d   : > { %v1496_v11 = vpop.permute.xlu1 %1495  ;;  %v1494_v12 = vpop.permute.xlu0 %1493 }
 0x32e   : > { %4054 = vst.msk [vmem:[%s4659_s12 + $0x3a4] sm:$0xf] %vm670_vm1, %v1496_v11  ;;  %4053 = vst.msk [vmem:[%s4659_s12 + $0x3a0] sm:$0xf] %vm670_vm1, %v1494_v12 }
 0x32f   : > { %1741 = vrot.lane.b32.xlu1 %v4667_v39, %s4477_s27  ;;  %1739 = vrot.lane.b32.xlu0 %v4647_v29, %s4477_s27 }
 0x331   : > { %v1500_v14 = vpop.permute.xlu1 %1499  ;;  %v1498_v15 = vpop.permute.xlu0 %1497 }
 0x332   : > { %4056 = vst.msk [vmem:[%s4659_s12 + $0x3ac] sm:$0xf] %vm670_vm1, %v1500_v14  ;;  %4055 = vst.msk [vmem:[%s4659_s12 + $0x3a8] sm:$0xf] %vm670_vm1, %v1498_v15 }
 0x333   : > { %1745 = vrot.lane.b32.xlu1 %v4734_v1, %s4477_s27  ;;  %1743 = vrot.lane.b32.xlu0 %v4711_v59, %s4477_s27 }
 0x335   : > { %v1504_v17 = vpop.permute.xlu1 %1503  ;;  %v1502_v19 = vpop.permute.xlu0 %1501 }
 0x336   : > { %4058 = vst.msk [vmem:[%s4659_s12 + $0x3b4] sm:$0xf] %vm670_vm1, %v1504_v17  ;;  %4057 = vst.msk [vmem:[%s4659_s12 + $0x3b0] sm:$0xf] %vm670_vm1, %v1502_v19 }
 0x337   : > { %1749 = vrot.lane.b32.xlu1 %v4724_v63, %s4477_s27  ;;  %1747 = vrot.lane.b32.xlu0 %v4705_v53, %s4477_s27 }
 0x339   : > { %v1508_v21 = vpop.permute.xlu1 %1507  ;;  %v1506_v23 = vpop.permute.xlu0 %1505 }
 0x33a   : > { %4060 = vst.msk [vmem:[%s4659_s12 + $0x3bc] sm:$0xf] %vm670_vm1, %v1508_v21  ;;  %4059 = vst.msk [vmem:[%s4659_s12 + $0x3b8] sm:$0xf] %vm670_vm1, %v1506_v23 }
 0x33b   : > { %1753 = vrot.lane.b32.xlu1 %v4790_v26, %s4477_s27  ;;  %1751 = vrot.lane.b32.xlu0 %v4767_v20, %s4477_s27 }
 0x33d   : > { %v1512_v28 = vpop.permute.xlu1 %1511  ;;  %v1510_v31 = vpop.permute.xlu0 %1509 }
 0x33e   : > { %4062 = vst.msk [vmem:[%s4659_s12 + $0x3c4] sm:$0xf] %vm670_vm1, %v1512_v28  ;;  %4061 = vst.msk [vmem:[%s4659_s12 + $0x3c0] sm:$0xf] %vm670_vm1, %v1510_v31 }
 0x33f   : > { %1757 = vrot.lane.b32.xlu1 %v4780_v24, %s4477_s27  ;;  %1755 = vrot.lane.b32.xlu0 %v4761_v13, %s4477_s27 }
 0x341   : > { %v1516_v32 = vpop.permute.xlu1 %1515  ;;  %v1514_v33 = vpop.permute.xlu0 %1513 }
 0x342   : > { %4064 = vst.msk [vmem:[%s4659_s12 + $0x3cc] sm:$0xf] %vm670_vm1, %v1516_v32  ;;  %4063 = vst.msk [vmem:[%s4659_s12 + $0x3c8] sm:$0xf] %vm670_vm1, %v1514_v33 }
 0x343   : > { %1761 = vrot.lane.b32.xlu1 %v4878_v52, %s4477_s27  ;;  %1759 = vrot.lane.b32.xlu0 %v4858_v43, %s4477_s27 }
 0x345   : > { %v1520_v34 = vpop.permute.xlu1 %1519  ;;  %v1518_v38 = vpop.permute.xlu0 %1517 }
 0x346   : > { %4066 = vst.msk [vmem:[%s4659_s12 + $0x3d4] sm:$0xf] %vm670_vm1, %v1520_v34  ;;  %4065 = vst.msk [vmem:[%s4659_s12 + $0x3d0] sm:$0xf] %vm670_vm1, %v1518_v38 }
 0x347   : > { %1765 = vrot.lane.b32.xlu1 %v4867_v46, %s4477_s27  ;;  %1763 = vrot.lane.b32.xlu0 %v4855_v37, %s4477_s27 }
 0x349   : > { %v1524_v44 = vpop.permute.xlu1 %1523  ;;  %v1522_v45 = vpop.permute.xlu0 %1521 }
 0x34a   : > { %4068 = vst.msk [vmem:[%s4659_s12 + $0x3dc] sm:$0xf] %vm670_vm1, %v1524_v44  ;;  %4067 = vst.msk [vmem:[%s4659_s12 + $0x3d8] sm:$0xf] %vm670_vm1, %v1522_v45 }
 0x34b   : > { %1769 = vrot.lane.b32.xlu1 %v4683_v42, %s4477_s27  ;;  %1767 = vrot.lane.b32.xlu0 %v4655_v36, %s4477_s27 }
 0x34d   : > { %v1528_v47 = vpop.permute.xlu1 %1527  ;;  %v1526_v48 = vpop.permute.xlu0 %1525 }
 0x34e   : > { %4070 = vst.msk [vmem:[%s4659_s12 + $0x3e4] sm:$0xf] %vm670_vm1, %v1528_v47  ;;  %4069 = vst.msk [vmem:[%s4659_s12 + $0x3e0] sm:$0xf] %vm670_vm1, %v1526_v48 }
 0x34f   : > { %1773 = vrot.lane.b32.xlu1 %v4669_v40, %s4477_s27  ;;  %1771 = vrot.lane.b32.xlu0 %v4649_v30, %s4477_s27 }
 0x351   : > { %v1532_v49 = vpop.permute.xlu1 %1531  ;;  %v1530_v50 = vpop.permute.xlu0 %1529 }
 0x352   : > { %4072 = vst.msk [vmem:[%s4659_s12 + $0x3ec] sm:$0xf] %vm670_vm1, %v1532_v49  ;;  %4071 = vst.msk [vmem:[%s4659_s12 + $0x3e8] sm:$0xf] %vm670_vm1, %v1530_v50 }
 0x353   : > { %1777 = vrot.lane.b32.xlu1 %v4739_v2, %s4477_s27  ;;  %1775 = vrot.lane.b32.xlu0 %v4714_v61, %s4477_s27 }
 0x355   : > { %v1536_v51 = vpop.permute.xlu1 %1535  ;;  %v1534_v55 = vpop.permute.xlu0 %1533 }
 0x356   : > { %4074 = vst.msk [vmem:[%s4659_s12 + $0x3f4] sm:$0xf] %vm670_vm1, %v1536_v51  ;;  %4073 = vst.msk [vmem:[%s4659_s12 + $0x3f0] sm:$0xf] %vm670_vm1, %v1534_v55 }
 0x357   : > { %1781 = vrot.lane.b32.xlu1 %v4729_v0, %s4477_s27  ;;  %1779 = vrot.lane.b32.xlu0 %v4708_v56, %s4477_s27 }
 0x359   : > { %v1540_v58 = vpop.permute.xlu1 %1539  ;;  %v1538_v62 = vpop.permute.xlu0 %1537 }
 0x35a   : > { %4076 = vst.msk [vmem:[%s4659_s12 + $0x3fc] sm:$0xf] %vm670_vm1, %v1540_v58  ;;  %4075 = vst.msk [vmem:[%s4659_s12 + $0x3f8] sm:$0xf] %vm670_vm1, %v1538_v62 }
 0x35b   : > { %1785 = vrot.lane.b32.xlu1 %v4795_v27, %s4477_s27  ;;  %1783 = vrot.lane.b32.xlu0 %v4770_v22, %s4477_s27 }
 0x35d   : > { %v1609_v18 = vpop.permute.xlu1 %1608  ;;  %v1607_v4 = vpop.permute.xlu0 %1606 }
 0x35e   : > { %4078 = vst.msk [vmem:[%s4659_s12 + $0x404] sm:$0xf] %vm670_vm1, %v1609_v18  ;;  %4077 = vst.msk [vmem:[%s4659_s12 + $0x400] sm:$0xf] %vm670_vm1, %v1607_v4 }
 0x35f   : > { %1789 = vrot.lane.b32.xlu1 %v4785_v25, %s4477_s27  ;;  %1787 = vrot.lane.b32.xlu0 %v4764_v16, %s4477_s27 }
 0x361   : > { %v1613_v5 = vpop.permute.xlu1 %1612  ;;  %v1611_v6 = vpop.permute.xlu0 %1610 }
 0x362   : > { %4080 = vst.msk [vmem:[%s4659_s12 + $0x40c] sm:$0xf] %vm670_vm1, %v1613_v5  ;;  %4079 = vst.msk [vmem:[%s4659_s12 + $0x408] sm:$0xf] %vm670_vm1, %v1611_v6 }
 0x363   : > { %1793 = vrot.lane.b32.xlu1 %v4904_v3, %s4477_s27  ;;  %1791 = vrot.lane.b32.xlu0 %v4883_v57, %s4477_s27 }
 0x365   : > { %v1617_v7 = vpop.permute.xlu1 %1616  ;;  %v1615_v8 = vpop.permute.xlu0 %1614 }
 0x366   : > { %4082 = vst.msk [vmem:[%s4659_s12 + $0x414] sm:$0xf] %vm670_vm1, %v1617_v7  ;;  %4081 = vst.msk [vmem:[%s4659_s12 + $0x410] sm:$0xf] %vm670_vm1, %v1615_v8 }
 0x367   : > { %1797 = vrot.lane.b32.xlu1 %v4895_v60, %s4477_s27  ;;  %1795 = vrot.lane.b32.xlu0 %v4880_v54, %s4477_s27 }
 0x369   : > { %v1621_v9 = vpop.permute.xlu1 %1620  ;;  %v1619_v10 = vpop.permute.xlu0 %1618 }
 0x36a   : > { %4084 = vst.msk [vmem:[%s4659_s12 + $0x41c] sm:$0xf] %vm670_vm1, %v1621_v9  ;;  %4083 = vst.msk [vmem:[%s4659_s12 + $0x418] sm:$0xf] %vm670_vm1, %v1619_v10 }
 0x36b   : > { %1866 = vrot.lane.b32.xlu1 %v4681_v41, %s4478_s28  ;;  %1864 = vrot.lane.b32.xlu0 %v4653_v35, %s4478_s28 }
 0x36d   : > { %v1625_v11 = vpop.permute.xlu1 %1624  ;;  %v1623_v12 = vpop.permute.xlu0 %1622 }
 0x36e   : > { %4086 = vst.msk [vmem:[%s4659_s12 + $0x424] sm:$0xf] %vm670_vm1, %v1625_v11  ;;  %4085 = vst.msk [vmem:[%s4659_s12 + $0x420] sm:$0xf] %vm670_vm1, %v1623_v12 }
 0x36f   : > { %1870 = vrot.lane.b32.xlu1 %v4667_v39, %s4478_s28  ;;  %1868 = vrot.lane.b32.xlu0 %v4647_v29, %s4478_s28 }
 0x371   : > { %v1629_v14 = vpop.permute.xlu1 %1628  ;;  %v1627_v15 = vpop.permute.xlu0 %1626 }
 0x372   : > { %4088 = vst.msk [vmem:[%s4659_s12 + $0x42c] sm:$0xf] %vm670_vm1, %v1629_v14  ;;  %4087 = vst.msk [vmem:[%s4659_s12 + $0x428] sm:$0xf] %vm670_vm1, %v1627_v15 }
 0x373   : > { %1874 = vrot.lane.b32.xlu1 %v4734_v1, %s4478_s28  ;;  %1872 = vrot.lane.b32.xlu0 %v4711_v59, %s4478_s28 }
 0x375   : > { %v1633_v17 = vpop.permute.xlu1 %1632  ;;  %v1631_v19 = vpop.permute.xlu0 %1630 }
 0x376   : > { %4090 = vst.msk [vmem:[%s4659_s12 + $0x434] sm:$0xf] %vm670_vm1, %v1633_v17  ;;  %4089 = vst.msk [vmem:[%s4659_s12 + $0x430] sm:$0xf] %vm670_vm1, %v1631_v19 }
 0x377   : > { %1878 = vrot.lane.b32.xlu1 %v4724_v63, %s4478_s28  ;;  %1876 = vrot.lane.b32.xlu0 %v4705_v53, %s4478_s28 }
 0x379   : > { %v1637_v21 = vpop.permute.xlu1 %1636  ;;  %v1635_v23 = vpop.permute.xlu0 %1634 }
 0x37a   : > { %4092 = vst.msk [vmem:[%s4659_s12 + $0x43c] sm:$0xf] %vm670_vm1, %v1637_v21  ;;  %4091 = vst.msk [vmem:[%s4659_s12 + $0x438] sm:$0xf] %vm670_vm1, %v1635_v23 }
 0x37b   : > { %1882 = vrot.lane.b32.xlu1 %v4790_v26, %s4478_s28  ;;  %1880 = vrot.lane.b32.xlu0 %v4767_v20, %s4478_s28 }
 0x37d   : > { %v1641_v28 = vpop.permute.xlu1 %1640  ;;  %v1639_v31 = vpop.permute.xlu0 %1638 }
 0x37e   : > { %4094 = vst.msk [vmem:[%s4659_s12 + $0x444] sm:$0xf] %vm670_vm1, %v1641_v28  ;;  %4093 = vst.msk [vmem:[%s4659_s12 + $0x440] sm:$0xf] %vm670_vm1, %v1639_v31 }
 0x37f   : > { %1886 = vrot.lane.b32.xlu1 %v4780_v24, %s4478_s28  ;;  %1884 = vrot.lane.b32.xlu0 %v4761_v13, %s4478_s28 }
 0x381   : > { %v1645_v32 = vpop.permute.xlu1 %1644  ;;  %v1643_v33 = vpop.permute.xlu0 %1642 }
 0x382   : > { %4096 = vst.msk [vmem:[%s4659_s12 + $0x44c] sm:$0xf] %vm670_vm1, %v1645_v32  ;;  %4095 = vst.msk [vmem:[%s4659_s12 + $0x448] sm:$0xf] %vm670_vm1, %v1643_v33 }
 0x383   : > { %1890 = vrot.lane.b32.xlu1 %v4878_v52, %s4478_s28  ;;  %1888 = vrot.lane.b32.xlu0 %v4858_v43, %s4478_s28 }
 0x385   : > { %v1649_v34 = vpop.permute.xlu1 %1648  ;;  %v1647_v38 = vpop.permute.xlu0 %1646 }
 0x386   : > { %4098 = vst.msk [vmem:[%s4659_s12 + $0x454] sm:$0xf] %vm670_vm1, %v1649_v34  ;;  %4097 = vst.msk [vmem:[%s4659_s12 + $0x450] sm:$0xf] %vm670_vm1, %v1647_v38 }
 0x387   : > { %1894 = vrot.lane.b32.xlu1 %v4867_v46, %s4478_s28  ;;  %1892 = vrot.lane.b32.xlu0 %v4855_v37, %s4478_s28 }
 0x389   : > { %v1653_v44 = vpop.permute.xlu1 %1652  ;;  %v1651_v45 = vpop.permute.xlu0 %1650 }
 0x38a   : > { %4100 = vst.msk [vmem:[%s4659_s12 + $0x45c] sm:$0xf] %vm670_vm1, %v1653_v44  ;;  %4099 = vst.msk [vmem:[%s4659_s12 + $0x458] sm:$0xf] %vm670_vm1, %v1651_v45 }
 0x38b   : > { %1898 = vrot.lane.b32.xlu1 %v4683_v42, %s4478_s28  ;;  %1896 = vrot.lane.b32.xlu0 %v4655_v36, %s4478_s28 }
 0x38d   : > { %v1657_v47 = vpop.permute.xlu1 %1656  ;;  %v1655_v48 = vpop.permute.xlu0 %1654 }
 0x38e   : > { %4102 = vst.msk [vmem:[%s4659_s12 + $0x464] sm:$0xf] %vm670_vm1, %v1657_v47  ;;  %4101 = vst.msk [vmem:[%s4659_s12 + $0x460] sm:$0xf] %vm670_vm1, %v1655_v48 }
 0x38f   : > { %1902 = vrot.lane.b32.xlu1 %v4669_v40, %s4478_s28  ;;  %1900 = vrot.lane.b32.xlu0 %v4649_v30, %s4478_s28 }
 0x391   : > { %v1661_v49 = vpop.permute.xlu1 %1660  ;;  %v1659_v50 = vpop.permute.xlu0 %1658 }
 0x392   : > { %4104 = vst.msk [vmem:[%s4659_s12 + $0x46c] sm:$0xf] %vm670_vm1, %v1661_v49  ;;  %4103 = vst.msk [vmem:[%s4659_s12 + $0x468] sm:$0xf] %vm670_vm1, %v1659_v50 }
 0x393   : > { %1906 = vrot.lane.b32.xlu1 %v4739_v2, %s4478_s28  ;;  %1904 = vrot.lane.b32.xlu0 %v4714_v61, %s4478_s28 }
 0x395   : > { %v1665_v51 = vpop.permute.xlu1 %1664  ;;  %v1663_v55 = vpop.permute.xlu0 %1662 }
 0x396   : > { %4106 = vst.msk [vmem:[%s4659_s12 + $0x474] sm:$0xf] %vm670_vm1, %v1665_v51  ;;  %4105 = vst.msk [vmem:[%s4659_s12 + $0x470] sm:$0xf] %vm670_vm1, %v1663_v55 }
 0x397   : > { %1910 = vrot.lane.b32.xlu1 %v4729_v0, %s4478_s28  ;;  %1908 = vrot.lane.b32.xlu0 %v4708_v56, %s4478_s28 }
 0x399   : > { %v1669_v58 = vpop.permute.xlu1 %1668  ;;  %v1667_v62 = vpop.permute.xlu0 %1666 }
 0x39a   : > { %4108 = vst.msk [vmem:[%s4659_s12 + $0x47c] sm:$0xf] %vm670_vm1, %v1669_v58  ;;  %4107 = vst.msk [vmem:[%s4659_s12 + $0x478] sm:$0xf] %vm670_vm1, %v1667_v62 }
 0x39b   : > { %1914 = vrot.lane.b32.xlu1 %v4795_v27, %s4478_s28  ;;  %1912 = vrot.lane.b32.xlu0 %v4770_v22, %s4478_s28 }
 0x39d   : > { %v1738_v18 = vpop.permute.xlu1 %1737  ;;  %v1736_v4 = vpop.permute.xlu0 %1735 }
 0x39e   : > { %4110 = vst.msk [vmem:[%s4659_s12 + $0x484] sm:$0xf] %vm670_vm1, %v1738_v18  ;;  %4109 = vst.msk [vmem:[%s4659_s12 + $0x480] sm:$0xf] %vm670_vm1, %v1736_v4 }
 0x39f   : > { %1918 = vrot.lane.b32.xlu1 %v4785_v25, %s4478_s28  ;;  %1916 = vrot.lane.b32.xlu0 %v4764_v16, %s4478_s28 }
 0x3a1   : > { %v1742_v5 = vpop.permute.xlu1 %1741  ;;  %v1740_v6 = vpop.permute.xlu0 %1739 }
 0x3a2   : > { %4112 = vst.msk [vmem:[%s4659_s12 + $0x48c] sm:$0xf] %vm670_vm1, %v1742_v5  ;;  %4111 = vst.msk [vmem:[%s4659_s12 + $0x488] sm:$0xf] %vm670_vm1, %v1740_v6 }
 0x3a3   : > { %1922 = vrot.lane.b32.xlu1 %v4904_v3, %s4478_s28  ;;  %1920 = vrot.lane.b32.xlu0 %v4883_v57, %s4478_s28 }
 0x3a5   : > { %v1746_v7 = vpop.permute.xlu1 %1745  ;;  %v1744_v8 = vpop.permute.xlu0 %1743 }
 0x3a6   : > { %4114 = vst.msk [vmem:[%s4659_s12 + $0x494] sm:$0xf] %vm670_vm1, %v1746_v7  ;;  %4113 = vst.msk [vmem:[%s4659_s12 + $0x490] sm:$0xf] %vm670_vm1, %v1744_v8 }
 0x3a7   : > { %1926 = vrot.lane.b32.xlu1 %v4895_v60, %s4478_s28  ;;  %1924 = vrot.lane.b32.xlu0 %v4880_v54, %s4478_s28 }
 0x3a9   : > { %v1750_v9 = vpop.permute.xlu1 %1749  ;;  %v1748_v10 = vpop.permute.xlu0 %1747 }
 0x3aa   : > { %4116 = vst.msk [vmem:[%s4659_s12 + $0x49c] sm:$0xf] %vm670_vm1, %v1750_v9  ;;  %4115 = vst.msk [vmem:[%s4659_s12 + $0x498] sm:$0xf] %vm670_vm1, %v1748_v10 }
 0x3ab   : > { %1995 = vrot.lane.b32.xlu1 %v4681_v41, %s4479_s23  ;;  %1993 = vrot.lane.b32.xlu0 %v4653_v35, %s4479_s23 }
 0x3ad   : > { %v1754_v11 = vpop.permute.xlu1 %1753  ;;  %v1752_v12 = vpop.permute.xlu0 %1751 }
 0x3ae   : > { %4118 = vst.msk [vmem:[%s4659_s12 + $0x4a4] sm:$0xf] %vm670_vm1, %v1754_v11  ;;  %4117 = vst.msk [vmem:[%s4659_s12 + $0x4a0] sm:$0xf] %vm670_vm1, %v1752_v12 }
 0x3af   : > { %1999 = vrot.lane.b32.xlu1 %v4667_v39, %s4479_s23  ;;  %1997 = vrot.lane.b32.xlu0 %v4647_v29, %s4479_s23 }
 0x3b1   : > { %v1758_v41 = vpop.permute.xlu1 %1757  ;;  %v1756_v14 = vpop.permute.xlu0 %1755 }
 0x3b2   : > { %4120 = vst.msk [vmem:[%s4659_s12 + $0x4ac] sm:$0xf] %vm670_vm1, %v1758_v41  ;;  %4119 = vst.msk [vmem:[%s4659_s12 + $0x4a8] sm:$0xf] %vm670_vm1, %v1756_v14 }
 0x3b3   : > { %2003 = vrot.lane.b32.xlu1 %v4734_v1, %s4479_s23  ;;  %2001 = vrot.lane.b32.xlu0 %v4711_v59, %s4479_s23 }
 0x3b5   : > { %v1762_v35 = vpop.permute.xlu1 %1761  ;;  %v1760_v39 = vpop.permute.xlu0 %1759 }
 0x3b6   : > { %4122 = vst.msk [vmem:[%s4659_s12 + $0x4b4] sm:$0xf] %vm670_vm1, %v1762_v35  ;;  %4121 = vst.msk [vmem:[%s4659_s12 + $0x4b0] sm:$0xf] %vm670_vm1, %v1760_v39 }
 0x3b7   : > { %2007 = vrot.lane.b32.xlu1 %v4724_v63, %s4479_s23  ;;  %2005 = vrot.lane.b32.xlu0 %v4705_v53, %s4479_s23 }
 0x3b9   : > { %v1766_v29 = vpop.permute.xlu1 %1765  ;;  %v1764_v1 = vpop.permute.xlu0 %1763 }
 0x3ba   : > { %4124 = vst.msk [vmem:[%s4659_s12 + $0x4bc] sm:$0xf] %vm670_vm1, %v1766_v29  ;;  %4123 = vst.msk [vmem:[%s4659_s12 + $0x4b8] sm:$0xf] %vm670_vm1, %v1764_v1 }
 0x3bb   : > { %2011 = vrot.lane.b32.xlu1 %v4790_v26, %s4479_s23  ;;  %2009 = vrot.lane.b32.xlu0 %v4767_v20, %s4479_s23 }
 0x3bd   : > { %v1770_v59 = vpop.permute.xlu1 %1769  ;;  %v1768_v63 = vpop.permute.xlu0 %1767 }
 0x3be   : > { %4126 = vst.msk [vmem:[%s4659_s12 + $0x4c4] sm:$0xf] %vm670_vm1, %v1770_v59  ;;  %4125 = vst.msk [vmem:[%s4659_s12 + $0x4c0] sm:$0xf] %vm670_vm1, %v1768_v63 }
 0x3bf   : > { %2015 = vrot.lane.b32.xlu1 %v4780_v24, %s4479_s23  ;;  %2013 = vrot.lane.b32.xlu0 %v4761_v13, %s4479_s23 }
 0x3c1   : > { %v1774_v53 = vpop.permute.xlu1 %1773  ;;  %v1772_v26 = vpop.permute.xlu0 %1771 }
 0x3c2   : > { %4128 = vst.msk [vmem:[%s4659_s12 + $0x4cc] sm:$0xf] %vm670_vm1, %v1774_v53  ;;  %4127 = vst.msk [vmem:[%s4659_s12 + $0x4c8] sm:$0xf] %vm670_vm1, %v1772_v26 }
 0x3c3   : > { %2019 = vrot.lane.b32.xlu1 %v4878_v52, %s4479_s23  ;;  %2017 = vrot.lane.b32.xlu0 %v4858_v43, %s4479_s23 }
 0x3c5   : > { %v1778_v20 = vpop.permute.xlu1 %1777  ;;  %v1776_v24 = vpop.permute.xlu0 %1775 }
 0x3c6   : > { %4130 = vst.msk [vmem:[%s4659_s12 + $0x4d4] sm:$0xf] %vm670_vm1, %v1778_v20  ;;  %4129 = vst.msk [vmem:[%s4659_s12 + $0x4d0] sm:$0xf] %vm670_vm1, %v1776_v24 }
 0x3c7   : > { %2023 = vrot.lane.b32.xlu1 %v4867_v46, %s4479_s23  ;;  %2021 = vrot.lane.b32.xlu0 %v4855_v37, %s4479_s23 }
 0x3c9   : > { %v1782_v13 = vpop.permute.xlu1 %1781  ;;  %v1780_v52 = vpop.permute.xlu0 %1779 }
 0x3ca   : > { %4132 = vst.msk [vmem:[%s4659_s12 + $0x4dc] sm:$0xf] %vm670_vm1, %v1782_v13  ;;  %4131 = vst.msk [vmem:[%s4659_s12 + $0x4d8] sm:$0xf] %vm670_vm1, %v1780_v52 }
 0x3cb   : > { %2027 = vrot.lane.b32.xlu1 %v4683_v42, %s4479_s23  ;;  %2025 = vrot.lane.b32.xlu0 %v4655_v36, %s4479_s23 }
 0x3cd   : > { %v1786_v43 = vpop.permute.xlu1 %1785  ;;  %v1784_v46 = vpop.permute.xlu0 %1783 }
 0x3ce   : > { %4134 = vst.msk [vmem:[%s4659_s12 + $0x4e4] sm:$0xf] %vm670_vm1, %v1786_v43  ;;  %4133 = vst.msk [vmem:[%s4659_s12 + $0x4e0] sm:$0xf] %vm670_vm1, %v1784_v46 }
 0x3cf   : > { %2031 = vrot.lane.b32.xlu1 %v4669_v40, %s4479_s23  ;;  %2029 = vrot.lane.b32.xlu0 %v4649_v30, %s4479_s23 }
 0x3d1   : > { %v1790_v42 = vpop.permute.xlu1 %1789  ;;  %v1788_v37 = vpop.permute.xlu0 %1787 }
 0x3d2   : > { %4136 = vst.msk [vmem:[%s4659_s12 + $0x4ec] sm:$0xf] %vm670_vm1, %v1790_v42  ;;  %4135 = vst.msk [vmem:[%s4659_s12 + $0x4e8] sm:$0xf] %vm670_vm1, %v1788_v37 }
 0x3d3   : > { %2035 = vrot.lane.b32.xlu1 %v4739_v2, %s4479_s23  ;;  %2033 = vrot.lane.b32.xlu0 %v4714_v61, %s4479_s23 }
 0x3d5   : > { %v1794_v36 = vpop.permute.xlu1 %1793  ;;  %v1792_v40 = vpop.permute.xlu0 %1791 }
 0x3d6   : > { %4138 = vst.msk [vmem:[%s4659_s12 + $0x4f4] sm:$0xf] %vm670_vm1, %v1794_v36  ;;  %4137 = vst.msk [vmem:[%s4659_s12 + $0x4f0] sm:$0xf] %vm670_vm1, %v1792_v40 }
 0x3d7   : > { %2039 = vrot.lane.b32.xlu1 %v4729_v0, %s4479_s23  ;;  %2037 = vrot.lane.b32.xlu0 %v4708_v56, %s4479_s23 }
 0x3d9   : > { %v1798_v30 = vpop.permute.xlu1 %1797  ;;  %v1796_v2 = vpop.permute.xlu0 %1795 }
 0x3da   : > { %4140 = vst.msk [vmem:[%s4659_s12 + $0x4fc] sm:$0xf] %vm670_vm1, %v1798_v30  ;;  %4139 = vst.msk [vmem:[%s4659_s12 + $0x4f8] sm:$0xf] %vm670_vm1, %v1796_v2 }
 0x3db   : > { %2043 = vrot.lane.b32.xlu1 %v4795_v27, %s4479_s23  ;;  %2041 = vrot.lane.b32.xlu0 %v4770_v22, %s4479_s23 }
 0x3dd   : > { %v1867_v61 = vpop.permute.xlu1 %1866  ;;  %v1865_v0 = vpop.permute.xlu0 %1864 }
 0x3de   : > { %4142 = vst.msk [vmem:[%s4659_s12 + $0x504] sm:$0xf] %vm670_vm1, %v1867_v61  ;;  %4141 = vst.msk [vmem:[%s4659_s12 + $0x500] sm:$0xf] %vm670_vm1, %v1865_v0  ;;  %v2147_v61 = vld [vmem:[%s4659_s12] sm:$0xff] (%p6661_p9)   ;;  %v2151_v0 = vld [vmem:[%s4659_s12 + $0x8] sm:$0xff] (%p6661_p9)  }
 0x3df   : > { %2047 = vrot.lane.b32.xlu1 %v4785_v25, %s4479_s23  ;;  %2045 = vrot.lane.b32.xlu0 %v4764_v16, %s4479_s23  ;;  %2148 = vst [vmem:[%s6254_s24] sm:$0xff] (%p6661_p9), %v2147_v61   ;;  %2152 = vst [vmem:[%s6254_s24 + $0x8] sm:$0xff] (%p6661_p9), %v2151_v0  }
 0x3e0   : > { %v2403_v61 = vld [vmem:[%s4659_s12 + $0x200] sm:$0xff] (%p6661_p9)   ;;  %v2407_v0 = vld [vmem:[%s4659_s12 + $0x208] sm:$0xff] (%p6661_p9)  }
 0x3e1   : > { %v1871_v56 = vpop.permute.xlu1 %1870  ;;  %v1869_v27 = vpop.permute.xlu0 %1868  ;;  %2404 = vst [vmem:[%s6254_s24 + $0x400] sm:$0xff] (%p6661_p9), %v2403_v61   ;;  %2408 = vst [vmem:[%s6254_s24 + $0x408] sm:$0xff] (%p6661_p9), %v2407_v0   ;;  %v2659_v61 = vld [vmem:[%s4659_s12 + $0x400] sm:$0xff] (%p6661_p9)   ;;  %v2663_v0 = vld [vmem:[%s4659_s12 + $0x408] sm:$0xff] (%p6661_p9)  }
 0x3e2   : > { %4144 = vst.msk [vmem:[%s4659_s12 + $0x50c] sm:$0xf] %vm670_vm1, %v1871_v56  ;;  %4143 = vst.msk [vmem:[%s4659_s12 + $0x508] sm:$0xf] %vm670_vm1, %v1869_v27  ;;  %v2155_v56 = vld [vmem:[%s4659_s12 + $0x10] sm:$0xff] (%p6661_p9)   ;;  %v2159_v27 = vld [vmem:[%s4659_s12 + $0x18] sm:$0xff] (%p6661_p9)  }
 0x3e3   : > { %2051 = vrot.lane.b32.xlu1 %v4904_v3, %s4479_s23  ;;  %2049 = vrot.lane.b32.xlu0 %v4883_v57, %s4479_s23  ;;  %2156 = vst [vmem:[%s6254_s24 + $0x10] sm:$0xff] (%p6661_p9), %v2155_v56   ;;  %2160 = vst [vmem:[%s6254_s24 + $0x18] sm:$0xff] (%p6661_p9), %v2159_v27  }
 0x3e4   : > { %v2411_v56 = vld [vmem:[%s4659_s12 + $0x210] sm:$0xff] (%p6661_p9)   ;;  %v2415_v27 = vld [vmem:[%s4659_s12 + $0x218] sm:$0xff] (%p6661_p9)   ;;  %2660 = vst [vmem:[%s6254_s24 + $0x800] sm:$0xff] (%p6661_p9), %v2659_v61   ;;  %2664 = vst [vmem:[%s6254_s24 + $0x808] sm:$0xff] (%p6661_p9), %v2663_v0  }
 0x3e5   : > { %v1875_v22 = vpop.permute.xlu1 %1874  ;;  %v1873_v25 = vpop.permute.xlu0 %1872  ;;  %2412 = vst [vmem:[%s6254_s24 + $0x410] sm:$0xff] (%p6661_p9), %v2411_v56   ;;  %2416 = vst [vmem:[%s6254_s24 + $0x418] sm:$0xff] (%p6661_p9), %v2415_v27   ;;  %v2667_v56 = vld [vmem:[%s4659_s12 + $0x410] sm:$0xff] (%p6661_p9)   ;;  %v2671_v27 = vld [vmem:[%s4659_s12 + $0x418] sm:$0xff] (%p6661_p9)  }
 0x3e6   : > { %4146 = vst.msk [vmem:[%s4659_s12 + $0x514] sm:$0xf] %vm670_vm1, %v1875_v22  ;;  %4145 = vst.msk [vmem:[%s4659_s12 + $0x510] sm:$0xf] %vm670_vm1, %v1873_v25  ;;  %v2163_v22 = vld [vmem:[%s4659_s12 + $0x20] sm:$0xff] (%p6661_p9)   ;;  %v2167_v25 = vld [vmem:[%s4659_s12 + $0x28] sm:$0xff] (%p6661_p9)  }
 0x3e7   : > { %2055 = vrot.lane.b32.xlu1 %v4895_v60, %s4479_s23  ;;  %2053 = vrot.lane.b32.xlu0 %v4880_v54, %s4479_s23  ;;  %2164 = vst [vmem:[%s6254_s24 + $0x20] sm:$0xff] (%p6661_p9), %v2163_v22   ;;  %2168 = vst [vmem:[%s6254_s24 + $0x28] sm:$0xff] (%p6661_p9), %v2167_v25  }
 0x3e8   : > { %v2419_v22 = vld [vmem:[%s4659_s12 + $0x220] sm:$0xff] (%p6661_p9)   ;;  %v2423_v25 = vld [vmem:[%s4659_s12 + $0x228] sm:$0xff] (%p6661_p9)   ;;  %2668 = vst [vmem:[%s6254_s24 + $0x810] sm:$0xff] (%p6661_p9), %v2667_v56   ;;  %2672 = vst [vmem:[%s6254_s24 + $0x818] sm:$0xff] (%p6661_p9), %v2671_v27  }
 0x3e9   : > { %v1879_v16 = vpop.permute.xlu1 %1878  ;;  %v1877_v3 = vpop.permute.xlu0 %1876  ;;  %2420 = vst [vmem:[%s6254_s24 + $0x420] sm:$0xff] (%p6661_p9), %v2419_v22   ;;  %2424 = vst [vmem:[%s6254_s24 + $0x428] sm:$0xff] (%p6661_p9), %v2423_v25   ;;  %v2675_v22 = vld [vmem:[%s4659_s12 + $0x420] sm:$0xff] (%p6661_p9)   ;;  %v2679_v25 = vld [vmem:[%s4659_s12 + $0x428] sm:$0xff] (%p6661_p9)  }
 0x3ea   : > { %4148 = vst.msk [vmem:[%s4659_s12 + $0x51c] sm:$0xf] %vm670_vm1, %v1879_v16  ;;  %4147 = vst.msk [vmem:[%s4659_s12 + $0x518] sm:$0xf] %vm670_vm1, %v1877_v3  ;;  %v2171_v16 = vld [vmem:[%s4659_s12 + $0x30] sm:$0xff] (%p6661_p9)   ;;  %v2175_v3 = vld [vmem:[%s4659_s12 + $0x38] sm:$0xff] (%p6661_p9)  }
 0x3eb   : > { %2172 = vst [vmem:[%s6254_s24 + $0x30] sm:$0xff] (%p6661_p9), %v2171_v16   ;;  %2176 = vst [vmem:[%s6254_s24 + $0x38] sm:$0xff] (%p6661_p9), %v2175_v3   ;;  %v2427_v16 = vld [vmem:[%s4659_s12 + $0x230] sm:$0xff] (%p6661_p9)   ;;  %v2431_v3 = vld [vmem:[%s4659_s12 + $0x238] sm:$0xff] (%p6661_p9)  }
 0x3ec   : > { %2428 = vst [vmem:[%s6254_s24 + $0x430] sm:$0xff] (%p6661_p9), %v2427_v16   ;;  %2432 = vst [vmem:[%s6254_s24 + $0x438] sm:$0xff] (%p6661_p9), %v2431_v3   ;;  %v2683_v16 = vld [vmem:[%s4659_s12 + $0x430] sm:$0xff] (%p6661_p9)   ;;  %v2687_v3 = vld [vmem:[%s4659_s12 + $0x438] sm:$0xff] (%p6661_p9)  }
 0x3ed   : > { %v1883_v57 = vpop.permute.xlu1 %1882  ;;  %v1881_v15 = vpop.permute.xlu0 %1880  ;;  %2676 = vst [vmem:[%s6254_s24 + $0x820] sm:$0xff] (%p6661_p9), %v2675_v22   ;;  %2680 = vst [vmem:[%s6254_s24 + $0x828] sm:$0xff] (%p6661_p9), %v2679_v25  }
 0x3ee   : > { %4150 = vst.msk [vmem:[%s4659_s12 + $0x524] sm:$0xf] %vm670_vm1, %v1883_v57  ;;  %4149 = vst.msk [vmem:[%s4659_s12 + $0x520] sm:$0xf] %vm670_vm1, %v1881_v15  ;;  %v2179_v57 = vld [vmem:[%s4659_s12 + $0x40] sm:$0xff] (%p6661_p9)   ;;  %v2183_v15 = vld [vmem:[%s4659_s12 + $0x48] sm:$0xff] (%p6661_p9)  }
 0x3ef   : > { %2180 = vst [vmem:[%s6254_s24 + $0x40] sm:$0xff] (%p6661_p9), %v2179_v57   ;;  %2184 = vst [vmem:[%s6254_s24 + $0x48] sm:$0xff] (%p6661_p9), %v2183_v15   ;;  %v2435_v57 = vld [vmem:[%s4659_s12 + $0x240] sm:$0xff] (%p6661_p9)   ;;  %v2439_v15 = vld [vmem:[%s4659_s12 + $0x248] sm:$0xff] (%p6661_p9)  }
 0x3f0   : > { %2436 = vst [vmem:[%s6254_s24 + $0x440] sm:$0xff] (%p6661_p9), %v2435_v57   ;;  %2440 = vst [vmem:[%s6254_s24 + $0x448] sm:$0xff] (%p6661_p9), %v2439_v15   ;;  %v2691_v57 = vld [vmem:[%s4659_s12 + $0x440] sm:$0xff] (%p6661_p9)   ;;  %v2695_v15 = vld [vmem:[%s4659_s12 + $0x448] sm:$0xff] (%p6661_p9)  }
 0x3f1   : > { %v1887_v60 = vpop.permute.xlu1 %1886  ;;  %v1885_v17 = vpop.permute.xlu0 %1884  ;;  %2684 = vst [vmem:[%s6254_s24 + $0x830] sm:$0xff] (%p6661_p9), %v2683_v16   ;;  %2688 = vst [vmem:[%s6254_s24 + $0x838] sm:$0xff] (%p6661_p9), %v2687_v3  }
 0x3f2   : > { %4152 = vst.msk [vmem:[%s4659_s12 + $0x52c] sm:$0xf] %vm670_vm1, %v1887_v60  ;;  %4151 = vst.msk [vmem:[%s4659_s12 + $0x528] sm:$0xf] %vm670_vm1, %v1885_v17  ;;  %v2187_v60 = vld [vmem:[%s4659_s12 + $0x50] sm:$0xff] (%p6661_p9)   ;;  %v2191_v17 = vld [vmem:[%s4659_s12 + $0x58] sm:$0xff] (%p6661_p9)  }
 0x3f3   : > { %2188 = vst [vmem:[%s6254_s24 + $0x50] sm:$0xff] (%p6661_p9), %v2187_v60   ;;  %2192 = vst [vmem:[%s6254_s24 + $0x58] sm:$0xff] (%p6661_p9), %v2191_v17   ;;  %v2443_v60 = vld [vmem:[%s4659_s12 + $0x250] sm:$0xff] (%p6661_p9)   ;;  %v2447_v17 = vld [vmem:[%s4659_s12 + $0x258] sm:$0xff] (%p6661_p9)  }
 0x3f4   : > { %2444 = vst [vmem:[%s6254_s24 + $0x450] sm:$0xff] (%p6661_p9), %v2443_v60   ;;  %2448 = vst [vmem:[%s6254_s24 + $0x458] sm:$0xff] (%p6661_p9), %v2447_v17   ;;  %v2699_v60 = vld [vmem:[%s4659_s12 + $0x450] sm:$0xff] (%p6661_p9)   ;;  %v2703_v17 = vld [vmem:[%s4659_s12 + $0x458] sm:$0xff] (%p6661_p9)  }
 0x3f5   : > { %v1891_v54 = vpop.permute.xlu1 %1890  ;;  %v1889_v19 = vpop.permute.xlu0 %1888  ;;  %2692 = vst [vmem:[%s6254_s24 + $0x840] sm:$0xff] (%p6661_p9), %v2691_v57   ;;  %2696 = vst [vmem:[%s6254_s24 + $0x848] sm:$0xff] (%p6661_p9), %v2695_v15  }
 0x3f6   : > { %4154 = vst.msk [vmem:[%s4659_s12 + $0x534] sm:$0xf] %vm670_vm1, %v1891_v54  ;;  %4153 = vst.msk [vmem:[%s4659_s12 + $0x530] sm:$0xf] %vm670_vm1, %v1889_v19  ;;  %v2195_v54 = vld [vmem:[%s4659_s12 + $0x60] sm:$0xff] (%p6661_p9)   ;;  %v2199_v19 = vld [vmem:[%s4659_s12 + $0x68] sm:$0xff] (%p6661_p9)  }
 0x3f7   : > { %2196 = vst [vmem:[%s6254_s24 + $0x60] sm:$0xff] (%p6661_p9), %v2195_v54   ;;  %2200 = vst [vmem:[%s6254_s24 + $0x68] sm:$0xff] (%p6661_p9), %v2199_v19   ;;  %v2451_v54 = vld [vmem:[%s4659_s12 + $0x260] sm:$0xff] (%p6661_p9)   ;;  %v2455_v19 = vld [vmem:[%s4659_s12 + $0x268] sm:$0xff] (%p6661_p9)  }
 0x3f8   : > { %2452 = vst [vmem:[%s6254_s24 + $0x460] sm:$0xff] (%p6661_p9), %v2451_v54   ;;  %2456 = vst [vmem:[%s6254_s24 + $0x468] sm:$0xff] (%p6661_p9), %v2455_v19   ;;  %v2707_v54 = vld [vmem:[%s4659_s12 + $0x460] sm:$0xff] (%p6661_p9)   ;;  %v2711_v19 = vld [vmem:[%s4659_s12 + $0x468] sm:$0xff] (%p6661_p9)  }
 0x3f9   : > { %v1895_v21 = vpop.permute.xlu1 %1894  ;;  %v1893_v23 = vpop.permute.xlu0 %1892  ;;  %2700 = vst [vmem:[%s6254_s24 + $0x850] sm:$0xff] (%p6661_p9), %v2699_v60   ;;  %2704 = vst [vmem:[%s6254_s24 + $0x858] sm:$0xff] (%p6661_p9), %v2703_v17  }
 0x3fa   : > { %4156 = vst.msk [vmem:[%s4659_s12 + $0x53c] sm:$0xf] %vm670_vm1, %v1895_v21  ;;  %4155 = vst.msk [vmem:[%s4659_s12 + $0x538] sm:$0xf] %vm670_vm1, %v1893_v23  ;;  %v2203_v21 = vld [vmem:[%s4659_s12 + $0x70] sm:$0xff] (%p6661_p9)   ;;  %v2207_v23 = vld [vmem:[%s4659_s12 + $0x78] sm:$0xff] (%p6661_p9)  }
 0x3fb   : > { %2204 = vst [vmem:[%s6254_s24 + $0x70] sm:$0xff] (%p6661_p9), %v2203_v21   ;;  %2208 = vst [vmem:[%s6254_s24 + $0x78] sm:$0xff] (%p6661_p9), %v2207_v23   ;;  %v2459_v21 = vld [vmem:[%s4659_s12 + $0x270] sm:$0xff] (%p6661_p9)   ;;  %v2463_v23 = vld [vmem:[%s4659_s12 + $0x278] sm:$0xff] (%p6661_p9)  }
 0x3fc   : > { %2460 = vst [vmem:[%s6254_s24 + $0x470] sm:$0xff] (%p6661_p9), %v2459_v21   ;;  %2464 = vst [vmem:[%s6254_s24 + $0x478] sm:$0xff] (%p6661_p9), %v2463_v23   ;;  %v2715_v21 = vld [vmem:[%s4659_s12 + $0x470] sm:$0xff] (%p6661_p9)   ;;  %v2719_v23 = vld [vmem:[%s4659_s12 + $0x478] sm:$0xff] (%p6661_p9)  }
 0x3fd   : > { %v1899_v28 = vpop.permute.xlu1 %1898  ;;  %v1897_v31 = vpop.permute.xlu0 %1896  ;;  %2708 = vst [vmem:[%s6254_s24 + $0x860] sm:$0xff] (%p6661_p9), %v2707_v54   ;;  %2712 = vst [vmem:[%s6254_s24 + $0x868] sm:$0xff] (%p6661_p9), %v2711_v19  }
 0x3fe   : > { %4158 = vst.msk [vmem:[%s4659_s12 + $0x544] sm:$0xf] %vm670_vm1, %v1899_v28  ;;  %4157 = vst.msk [vmem:[%s4659_s12 + $0x540] sm:$0xf] %vm670_vm1, %v1897_v31  ;;  %v2211_v28 = vld [vmem:[%s4659_s12 + $0x80] sm:$0xff] (%p6661_p9)   ;;  %v2215_v31 = vld [vmem:[%s4659_s12 + $0x88] sm:$0xff] (%p6661_p9)  }
 0x3ff   : > { %2212 = vst [vmem:[%s6254_s24 + $0x100] sm:$0xff] (%p6661_p9), %v2211_v28   ;;  %2216 = vst [vmem:[%s6254_s24 + $0x108] sm:$0xff] (%p6661_p9), %v2215_v31   ;;  %v2467_v28 = vld [vmem:[%s4659_s12 + $0x280] sm:$0xff] (%p6661_p9)   ;;  %v2471_v31 = vld [vmem:[%s4659_s12 + $0x288] sm:$0xff] (%p6661_p9)  }
 0x400   : > { %2468 = vst [vmem:[%s6254_s24 + $0x500] sm:$0xff] (%p6661_p9), %v2467_v28   ;;  %2472 = vst [vmem:[%s6254_s24 + $0x508] sm:$0xff] (%p6661_p9), %v2471_v31   ;;  %v2723_v28 = vld [vmem:[%s4659_s12 + $0x480] sm:$0xff] (%p6661_p9)   ;;  %v2727_v31 = vld [vmem:[%s4659_s12 + $0x488] sm:$0xff] (%p6661_p9)  }
 0x401   : > { %v1903_v32 = vpop.permute.xlu1 %1902  ;;  %v1901_v33 = vpop.permute.xlu0 %1900  ;;  %2716 = vst [vmem:[%s6254_s24 + $0x870] sm:$0xff] (%p6661_p9), %v2715_v21   ;;  %2720 = vst [vmem:[%s6254_s24 + $0x878] sm:$0xff] (%p6661_p9), %v2719_v23  }
 0x402   : > { %4160 = vst.msk [vmem:[%s4659_s12 + $0x54c] sm:$0xf] %vm670_vm1, %v1903_v32  ;;  %4159 = vst.msk [vmem:[%s4659_s12 + $0x548] sm:$0xf] %vm670_vm1, %v1901_v33  ;;  %v2219_v32 = vld [vmem:[%s4659_s12 + $0x90] sm:$0xff] (%p6661_p9)   ;;  %v2223_v33 = vld [vmem:[%s4659_s12 + $0x98] sm:$0xff] (%p6661_p9)  }
 0x403   : > { %2220 = vst [vmem:[%s6254_s24 + $0x110] sm:$0xff] (%p6661_p9), %v2219_v32   ;;  %2224 = vst [vmem:[%s6254_s24 + $0x118] sm:$0xff] (%p6661_p9), %v2223_v33   ;;  %v2475_v32 = vld [vmem:[%s4659_s12 + $0x290] sm:$0xff] (%p6661_p9)   ;;  %v2479_v33 = vld [vmem:[%s4659_s12 + $0x298] sm:$0xff] (%p6661_p9)  }
 0x404   : > { %2476 = vst [vmem:[%s6254_s24 + $0x510] sm:$0xff] (%p6661_p9), %v2475_v32   ;;  %2480 = vst [vmem:[%s6254_s24 + $0x518] sm:$0xff] (%p6661_p9), %v2479_v33   ;;  %v2731_v32 = vld [vmem:[%s4659_s12 + $0x490] sm:$0xff] (%p6661_p9)   ;;  %v2735_v33 = vld [vmem:[%s4659_s12 + $0x498] sm:$0xff] (%p6661_p9)  }
 0x405   : > { %v1907_v34 = vpop.permute.xlu1 %1906  ;;  %v1905_v38 = vpop.permute.xlu0 %1904  ;;  %2724 = vst [vmem:[%s6254_s24 + $0x900] sm:$0xff] (%p6661_p9), %v2723_v28   ;;  %2728 = vst [vmem:[%s6254_s24 + $0x908] sm:$0xff] (%p6661_p9), %v2727_v31  }
 0x406   : > { %4162 = vst.msk [vmem:[%s4659_s12 + $0x554] sm:$0xf] %vm670_vm1, %v1907_v34  ;;  %4161 = vst.msk [vmem:[%s4659_s12 + $0x550] sm:$0xf] %vm670_vm1, %v1905_v38  ;;  %v2227_v34 = vld [vmem:[%s4659_s12 + $0xa0] sm:$0xff] (%p6661_p9)   ;;  %v2231_v38 = vld [vmem:[%s4659_s12 + $0xa8] sm:$0xff] (%p6661_p9)  }
 0x407   : > { %2228 = vst [vmem:[%s6254_s24 + $0x120] sm:$0xff] (%p6661_p9), %v2227_v34   ;;  %2232 = vst [vmem:[%s6254_s24 + $0x128] sm:$0xff] (%p6661_p9), %v2231_v38   ;;  %v2483_v34 = vld [vmem:[%s4659_s12 + $0x2a0] sm:$0xff] (%p6661_p9)   ;;  %v2487_v38 = vld [vmem:[%s4659_s12 + $0x2a8] sm:$0xff] (%p6661_p9)  }
 0x408   : > { %2484 = vst [vmem:[%s6254_s24 + $0x520] sm:$0xff] (%p6661_p9), %v2483_v34   ;;  %2488 = vst [vmem:[%s6254_s24 + $0x528] sm:$0xff] (%p6661_p9), %v2487_v38   ;;  %v2739_v34 = vld [vmem:[%s4659_s12 + $0x4a0] sm:$0xff] (%p6661_p9)   ;;  %v2743_v38 = vld [vmem:[%s4659_s12 + $0x4a8] sm:$0xff] (%p6661_p9)  }
 0x409   : > { %v1911_v44 = vpop.permute.xlu1 %1910  ;;  %v1909_v45 = vpop.permute.xlu0 %1908  ;;  %2732 = vst [vmem:[%s6254_s24 + $0x910] sm:$0xff] (%p6661_p9), %v2731_v32   ;;  %2736 = vst [vmem:[%s6254_s24 + $0x918] sm:$0xff] (%p6661_p9), %v2735_v33  }
 0x40a   : > { %4164 = vst.msk [vmem:[%s4659_s12 + $0x55c] sm:$0xf] %vm670_vm1, %v1911_v44  ;;  %4163 = vst.msk [vmem:[%s4659_s12 + $0x558] sm:$0xf] %vm670_vm1, %v1909_v45  ;;  %v2235_v44 = vld [vmem:[%s4659_s12 + $0xb0] sm:$0xff] (%p6661_p9)   ;;  %v2239_v45 = vld [vmem:[%s4659_s12 + $0xb8] sm:$0xff] (%p6661_p9)  }
 0x40b   : > { %2236 = vst [vmem:[%s6254_s24 + $0x130] sm:$0xff] (%p6661_p9), %v2235_v44   ;;  %2240 = vst [vmem:[%s6254_s24 + $0x138] sm:$0xff] (%p6661_p9), %v2239_v45   ;;  %v2491_v44 = vld [vmem:[%s4659_s12 + $0x2b0] sm:$0xff] (%p6661_p9)   ;;  %v2495_v45 = vld [vmem:[%s4659_s12 + $0x2b8] sm:$0xff] (%p6661_p9)  }
 0x40c   : > { %2492 = vst [vmem:[%s6254_s24 + $0x530] sm:$0xff] (%p6661_p9), %v2491_v44   ;;  %2496 = vst [vmem:[%s6254_s24 + $0x538] sm:$0xff] (%p6661_p9), %v2495_v45   ;;  %v2747_v44 = vld [vmem:[%s4659_s12 + $0x4b0] sm:$0xff] (%p6661_p9)   ;;  %v2751_v45 = vld [vmem:[%s4659_s12 + $0x4b8] sm:$0xff] (%p6661_p9)  }
 0x40d   : > { %v1915_v47 = vpop.permute.xlu1 %1914  ;;  %v1913_v48 = vpop.permute.xlu0 %1912  ;;  %2740 = vst [vmem:[%s6254_s24 + $0x920] sm:$0xff] (%p6661_p9), %v2739_v34   ;;  %2744 = vst [vmem:[%s6254_s24 + $0x928] sm:$0xff] (%p6661_p9), %v2743_v38  }
 0x40e   : > { %4166 = vst.msk [vmem:[%s4659_s12 + $0x564] sm:$0xf] %vm670_vm1, %v1915_v47  ;;  %4165 = vst.msk [vmem:[%s4659_s12 + $0x560] sm:$0xf] %vm670_vm1, %v1913_v48  ;;  %v2243_v47 = vld [vmem:[%s4659_s12 + $0xc0] sm:$0xff] (%p6661_p9)   ;;  %v2247_v48 = vld [vmem:[%s4659_s12 + $0xc8] sm:$0xff] (%p6661_p9)  }
 0x40f   : > { %2244 = vst [vmem:[%s6254_s24 + $0x140] sm:$0xff] (%p6661_p9), %v2243_v47   ;;  %2248 = vst [vmem:[%s6254_s24 + $0x148] sm:$0xff] (%p6661_p9), %v2247_v48   ;;  %v2499_v47 = vld [vmem:[%s4659_s12 + $0x2c0] sm:$0xff] (%p6661_p9)   ;;  %v2503_v48 = vld [vmem:[%s4659_s12 + $0x2c8] sm:$0xff] (%p6661_p9)  }
 0x410   : > { %2500 = vst [vmem:[%s6254_s24 + $0x540] sm:$0xff] (%p6661_p9), %v2499_v47   ;;  %2504 = vst [vmem:[%s6254_s24 + $0x548] sm:$0xff] (%p6661_p9), %v2503_v48   ;;  %v2755_v47 = vld [vmem:[%s4659_s12 + $0x4c0] sm:$0xff] (%p6661_p9)   ;;  %v2759_v48 = vld [vmem:[%s4659_s12 + $0x4c8] sm:$0xff] (%p6661_p9)  }
 0x411   : > { %v1919_v49 = vpop.permute.xlu1 %1918  ;;  %v1917_v50 = vpop.permute.xlu0 %1916  ;;  %2748 = vst [vmem:[%s6254_s24 + $0x930] sm:$0xff] (%p6661_p9), %v2747_v44   ;;  %2752 = vst [vmem:[%s6254_s24 + $0x938] sm:$0xff] (%p6661_p9), %v2751_v45  }
 0x412   : > { %4168 = vst.msk [vmem:[%s4659_s12 + $0x56c] sm:$0xf] %vm670_vm1, %v1919_v49  ;;  %4167 = vst.msk [vmem:[%s4659_s12 + $0x568] sm:$0xf] %vm670_vm1, %v1917_v50  ;;  %v2251_v49 = vld [vmem:[%s4659_s12 + $0xd0] sm:$0xff] (%p6661_p9)   ;;  %v2255_v50 = vld [vmem:[%s4659_s12 + $0xd8] sm:$0xff] (%p6661_p9)  }
 0x413   : > { %2252 = vst [vmem:[%s6254_s24 + $0x150] sm:$0xff] (%p6661_p9), %v2251_v49   ;;  %2256 = vst [vmem:[%s6254_s24 + $0x158] sm:$0xff] (%p6661_p9), %v2255_v50   ;;  %v2507_v49 = vld [vmem:[%s4659_s12 + $0x2d0] sm:$0xff] (%p6661_p9)   ;;  %v2511_v50 = vld [vmem:[%s4659_s12 + $0x2d8] sm:$0xff] (%p6661_p9)  }
 0x414   : > { %2508 = vst [vmem:[%s6254_s24 + $0x550] sm:$0xff] (%p6661_p9), %v2507_v49   ;;  %2512 = vst [vmem:[%s6254_s24 + $0x558] sm:$0xff] (%p6661_p9), %v2511_v50   ;;  %v2763_v49 = vld [vmem:[%s4659_s12 + $0x4d0] sm:$0xff] (%p6661_p9)   ;;  %v2767_v50 = vld [vmem:[%s4659_s12 + $0x4d8] sm:$0xff] (%p6661_p9)  }
 0x415   : > { %v1923_v51 = vpop.permute.xlu1 %1922  ;;  %v1921_v55 = vpop.permute.xlu0 %1920  ;;  %2756 = vst [vmem:[%s6254_s24 + $0x940] sm:$0xff] (%p6661_p9), %v2755_v47   ;;  %2760 = vst [vmem:[%s6254_s24 + $0x948] sm:$0xff] (%p6661_p9), %v2759_v48  }
 0x416   : > { %4170 = vst.msk [vmem:[%s4659_s12 + $0x574] sm:$0xf] %vm670_vm1, %v1923_v51  ;;  %4169 = vst.msk [vmem:[%s4659_s12 + $0x570] sm:$0xf] %vm670_vm1, %v1921_v55  ;;  %v2259_v51 = vld [vmem:[%s4659_s12 + $0xe0] sm:$0xff] (%p6661_p9)   ;;  %v2263_v55 = vld [vmem:[%s4659_s12 + $0xe8] sm:$0xff] (%p6661_p9)  }
 0x417   : > { %2260 = vst [vmem:[%s6254_s24 + $0x160] sm:$0xff] (%p6661_p9), %v2259_v51   ;;  %2264 = vst [vmem:[%s6254_s24 + $0x168] sm:$0xff] (%p6661_p9), %v2263_v55   ;;  %v2515_v51 = vld [vmem:[%s4659_s12 + $0x2e0] sm:$0xff] (%p6661_p9)   ;;  %v2519_v55 = vld [vmem:[%s4659_s12 + $0x2e8] sm:$0xff] (%p6661_p9)  }
 0x418   : > { %2516 = vst [vmem:[%s6254_s24 + $0x560] sm:$0xff] (%p6661_p9), %v2515_v51   ;;  %2520 = vst [vmem:[%s6254_s24 + $0x568] sm:$0xff] (%p6661_p9), %v2519_v55   ;;  %v2771_v51 = vld [vmem:[%s4659_s12 + $0x4e0] sm:$0xff] (%p6661_p9)   ;;  %v2775_v55 = vld [vmem:[%s4659_s12 + $0x4e8] sm:$0xff] (%p6661_p9)  }
 0x419   : > { %v1927_v58 = vpop.permute.xlu1 %1926  ;;  %v1925_v62 = vpop.permute.xlu0 %1924  ;;  %2764 = vst [vmem:[%s6254_s24 + $0x950] sm:$0xff] (%p6661_p9), %v2763_v49   ;;  %2768 = vst [vmem:[%s6254_s24 + $0x958] sm:$0xff] (%p6661_p9), %v2767_v50  }
 0x41a   : > { %4172 = vst.msk [vmem:[%s4659_s12 + $0x57c] sm:$0xf] %vm670_vm1, %v1927_v58  ;;  %4171 = vst.msk [vmem:[%s4659_s12 + $0x578] sm:$0xf] %vm670_vm1, %v1925_v62  ;;  %v2267_v58 = vld [vmem:[%s4659_s12 + $0xf0] sm:$0xff] (%p6661_p9)   ;;  %v2271_v62 = vld [vmem:[%s4659_s12 + $0xf8] sm:$0xff] (%p6661_p9)  }
 0x41b   : > { %2268 = vst [vmem:[%s6254_s24 + $0x170] sm:$0xff] (%p6661_p9), %v2267_v58   ;;  %2272 = vst [vmem:[%s6254_s24 + $0x178] sm:$0xff] (%p6661_p9), %v2271_v62   ;;  %v2523_v58 = vld [vmem:[%s4659_s12 + $0x2f0] sm:$0xff] (%p6661_p9)   ;;  %v2527_v62 = vld [vmem:[%s4659_s12 + $0x2f8] sm:$0xff] (%p6661_p9)  }
 0x41c   : > { %2524 = vst [vmem:[%s6254_s24 + $0x570] sm:$0xff] (%p6661_p9), %v2523_v58   ;;  %2528 = vst [vmem:[%s6254_s24 + $0x578] sm:$0xff] (%p6661_p9), %v2527_v62   ;;  %v2779_v58 = vld [vmem:[%s4659_s12 + $0x4f0] sm:$0xff] (%p6661_p9)   ;;  %v2783_v62 = vld [vmem:[%s4659_s12 + $0x4f8] sm:$0xff] (%p6661_p9)  }
 0x41d   : > { %v1996_v18 = vpop.permute.xlu1 %1995  ;;  %v1994_v4 = vpop.permute.xlu0 %1993  ;;  %2772 = vst [vmem:[%s6254_s24 + $0x960] sm:$0xff] (%p6661_p9), %v2771_v51   ;;  %2776 = vst [vmem:[%s6254_s24 + $0x968] sm:$0xff] (%p6661_p9), %v2775_v55  }
 0x41e   : > { %4174 = vst.msk [vmem:[%s4659_s12 + $0x584] sm:$0xf] %vm670_vm1, %v1996_v18  ;;  %4173 = vst.msk [vmem:[%s4659_s12 + $0x580] sm:$0xf] %vm670_vm1, %v1994_v4  ;;  %v2275_v18 = vld [vmem:[%s4659_s12 + $0x100] sm:$0xff] (%p6661_p9)   ;;  %v2279_v4 = vld [vmem:[%s4659_s12 + $0x108] sm:$0xff] (%p6661_p9)  }
 0x41f   : > { %2276 = vst [vmem:[%s6254_s24 + $0x200] sm:$0xff] (%p6661_p9), %v2275_v18   ;;  %2280 = vst [vmem:[%s6254_s24 + $0x208] sm:$0xff] (%p6661_p9), %v2279_v4   ;;  %v2531_v18 = vld [vmem:[%s4659_s12 + $0x300] sm:$0xff] (%p6661_p9)   ;;  %v2535_v4 = vld [vmem:[%s4659_s12 + $0x308] sm:$0xff] (%p6661_p9)  }
 0x420   : > { %2532 = vst [vmem:[%s6254_s24 + $0x600] sm:$0xff] (%p6661_p9), %v2531_v18   ;;  %2536 = vst [vmem:[%s6254_s24 + $0x608] sm:$0xff] (%p6661_p9), %v2535_v4   ;;  %v2787_v18 = vld [vmem:[%s4659_s12 + $0x500] sm:$0xff] (%p6661_p9)   ;;  %v2791_v4 = vld [vmem:[%s4659_s12 + $0x508] sm:$0xff] (%p6661_p9)  }
 0x421   : > { %v2000_v5 = vpop.permute.xlu1 %1999  ;;  %v1998_v6 = vpop.permute.xlu0 %1997  ;;  %2780 = vst [vmem:[%s6254_s24 + $0x970] sm:$0xff] (%p6661_p9), %v2779_v58   ;;  %2784 = vst [vmem:[%s6254_s24 + $0x978] sm:$0xff] (%p6661_p9), %v2783_v62  }
 0x422   : > { %4176 = vst.msk [vmem:[%s4659_s12 + $0x58c] sm:$0xf] %vm670_vm1, %v2000_v5  ;;  %4175 = vst.msk [vmem:[%s4659_s12 + $0x588] sm:$0xf] %vm670_vm1, %v1998_v6  ;;  %v2283_v5 = vld [vmem:[%s4659_s12 + $0x110] sm:$0xff] (%p6661_p9)   ;;  %v2287_v6 = vld [vmem:[%s4659_s12 + $0x118] sm:$0xff] (%p6661_p9)  }
 0x423   : > { %2284 = vst [vmem:[%s6254_s24 + $0x210] sm:$0xff] (%p6661_p9), %v2283_v5   ;;  %2288 = vst [vmem:[%s6254_s24 + $0x218] sm:$0xff] (%p6661_p9), %v2287_v6   ;;  %v2539_v5 = vld [vmem:[%s4659_s12 + $0x310] sm:$0xff] (%p6661_p9)   ;;  %v2543_v6 = vld [vmem:[%s4659_s12 + $0x318] sm:$0xff] (%p6661_p9)  }
 0x424   : > { %2540 = vst [vmem:[%s6254_s24 + $0x610] sm:$0xff] (%p6661_p9), %v2539_v5   ;;  %2544 = vst [vmem:[%s6254_s24 + $0x618] sm:$0xff] (%p6661_p9), %v2543_v6   ;;  %v2795_v5 = vld [vmem:[%s4659_s12 + $0x510] sm:$0xff] (%p6661_p9)   ;;  %v2799_v6 = vld [vmem:[%s4659_s12 + $0x518] sm:$0xff] (%p6661_p9)  }
 0x425   : > { %v2004_v7 = vpop.permute.xlu1 %2003  ;;  %v2002_v8 = vpop.permute.xlu0 %2001  ;;  %2788 = vst [vmem:[%s6254_s24 + $0xa00] sm:$0xff] (%p6661_p9), %v2787_v18   ;;  %2792 = vst [vmem:[%s6254_s24 + $0xa08] sm:$0xff] (%p6661_p9), %v2791_v4  }
 0x426   : > { %4178 = vst.msk [vmem:[%s4659_s12 + $0x594] sm:$0xf] %vm670_vm1, %v2004_v7  ;;  %4177 = vst.msk [vmem:[%s4659_s12 + $0x590] sm:$0xf] %vm670_vm1, %v2002_v8  ;;  %v2291_v7 = vld [vmem:[%s4659_s12 + $0x120] sm:$0xff] (%p6661_p9)   ;;  %v2295_v8 = vld [vmem:[%s4659_s12 + $0x128] sm:$0xff] (%p6661_p9)  }
 0x427   : > { %2292 = vst [vmem:[%s6254_s24 + $0x220] sm:$0xff] (%p6661_p9), %v2291_v7   ;;  %2296 = vst [vmem:[%s6254_s24 + $0x228] sm:$0xff] (%p6661_p9), %v2295_v8   ;;  %v2547_v7 = vld [vmem:[%s4659_s12 + $0x320] sm:$0xff] (%p6661_p9)   ;;  %v2551_v8 = vld [vmem:[%s4659_s12 + $0x328] sm:$0xff] (%p6661_p9)  }
 0x428   : > { %2548 = vst [vmem:[%s6254_s24 + $0x620] sm:$0xff] (%p6661_p9), %v2547_v7   ;;  %2552 = vst [vmem:[%s6254_s24 + $0x628] sm:$0xff] (%p6661_p9), %v2551_v8   ;;  %v2803_v7 = vld [vmem:[%s4659_s12 + $0x520] sm:$0xff] (%p6661_p9)   ;;  %v2807_v8 = vld [vmem:[%s4659_s12 + $0x528] sm:$0xff] (%p6661_p9)  }
 0x429   : > { %v2008_v9 = vpop.permute.xlu1 %2007  ;;  %v2006_v10 = vpop.permute.xlu0 %2005  ;;  %2796 = vst [vmem:[%s6254_s24 + $0xa10] sm:$0xff] (%p6661_p9), %v2795_v5   ;;  %2800 = vst [vmem:[%s6254_s24 + $0xa18] sm:$0xff] (%p6661_p9), %v2799_v6  }
 0x42a   : > { %4180 = vst.msk [vmem:[%s4659_s12 + $0x59c] sm:$0xf] %vm670_vm1, %v2008_v9  ;;  %4179 = vst.msk [vmem:[%s4659_s12 + $0x598] sm:$0xf] %vm670_vm1, %v2006_v10  ;;  %v2299_v9 = vld [vmem:[%s4659_s12 + $0x130] sm:$0xff] (%p6661_p9)   ;;  %v2303_v10 = vld [vmem:[%s4659_s12 + $0x138] sm:$0xff] (%p6661_p9)  }
 0x42b   : > { %2300 = vst [vmem:[%s6254_s24 + $0x230] sm:$0xff] (%p6661_p9), %v2299_v9   ;;  %2304 = vst [vmem:[%s6254_s24 + $0x238] sm:$0xff] (%p6661_p9), %v2303_v10   ;;  %v2555_v9 = vld [vmem:[%s4659_s12 + $0x330] sm:$0xff] (%p6661_p9)   ;;  %v2559_v10 = vld [vmem:[%s4659_s12 + $0x338] sm:$0xff] (%p6661_p9)  }
 0x42c   : > { %2556 = vst [vmem:[%s6254_s24 + $0x630] sm:$0xff] (%p6661_p9), %v2555_v9   ;;  %2560 = vst [vmem:[%s6254_s24 + $0x638] sm:$0xff] (%p6661_p9), %v2559_v10   ;;  %v2811_v9 = vld [vmem:[%s4659_s12 + $0x530] sm:$0xff] (%p6661_p9)   ;;  %v2815_v10 = vld [vmem:[%s4659_s12 + $0x538] sm:$0xff] (%p6661_p9)  }
 0x42d   : > { %v2012_v11 = vpop.permute.xlu1 %2011  ;;  %v2010_v12 = vpop.permute.xlu0 %2009  ;;  %2804 = vst [vmem:[%s6254_s24 + $0xa20] sm:$0xff] (%p6661_p9), %v2803_v7   ;;  %2808 = vst [vmem:[%s6254_s24 + $0xa28] sm:$0xff] (%p6661_p9), %v2807_v8  }
 0x42e   : > { %4182 = vst.msk [vmem:[%s4659_s12 + $0x5a4] sm:$0xf] %vm670_vm1, %v2012_v11  ;;  %4181 = vst.msk [vmem:[%s4659_s12 + $0x5a0] sm:$0xf] %vm670_vm1, %v2010_v12  ;;  %v2307_v11 = vld [vmem:[%s4659_s12 + $0x140] sm:$0xff] (%p6661_p9)   ;;  %v2311_v12 = vld [vmem:[%s4659_s12 + $0x148] sm:$0xff] (%p6661_p9)  }
 0x42f   : > { %2308 = vst [vmem:[%s6254_s24 + $0x240] sm:$0xff] (%p6661_p9), %v2307_v11   ;;  %2312 = vst [vmem:[%s6254_s24 + $0x248] sm:$0xff] (%p6661_p9), %v2311_v12   ;;  %v2563_v11 = vld [vmem:[%s4659_s12 + $0x340] sm:$0xff] (%p6661_p9)   ;;  %v2567_v12 = vld [vmem:[%s4659_s12 + $0x348] sm:$0xff] (%p6661_p9)  }
 0x430   : > { %2564 = vst [vmem:[%s6254_s24 + $0x640] sm:$0xff] (%p6661_p9), %v2563_v11   ;;  %2568 = vst [vmem:[%s6254_s24 + $0x648] sm:$0xff] (%p6661_p9), %v2567_v12   ;;  %v2819_v11 = vld [vmem:[%s4659_s12 + $0x540] sm:$0xff] (%p6661_p9)   ;;  %v2823_v12 = vld [vmem:[%s4659_s12 + $0x548] sm:$0xff] (%p6661_p9)  }
 0x431   : > { %v2016_v41 = vpop.permute.xlu1 %2015  ;;  %v2014_v14 = vpop.permute.xlu0 %2013  ;;  %2812 = vst [vmem:[%s6254_s24 + $0xa30] sm:$0xff] (%p6661_p9), %v2811_v9   ;;  %2816 = vst [vmem:[%s6254_s24 + $0xa38] sm:$0xff] (%p6661_p9), %v2815_v10  }
 0x432   : > { %4184 = vst.msk [vmem:[%s4659_s12 + $0x5ac] sm:$0xf] %vm670_vm1, %v2016_v41  ;;  %4183 = vst.msk [vmem:[%s4659_s12 + $0x5a8] sm:$0xf] %vm670_vm1, %v2014_v14  ;;  %v2315_v41 = vld [vmem:[%s4659_s12 + $0x150] sm:$0xff] (%p6661_p9)   ;;  %v2319_v14 = vld [vmem:[%s4659_s12 + $0x158] sm:$0xff] (%p6661_p9)  }
 0x433   : > { %2316 = vst [vmem:[%s6254_s24 + $0x250] sm:$0xff] (%p6661_p9), %v2315_v41   ;;  %2320 = vst [vmem:[%s6254_s24 + $0x258] sm:$0xff] (%p6661_p9), %v2319_v14   ;;  %v2571_v41 = vld [vmem:[%s4659_s12 + $0x350] sm:$0xff] (%p6661_p9)   ;;  %v2575_v14 = vld [vmem:[%s4659_s12 + $0x358] sm:$0xff] (%p6661_p9)  }
 0x434   : > { %2572 = vst [vmem:[%s6254_s24 + $0x650] sm:$0xff] (%p6661_p9), %v2571_v41   ;;  %2576 = vst [vmem:[%s6254_s24 + $0x658] sm:$0xff] (%p6661_p9), %v2575_v14   ;;  %v2827_v41 = vld [vmem:[%s4659_s12 + $0x550] sm:$0xff] (%p6661_p9)   ;;  %v2831_v14 = vld [vmem:[%s4659_s12 + $0x558] sm:$0xff] (%p6661_p9)  }
 0x435   : > { %v2020_v35 = vpop.permute.xlu1 %2019  ;;  %v2018_v39 = vpop.permute.xlu0 %2017  ;;  %2820 = vst [vmem:[%s6254_s24 + $0xa40] sm:$0xff] (%p6661_p9), %v2819_v11   ;;  %2824 = vst [vmem:[%s6254_s24 + $0xa48] sm:$0xff] (%p6661_p9), %v2823_v12  }
 0x436   : > { %4186 = vst.msk [vmem:[%s4659_s12 + $0x5b4] sm:$0xf] %vm670_vm1, %v2020_v35  ;;  %4185 = vst.msk [vmem:[%s4659_s12 + $0x5b0] sm:$0xf] %vm670_vm1, %v2018_v39  ;;  %v2323_v35 = vld [vmem:[%s4659_s12 + $0x160] sm:$0xff] (%p6661_p9)   ;;  %v2327_v39 = vld [vmem:[%s4659_s12 + $0x168] sm:$0xff] (%p6661_p9)  }
 0x437   : > { %2324 = vst [vmem:[%s6254_s24 + $0x260] sm:$0xff] (%p6661_p9), %v2323_v35   ;;  %2328 = vst [vmem:[%s6254_s24 + $0x268] sm:$0xff] (%p6661_p9), %v2327_v39   ;;  %v2579_v35 = vld [vmem:[%s4659_s12 + $0x360] sm:$0xff] (%p6661_p9)   ;;  %v2583_v39 = vld [vmem:[%s4659_s12 + $0x368] sm:$0xff] (%p6661_p9)  }
 0x438   : > { %2580 = vst [vmem:[%s6254_s24 + $0x660] sm:$0xff] (%p6661_p9), %v2579_v35   ;;  %2584 = vst [vmem:[%s6254_s24 + $0x668] sm:$0xff] (%p6661_p9), %v2583_v39   ;;  %v2835_v35 = vld [vmem:[%s4659_s12 + $0x560] sm:$0xff] (%p6661_p9)   ;;  %v2839_v39 = vld [vmem:[%s4659_s12 + $0x568] sm:$0xff] (%p6661_p9)  }
 0x439   : > { %v2024_v29 = vpop.permute.xlu1 %2023  ;;  %v2022_v1 = vpop.permute.xlu0 %2021  ;;  %2828 = vst [vmem:[%s6254_s24 + $0xa50] sm:$0xff] (%p6661_p9), %v2827_v41   ;;  %2832 = vst [vmem:[%s6254_s24 + $0xa58] sm:$0xff] (%p6661_p9), %v2831_v14  }
 0x43a   : > { %4188 = vst.msk [vmem:[%s4659_s12 + $0x5bc] sm:$0xf] %vm670_vm1, %v2024_v29  ;;  %4187 = vst.msk [vmem:[%s4659_s12 + $0x5b8] sm:$0xf] %vm670_vm1, %v2022_v1  ;;  %v2331_v29 = vld [vmem:[%s4659_s12 + $0x170] sm:$0xff] (%p6661_p9)   ;;  %v2335_v1 = vld [vmem:[%s4659_s12 + $0x178] sm:$0xff] (%p6661_p9)  }
 0x43b   : > { %2332 = vst [vmem:[%s6254_s24 + $0x270] sm:$0xff] (%p6661_p9), %v2331_v29   ;;  %2336 = vst [vmem:[%s6254_s24 + $0x278] sm:$0xff] (%p6661_p9), %v2335_v1   ;;  %v2587_v29 = vld [vmem:[%s4659_s12 + $0x370] sm:$0xff] (%p6661_p9)   ;;  %v2591_v1 = vld [vmem:[%s4659_s12 + $0x378] sm:$0xff] (%p6661_p9)  }
 0x43c   : > { %2588 = vst [vmem:[%s6254_s24 + $0x670] sm:$0xff] (%p6661_p9), %v2587_v29   ;;  %2592 = vst [vmem:[%s6254_s24 + $0x678] sm:$0xff] (%p6661_p9), %v2591_v1   ;;  %v2843_v29 = vld [vmem:[%s4659_s12 + $0x570] sm:$0xff] (%p6661_p9)   ;;  %v2847_v1 = vld [vmem:[%s4659_s12 + $0x578] sm:$0xff] (%p6661_p9)  }
 0x43d   : > { %v2028_v59 = vpop.permute.xlu1 %2027  ;;  %v2026_v63 = vpop.permute.xlu0 %2025  ;;  %2836 = vst [vmem:[%s6254_s24 + $0xa60] sm:$0xff] (%p6661_p9), %v2835_v35   ;;  %2840 = vst [vmem:[%s6254_s24 + $0xa68] sm:$0xff] (%p6661_p9), %v2839_v39  }
 0x43e   : > { %4190 = vst.msk [vmem:[%s4659_s12 + $0x5c4] sm:$0xf] %vm670_vm1, %v2028_v59  ;;  %4189 = vst.msk [vmem:[%s4659_s12 + $0x5c0] sm:$0xf] %vm670_vm1, %v2026_v63  ;;  %v2339_v59 = vld [vmem:[%s4659_s12 + $0x180] sm:$0xff] (%p6661_p9)   ;;  %v2343_v63 = vld [vmem:[%s4659_s12 + $0x188] sm:$0xff] (%p6661_p9)  }
 0x43f   : > { %2340 = vst [vmem:[%s6254_s24 + $0x300] sm:$0xff] (%p6661_p9), %v2339_v59   ;;  %2344 = vst [vmem:[%s6254_s24 + $0x308] sm:$0xff] (%p6661_p9), %v2343_v63   ;;  %v2595_v59 = vld [vmem:[%s4659_s12 + $0x380] sm:$0xff] (%p6661_p9)   ;;  %v2599_v63 = vld [vmem:[%s4659_s12 + $0x388] sm:$0xff] (%p6661_p9)  }
 0x440   : > { %2596 = vst [vmem:[%s6254_s24 + $0x700] sm:$0xff] (%p6661_p9), %v2595_v59   ;;  %2600 = vst [vmem:[%s6254_s24 + $0x708] sm:$0xff] (%p6661_p9), %v2599_v63   ;;  %v2851_v59 = vld [vmem:[%s4659_s12 + $0x580] sm:$0xff] (%p6661_p9)   ;;  %v2855_v63 = vld [vmem:[%s4659_s12 + $0x588] sm:$0xff] (%p6661_p9)  }
 0x441   : > { %v2032_v53 = vpop.permute.xlu1 %2031  ;;  %v2030_v26 = vpop.permute.xlu0 %2029  ;;  %2844 = vst [vmem:[%s6254_s24 + $0xa70] sm:$0xff] (%p6661_p9), %v2843_v29   ;;  %2848 = vst [vmem:[%s6254_s24 + $0xa78] sm:$0xff] (%p6661_p9), %v2847_v1  }
 0x442   : > { %4192 = vst.msk [vmem:[%s4659_s12 + $0x5cc] sm:$0xf] %vm670_vm1, %v2032_v53  ;;  %4191 = vst.msk [vmem:[%s4659_s12 + $0x5c8] sm:$0xf] %vm670_vm1, %v2030_v26  ;;  %v2347_v53 = vld [vmem:[%s4659_s12 + $0x190] sm:$0xff] (%p6661_p9)   ;;  %v2351_v26 = vld [vmem:[%s4659_s12 + $0x198] sm:$0xff] (%p6661_p9)  }
 0x443   : > { %2348 = vst [vmem:[%s6254_s24 + $0x310] sm:$0xff] (%p6661_p9), %v2347_v53   ;;  %2352 = vst [vmem:[%s6254_s24 + $0x318] sm:$0xff] (%p6661_p9), %v2351_v26   ;;  %v2603_v53 = vld [vmem:[%s4659_s12 + $0x390] sm:$0xff] (%p6661_p9)   ;;  %v2607_v26 = vld [vmem:[%s4659_s12 + $0x398] sm:$0xff] (%p6661_p9)  }
 0x444   : > { %2604 = vst [vmem:[%s6254_s24 + $0x710] sm:$0xff] (%p6661_p9), %v2603_v53   ;;  %2608 = vst [vmem:[%s6254_s24 + $0x718] sm:$0xff] (%p6661_p9), %v2607_v26   ;;  %v2859_v53 = vld [vmem:[%s4659_s12 + $0x590] sm:$0xff] (%p6661_p9)   ;;  %v2863_v26 = vld [vmem:[%s4659_s12 + $0x598] sm:$0xff] (%p6661_p9)  }
 0x445   : > { %v2036_v20 = vpop.permute.xlu1 %2035  ;;  %v2034_v24 = vpop.permute.xlu0 %2033  ;;  %2852 = vst [vmem:[%s6254_s24 + $0xb00] sm:$0xff] (%p6661_p9), %v2851_v59   ;;  %2856 = vst [vmem:[%s6254_s24 + $0xb08] sm:$0xff] (%p6661_p9), %v2855_v63  }
 0x446   : > { %4194 = vst.msk [vmem:[%s4659_s12 + $0x5d4] sm:$0xf] %vm670_vm1, %v2036_v20  ;;  %4193 = vst.msk [vmem:[%s4659_s12 + $0x5d0] sm:$0xf] %vm670_vm1, %v2034_v24  ;;  %v2355_v20 = vld [vmem:[%s4659_s12 + $0x1a0] sm:$0xff] (%p6661_p9)   ;;  %v2359_v24 = vld [vmem:[%s4659_s12 + $0x1a8] sm:$0xff] (%p6661_p9)  }
 0x447   : > { %2356 = vst [vmem:[%s6254_s24 + $0x320] sm:$0xff] (%p6661_p9), %v2355_v20   ;;  %2360 = vst [vmem:[%s6254_s24 + $0x328] sm:$0xff] (%p6661_p9), %v2359_v24   ;;  %v2611_v20 = vld [vmem:[%s4659_s12 + $0x3a0] sm:$0xff] (%p6661_p9)   ;;  %v2615_v24 = vld [vmem:[%s4659_s12 + $0x3a8] sm:$0xff] (%p6661_p9)  }
 0x448   : > { %2612 = vst [vmem:[%s6254_s24 + $0x720] sm:$0xff] (%p6661_p9), %v2611_v20   ;;  %2616 = vst [vmem:[%s6254_s24 + $0x728] sm:$0xff] (%p6661_p9), %v2615_v24   ;;  %v2867_v20 = vld [vmem:[%s4659_s12 + $0x5a0] sm:$0xff] (%p6661_p9)   ;;  %v2871_v24 = vld [vmem:[%s4659_s12 + $0x5a8] sm:$0xff] (%p6661_p9)  }
 0x449   : > { %v2040_v13 = vpop.permute.xlu1 %2039  ;;  %v2038_v52 = vpop.permute.xlu0 %2037  ;;  %2860 = vst [vmem:[%s6254_s24 + $0xb10] sm:$0xff] (%p6661_p9), %v2859_v53   ;;  %2864 = vst [vmem:[%s6254_s24 + $0xb18] sm:$0xff] (%p6661_p9), %v2863_v26  }
 0x44a   : > { %4196 = vst.msk [vmem:[%s4659_s12 + $0x5dc] sm:$0xf] %vm670_vm1, %v2040_v13  ;;  %4195 = vst.msk [vmem:[%s4659_s12 + $0x5d8] sm:$0xf] %vm670_vm1, %v2038_v52  ;;  %v2363_v13 = vld [vmem:[%s4659_s12 + $0x1b0] sm:$0xff] (%p6661_p9)   ;;  %v2367_v52 = vld [vmem:[%s4659_s12 + $0x1b8] sm:$0xff] (%p6661_p9)  }
 0x44b   : > { %2364 = vst [vmem:[%s6254_s24 + $0x330] sm:$0xff] (%p6661_p9), %v2363_v13   ;;  %2368 = vst [vmem:[%s6254_s24 + $0x338] sm:$0xff] (%p6661_p9), %v2367_v52   ;;  %v2619_v13 = vld [vmem:[%s4659_s12 + $0x3b0] sm:$0xff] (%p6661_p9)   ;;  %v2623_v52 = vld [vmem:[%s4659_s12 + $0x3b8] sm:$0xff] (%p6661_p9)  }
 0x44c   : > { %2620 = vst [vmem:[%s6254_s24 + $0x730] sm:$0xff] (%p6661_p9), %v2619_v13   ;;  %2624 = vst [vmem:[%s6254_s24 + $0x738] sm:$0xff] (%p6661_p9), %v2623_v52   ;;  %v2875_v13 = vld [vmem:[%s4659_s12 + $0x5b0] sm:$0xff] (%p6661_p9)   ;;  %v2879_v52 = vld [vmem:[%s4659_s12 + $0x5b8] sm:$0xff] (%p6661_p9)  }
 0x44d   : > { %v2044_v43 = vpop.permute.xlu1 %2043  ;;  %v2042_v46 = vpop.permute.xlu0 %2041  ;;  %2868 = vst [vmem:[%s6254_s24 + $0xb20] sm:$0xff] (%p6661_p9), %v2867_v20   ;;  %2872 = vst [vmem:[%s6254_s24 + $0xb28] sm:$0xff] (%p6661_p9), %v2871_v24  }
 0x44e   : > { %4198 = vst.msk [vmem:[%s4659_s12 + $0x5e4] sm:$0xf] %vm670_vm1, %v2044_v43  ;;  %4197 = vst.msk [vmem:[%s4659_s12 + $0x5e0] sm:$0xf] %vm670_vm1, %v2042_v46  ;;  %v2371_v43 = vld [vmem:[%s4659_s12 + $0x1c0] sm:$0xff] (%p6661_p9)   ;;  %v2375_v46 = vld [vmem:[%s4659_s12 + $0x1c8] sm:$0xff] (%p6661_p9)  }
 0x44f   : > { %2372 = vst [vmem:[%s6254_s24 + $0x340] sm:$0xff] (%p6661_p9), %v2371_v43   ;;  %2376 = vst [vmem:[%s6254_s24 + $0x348] sm:$0xff] (%p6661_p9), %v2375_v46   ;;  %v2627_v43 = vld [vmem:[%s4659_s12 + $0x3c0] sm:$0xff] (%p6661_p9)   ;;  %v2631_v46 = vld [vmem:[%s4659_s12 + $0x3c8] sm:$0xff] (%p6661_p9)  }
 0x450   : > { %2628 = vst [vmem:[%s6254_s24 + $0x740] sm:$0xff] (%p6661_p9), %v2627_v43   ;;  %2632 = vst [vmem:[%s6254_s24 + $0x748] sm:$0xff] (%p6661_p9), %v2631_v46   ;;  %v2883_v43 = vld [vmem:[%s4659_s12 + $0x5c0] sm:$0xff] (%p6661_p9)   ;;  %v2887_v46 = vld [vmem:[%s4659_s12 + $0x5c8] sm:$0xff] (%p6661_p9)  }
 0x451   : > { %v2048_v42 = vpop.permute.xlu1 %2047  ;;  %v2046_v37 = vpop.permute.xlu0 %2045  ;;  %2876 = vst [vmem:[%s6254_s24 + $0xb30] sm:$0xff] (%p6661_p9), %v2875_v13   ;;  %2880 = vst [vmem:[%s6254_s24 + $0xb38] sm:$0xff] (%p6661_p9), %v2879_v52  }
 0x452   : > { %4200 = vst.msk [vmem:[%s4659_s12 + $0x5ec] sm:$0xf] %vm670_vm1, %v2048_v42  ;;  %4199 = vst.msk [vmem:[%s4659_s12 + $0x5e8] sm:$0xf] %vm670_vm1, %v2046_v37  ;;  %v2379_v42 = vld [vmem:[%s4659_s12 + $0x1d0] sm:$0xff] (%p6661_p9)   ;;  %v2383_v37 = vld [vmem:[%s4659_s12 + $0x1d8] sm:$0xff] (%p6661_p9)  }
 0x453   : > { %2380 = vst [vmem:[%s6254_s24 + $0x350] sm:$0xff] (%p6661_p9), %v2379_v42   ;;  %2384 = vst [vmem:[%s6254_s24 + $0x358] sm:$0xff] (%p6661_p9), %v2383_v37   ;;  %v2635_v42 = vld [vmem:[%s4659_s12 + $0x3d0] sm:$0xff] (%p6661_p9)   ;;  %v2639_v37 = vld [vmem:[%s4659_s12 + $0x3d8] sm:$0xff] (%p6661_p9)  }
 0x454   : > { %2128 = sbr.rel (!%p6661_p9) target bundleno = 1123 (0x463), region = 44  ;;  %2636 = vst [vmem:[%s6254_s24 + $0x750] sm:$0xff] (%p6661_p9), %v2635_v42   ;;  %2640 = vst [vmem:[%s6254_s24 + $0x758] sm:$0xff] (%p6661_p9), %v2639_v37   ;;  %v2891_v42 = vld [vmem:[%s4659_s12 + $0x5d0] sm:$0xff] (%p6661_p9)   ;;  %v2895_v37 = vld [vmem:[%s4659_s12 + $0x5d8] sm:$0xff] (%p6661_p9)  }
 0x455   : > { %v2052_v36 = vpop.permute.xlu1 %2051  ;;  %v2050_v40 = vpop.permute.xlu0 %2049  ;;  %2884 = vst [vmem:[%s6254_s24 + $0xb40] sm:$0xff] (%p6661_p9), %v2883_v43   ;;  %2888 = vst [vmem:[%s6254_s24 + $0xb48] sm:$0xff] (%p6661_p9), %v2887_v46  }
 0x456   : > { %4202 = vst.msk [vmem:[%s4659_s12 + $0x5f4] sm:$0xf] %vm670_vm1, %v2052_v36  ;;  %4201 = vst.msk [vmem:[%s4659_s12 + $0x5f0] sm:$0xf] %vm670_vm1, %v2050_v40  ;;  %v2387_v36 = vld [vmem:[%s4659_s12 + $0x1e0] sm:$0xff] (%p6661_p9)   ;;  %v2391_v40 = vld [vmem:[%s4659_s12 + $0x1e8] sm:$0xff] (%p6661_p9)  }
 0x457   : > { %2388 = vst [vmem:[%s6254_s24 + $0x360] sm:$0xff] (%p6661_p9), %v2387_v36   ;;  %2392 = vst [vmem:[%s6254_s24 + $0x368] sm:$0xff] (%p6661_p9), %v2391_v40   ;;  %v2643_v36 = vld [vmem:[%s4659_s12 + $0x3e0] sm:$0xff] (%p6661_p9)   ;;  %v2647_v40 = vld [vmem:[%s4659_s12 + $0x3e8] sm:$0xff] (%p6661_p9)  }
 0x458   : > { %2644 = vst [vmem:[%s6254_s24 + $0x760] sm:$0xff] (%p6661_p9), %v2643_v36   ;;  %2648 = vst [vmem:[%s6254_s24 + $0x768] sm:$0xff] (%p6661_p9), %v2647_v40   ;;  %v2899_v36 = vld [vmem:[%s4659_s12 + $0x5e0] sm:$0xff] (%p6661_p9)  }
 0x459   : > { %v2056_v30 = vpop.permute.xlu1 %2055  ;;  %v2054_v2 = vpop.permute.xlu0 %2053  ;;  %2892 = vst [vmem:[%s6254_s24 + $0xb50] sm:$0xff] (%p6661_p9), %v2891_v42   ;;  %2896 = vst [vmem:[%s6254_s24 + $0xb58] sm:$0xff] (%p6661_p9), %v2895_v37   ;;  %v2903_v40 = vld [vmem:[%s4659_s12 + $0x5e8] sm:$0xff] (%p6661_p9)  }
 0x45a   : > { %4204 = vst.msk [vmem:[%s4659_s12 + $0x5fc] sm:$0xf] %vm670_vm1, %v2056_v30  ;;  %4203 = vst.msk [vmem:[%s4659_s12 + $0x5f8] sm:$0xf] %vm670_vm1, %v2054_v2  ;;  %v2395_v30 = vld [vmem:[%s4659_s12 + $0x1f0] sm:$0xff] (%p6661_p9)   ;;  %v2399_v2 = vld [vmem:[%s4659_s12 + $0x1f8] sm:$0xff] (%p6661_p9)  }
 0x45b   : > { %2396 = vst [vmem:[%s6254_s24 + $0x370] sm:$0xff] %v2395_v30   ;;  %2400 = vst [vmem:[%s6254_s24 + $0x378] sm:$0xff] %v2399_v2   ;;  %v2651_v30 = vld [vmem:[%s4659_s12 + $0x3f0] sm:$0xff]   ;;  %v2655_v2 = vld [vmem:[%s4659_s12 + $0x3f8] sm:$0xff]  }
 0x45c   : > { %2652 = vst [vmem:[%s6254_s24 + $0x770] sm:$0xff] %v2651_v30   ;;  %2656 = vst [vmem:[%s6254_s24 + $0x778] sm:$0xff] %v2655_v2  }
 0x45d   : > { %2900 = vst [vmem:[%s6254_s24 + $0xb60] sm:$0xff] %v2899_v36   ;;  %v2907_v30 = vld [vmem:[%s4659_s12 + $0x5f0] sm:$0xff]   ;;  %2904 = vst [vmem:[%s6254_s24 + $0xb68] sm:$0xff] %v2903_v40  }
 0x45e   : > { %2908 = vst [vmem:[%s6254_s24 + $0xb70] sm:$0xff] %v2907_v30  }
 0x461   : > { %v2911_v2 = vld [vmem:[%s4659_s12 + $0x5f8] sm:$0xff]  }
 0x462   : > { %2912 = vst [vmem:[%s6254_s24 + $0xb78] sm:$0xff] %v2911_v2  }
 0x463 PF: > { %p12_p13 = scmp.ge.s32.totalorder %s4515_s16, 4   ;;  %s6662_s12 = smov %s4459_s13 }
 0x464   : > { %s6663_s13 = smov %s4523_s19  ;;  %s6664_s14 = smov %s4515_s16 }
 0x465   :  { %14 = sbr.rel (!%p12_p13) target bundleno = 3 (0x3), region = 123 }
 0x46c   :  { %3715 = vsyncpa [#allocation3], 1 }
 0x46d   :  { %3717 = vsyncpa [#allocation3 + $0x1], 1 }
 0x46e   :  { %3718 = vsyncpa [#allocation5], 1 }

</bundles_post_ra>
